<compile_context>
chip_gen: v7x
topology: tpu7x:2x2x1
jax: 0.10.0
libtpu: 0.0.40
codegen_flags: <defaults>
</compile_context>

<pallas_src>
import functools
import math

import numpy as np
import jax
import jax.numpy as jnp
from jax import lax
from jax.experimental import pallas as pl
from jax.experimental.pallas import tpu as pltpu


# ---------------------------------------------------------------------------
# In-kernel helpers
# ---------------------------------------------------------------------------

def _layernorm(v, alpha, bias, d, eps):
    """NormLayer: alpha*(x-mean)/(std+eps)+bias with torch (unbiased) std."""
    mean = jnp.mean(v, axis=-1, keepdims=True)
    var = jnp.sum((v - mean) ** 2, axis=-1, keepdims=True) * (1.0 / (d - 1))
    return alpha * (v - mean) / (jnp.sqrt(var) + eps) + bias


def _attend(q, k, v, bias, *, heads, d):
    """Multi-head attention core on batch-flattened activations.

    q: (Mq, D) f32, k/v: (Mk, D) f32, bias: (Mq, Mk) f32 additive mask
    (0 where attended, -1e9 where masked).  The block-diagonal structure of
    `bias` prevents queries of one batch element from attending to keys of
    another, which is what makes the batch flattening legal.
    """
    dk = d // heads
    scale = 1.0 / math.sqrt(dk)
    qb = q.astype(jnp.bfloat16)
    kb = k.astype(jnp.bfloat16)
    vb = v.astype(jnp.bfloat16)
    outs = []
    for h in range(heads):
        qh = qb[:, h * dk:(h + 1) * dk]
        kh = kb[:, h * dk:(h + 1) * dk]
        vh = vb[:, h * dk:(h + 1) * dk]
        # q @ k^T without materializing a transpose (NT dot_general).
        s = lax.dot_general(qh, kh, (((1,), (1,)), ((), ())),
                            preferred_element_type=jnp.float32)
        s = s * scale + bias                       # masked_fill(-1e9) semantics
        s = s - jnp.max(s, axis=-1, keepdims=True)
        p = jnp.exp(s)
        p = p / jnp.sum(p, axis=-1, keepdims=True)
        outs.append(jnp.dot(p.astype(jnp.bfloat16), vh,
                            preferred_element_type=jnp.float32))
    return jnp.concatenate(outs, axis=-1)          # (Mq, D)


# ---------------------------------------------------------------------------
# Fused whole-decoder kernel (single pallas_call, no grid)
# ---------------------------------------------------------------------------

def _decoder_kernel(ids_ref, embed_ref, pe_ref, e_ref,
                    bias_self_ref, bias_cross_ref, norms_ref,
                    wqkv_s_ref, bqkv_s_ref, wo_s_ref, bo_s_ref,
                    wq_c_ref, bq_c_ref, wkv_c_ref, bkv_c_ref,
                    wo_c_ref, bo_c_ref,
                    w1_ref, b1_ref, w2t_ref, b2_ref,
                    final_ref, o_ref,
                    *, n_layers, heads, d_model, batch, eps, embed_scale):
    D = d_model
    M = ids_ref.shape[0]           # batch * trg_len
    V = embed_ref.shape[0]

    # ---- embedding lookup (exact one-hot f32 matmul) + sqrt(d)*x + PE -------
    ids = ids_ref[...]                                            # (M, 1) int32
    onehot = (lax.broadcasted_iota(jnp.int32, (M, V), 1) == ids).astype(jnp.float32)
    x = jnp.dot(onehot, embed_ref[...], preferred_element_type=jnp.float32)
    pe = jnp.concatenate([pe_ref[...]] * batch, axis=0)           # (M, D)
    x = x * embed_scale + pe

    e = e_ref[...]                                                # (B*Se, D)
    bias_self = bias_self_ref[...]                                # (M, M)
    bias_cross = bias_cross_ref[...]                              # (M, B*Se)

    for l in range(n_layers):              # static unroll (N known at trace)
        norms = norms_ref[l]                                      # (3, 2, D)

        # -- self-attention block ---------------------------------------------
        x2 = _layernorm(x, norms[0, 0:1, :], norms[0, 1:2, :], D, eps)
        qkv = jnp.dot(x2.astype(jnp.bfloat16), wqkv_s_ref[l],
                      preferred_element_type=jnp.float32) + bqkv_s_ref[l]
        a = _attend(qkv[:, :D], qkv[:, D:2 * D], qkv[:, 2 * D:3 * D],
                    bias_self, heads=heads, d=D)
        a = jnp.dot(a.astype(jnp.bfloat16), wo_s_ref[l],
                    preferred_element_type=jnp.float32) + bo_s_ref[l]
        x = x + a                         # dropout_1 == identity (eval mode)

        # -- cross-attention block --------------------------------------------
        x2 = _layernorm(x, norms[1, 0:1, :], norms[1, 1:2, :], D, eps)
        qc = jnp.dot(x2.astype(jnp.bfloat16), wq_c_ref[l],
                     preferred_element_type=jnp.float32) + bq_c_ref[l]
        kv = jnp.dot(e.astype(jnp.bfloat16), wkv_c_ref[l],
                     preferred_element_type=jnp.float32) + bkv_c_ref[l]
        a = _attend(qc, kv[:, :D], kv[:, D:], bias_cross, heads=heads, d=D)
        a = jnp.dot(a.astype(jnp.bfloat16), wo_c_ref[l],
                    preferred_element_type=jnp.float32) + bo_c_ref[l]
        x = x + a                         # dropout_2 == identity

        # -- feed-forward block -------------------------------------------------
        x2 = _layernorm(x, norms[2, 0:1, :], norms[2, 1:2, :], D, eps)
        h = jnp.dot(x2.astype(jnp.bfloat16), w1_ref[l],
                    preferred_element_type=jnp.float32) + b1_ref[l]
        h = jnp.maximum(h, 0.0)
        # W2 is stored transposed (D, d_ff): lane-dense VMEM operand, NT matmul.
        y = lax.dot_general(h.astype(jnp.bfloat16), w2t_ref[l],
                            (((1,), (1,)), ((), ())),
                            preferred_element_type=jnp.float32) + b2_ref[l]
        x = x + y                         # dropout_3 == identity

    # ---- final Decoder NormLayer (fused epilogue) ----------------------------
    fab = final_ref[...]
    x = _layernorm(x, fab[0:1, :], fab[1:2, :], D, eps)
    o_ref[...] = x


# ---------------------------------------------------------------------------
# Wrapper
# ---------------------------------------------------------------------------

def decoder_forward(trg, e_outputs, src_mask, trg_mask, params, *, heads, d_model):
    B, St = trg.shape
    Se = e_outputs.shape[1]
    D = d_model
    M = B * St

    ids = trg.reshape(M, 1).astype(jnp.int32)
    e_flat = e_outputs.reshape(B * Se, D)
    pe = params["pe"][:St]                                        # (St, D)

    # Block-diagonal additive masks over the flattened batch (shared by all
    # heads and all layers).  0 -> attend, -1e9 -> masked (masked_fill semantics
    # up to exp underflow).
    eye = jnp.eye(B, dtype=jnp.float32)
    big_self = jnp.einsum("bc,bqk->bqck", eye,
                          trg_mask.astype(jnp.float32)).reshape(M, B * St)
    big_cross = jnp.einsum("bc,bqs->bqcs", eye,
                           jnp.broadcast_to(src_mask.astype(jnp.float32),
                                            (B, St, Se))).reshape(M, B * Se)
    bias_self = jnp.where(big_self == 0.0, -1e9, 0.0).astype(jnp.float32)
    bias_cross = jnp.where(big_cross == 0.0, -1e9, 0.0).astype(jnp.float32)

    n_layers = params["norms"].shape[0]
    kernel = functools.partial(_decoder_kernel, n_layers=n_layers, heads=heads,
                               d_model=D, batch=B, eps=1e-6,
                               embed_scale=math.sqrt(D))

    args = (ids, params["embed"], pe, e_flat, bias_self, bias_cross,
            params["norms"],
            params["w_qkv_self"], params["b_qkv_self"],
            params["w_o_self"], params["b_o_self"],
            params["w_q_cross"], params["b_q_cross"],
            params["w_kv_cross"], params["b_kv_cross"],
            params["w_o_cross"], params["b_o_cross"],
            params["w1"], params["b1"], params["w2t"], params["b2"],
            params["final_norm"])

    vspec = pl.BlockSpec(memory_space=pltpu.MemorySpace.VMEM)
    out_flat = pl.pallas_call(
        kernel,
        out_shape=jax.ShapeDtypeStruct((M, D), jnp.float32),
        in_specs=[vspec] * len(args),
        out_specs=vspec,
    )(*args)
    return out_flat.reshape(B, St, D)


# ---------------------------------------------------------------------------
# Deterministic parameter initialization (shapes from the PyTorch __init__)
# ---------------------------------------------------------------------------

def positional_encoding(max_len, d_model):
    # Matches the reference PositionalEncoding construction exactly.
    pe = np.zeros((max_len, d_model), dtype=np.float32)
    for pos in range(max_len):
        for i in range(0, d_model, 2):
            pe[pos, i] = math.sin(pos / 10000 ** (2 * i / d_model))
            pe[pos, i + 1] = math.cos(pos / 10000 ** (2 * (i + 1) / d_model))
    return jnp.asarray(pe)


def _uniform(key, shape, bound):
    return jax.random.uniform(key, shape, jnp.float32, -bound, bound)


def init_decoder(key, vocab, d_model, n_layers, d_ff=2048, max_len=64):
    d = d_model
    bd = 1.0 / math.sqrt(d)
    bff = 1.0 / math.sqrt(d_ff)
    keys = jax.random.split(key, n_layers + 1)

    norms, wqkv_s, bqkv_s, wo_s, bo_s = [], [], [], [], []
    wq_c, bq_c, wkv_c, bkv_c, wo_c, bo_c = [], [], [], [], [], []
    w1, b1, w2t, b2 = [], [], [], []
    for i in range(n_layers):
        k = jax.random.split(keys[1 + i], 20)
        # self-attention: packed [Wq|Wk|Wv] + separate Wo
        wqkv_s.append(jnp.concatenate(
            [_uniform(k[j], (d, d), bd) for j in range(3)], axis=1).astype(jnp.bfloat16))
        bqkv_s.append(jnp.concatenate(
            [_uniform(k[3 + j], (d,), bd) for j in range(3)]).reshape(1, 3 * d))
        wo_s.append(_uniform(k[6], (d, d), bd).astype(jnp.bfloat16))
        bo_s.append(_uniform(k[7], (d,), bd).reshape(1, d))
        # cross-attention: Wq, packed [Wk|Wv], Wo
        wq_c.append(_uniform(k[8], (d, d), bd).astype(jnp.bfloat16))
        bq_c.append(_uniform(k[9], (d,), bd).reshape(1, d))
        wkv_c.append(jnp.concatenate(
            [_uniform(k[10 + j], (d, d), bd) for j in range(2)], axis=1).astype(jnp.bfloat16))
        bkv_c.append(jnp.concatenate(
            [_uniform(k[12 + j], (d,), bd) for j in range(2)]).reshape(1, 2 * d))
        wo_c.append(_uniform(k[14], (d, d), bd).astype(jnp.bfloat16))
        bo_c.append(_uniform(k[15], (d,), bd).reshape(1, d))
        # feed-forward (W2 stored transposed -> lane-dense (d, d_ff))
        w1.append(_uniform(k[16], (d, d_ff), bd).astype(jnp.bfloat16))
        b1.append(_uniform(k[17], (d_ff,), bd).reshape(1, d_ff))
        w2t.append(_uniform(k[18], (d_ff, d), bff).T.astype(jnp.bfloat16))
        b2.append(_uniform(k[19], (d,), bff).reshape(1, d))
        # NormLayer params (alpha=1, bias=0) for norm_1 / norm_2 / norm_3
        ab = jnp.stack([jnp.ones((d,), jnp.float32), jnp.zeros((d,), jnp.float32)])
        norms.append(jnp.stack([ab, ab, ab]))

    stack = lambda xs: jnp.stack(xs, axis=0)
    return {
        "embed": jax.random.normal(keys[0], (vocab, d), jnp.float32),
        "pe": positional_encoding(max_len, d),
        "norms": stack(norms),                                   # (N, 3, 2, D)
        "w_qkv_self": stack(wqkv_s), "b_qkv_self": stack(bqkv_s),
        "w_o_self": stack(wo_s), "b_o_self": stack(bo_s),
        "w_q_cross": stack(wq_c), "b_q_cross": stack(bq_c),
        "w_kv_cross": stack(wkv_c), "b_kv_cross": stack(bkv_c),
        "w_o_cross": stack(wo_c), "b_o_cross": stack(bo_c),
        "w1": stack(w1), "b1": stack(b1), "w2t": stack(w2t), "b2": stack(b2),
        "final_norm": jnp.stack([jnp.ones((d,), jnp.float32),
                                 jnp.zeros((d,), jnp.float32)]),  # (2, D)
    }


# ---------------------------------------------------------------------------
# Main
# ---------------------------------------------------------------------------

if __name__ == "__main__":
    vocab = 64
    d_model = 32
    N = 2
    heads = 4
    batch = 2
    seq_trg = 8
    seq_src = 10

    key = jax.random.PRNGKey(0)
    k_params, k_trg, k_enc = jax.random.split(key, 3)

    params = init_decoder(k_params, vocab, d_model, N)

    trg = jax.random.randint(k_trg, (batch, seq_trg), 0, vocab)
    e_outputs = jax.random.normal(k_enc, (batch, seq_src, d_model), jnp.float32)

    # src_mask: (B, 1, Ss) all-ones; trg_mask: (B, St, St) causal
    src_mask = jnp.ones((batch, 1, seq_src), jnp.float32)
    trg_mask = jnp.broadcast_to(
        jnp.tril(jnp.ones((seq_trg, seq_trg), jnp.float32))[None],
        (batch, seq_trg, seq_trg))

    fwd = jax.jit(functools.partial(decoder_forward, heads=heads,
                                    d_model=d_model))
    out = fwd(trg, e_outputs, src_mask, trg_mask, params)
    jax.block_until_ready(out)

    assert out.shape == (batch, seq_trg, d_model)
    assert bool(jnp.all(jnp.isfinite(out)))
    print("KERNEL_OK")
</pallas_src>

<mosaic_0001>
module attributes {stable_mosaic.version = 11 : i64} {
  func.func @_decoder_kernel(%arg0: memref<16x1xi32, #tpu.memory_space<vmem>>, %arg1: memref<64x32xf32, #tpu.memory_space<vmem>>, %arg2: memref<8x32xf32, #tpu.memory_space<vmem>>, %arg3: memref<20x32xf32, #tpu.memory_space<vmem>>, %arg4: memref<16x16xf32, #tpu.memory_space<vmem>>, %arg5: memref<16x20xf32, #tpu.memory_space<vmem>>, %arg6: memref<2x3x2x32xf32, #tpu.memory_space<vmem>>, %arg7: memref<2x32x96xbf16, #tpu.memory_space<vmem>>, %arg8: memref<2x1x96xf32, #tpu.memory_space<vmem>>, %arg9: memref<2x32x32xbf16, #tpu.memory_space<vmem>>, %arg10: memref<2x1x32xf32, #tpu.memory_space<vmem>>, %arg11: memref<2x32x32xbf16, #tpu.memory_space<vmem>>, %arg12: memref<2x1x32xf32, #tpu.memory_space<vmem>>, %arg13: memref<2x32x64xbf16, #tpu.memory_space<vmem>>, %arg14: memref<2x1x64xf32, #tpu.memory_space<vmem>>, %arg15: memref<2x32x32xbf16, #tpu.memory_space<vmem>>, %arg16: memref<2x1x32xf32, #tpu.memory_space<vmem>>, %arg17: memref<2x32x2048xbf16, #tpu.memory_space<vmem>>, %arg18: memref<2x1x2048xf32, #tpu.memory_space<vmem>>, %arg19: memref<2x32x2048xbf16, #tpu.memory_space<vmem>>, %arg20: memref<2x1x32xf32, #tpu.memory_space<vmem>>, %arg21: memref<2x32xf32, #tpu.memory_space<vmem>>, %arg22: memref<16x32xf32, #tpu.memory_space<vmem>>) attributes {dimension_semantics = [], scalar_prefetch = 0 : i64, scratch_operands = 0 : i64, tpu.core_type = #tpu.core_type<tc>} {
    %c0 = arith.constant 0 : index
    %c0_0 = arith.constant 0 : index
    %0 = vector.load %arg0[%c0, %c0_0] : memref<16x1xi32, #tpu.memory_space<vmem>>, vector<16x1xi32>
    %1 = tpu.iota {dimensions = array<i32: 1>} : vector<16x64xi32>
    %2 = vector.broadcast %0 : vector<16x1xi32> to vector<16x64xi32>
    %3 = arith.cmpi eq, %1, %2 : vector<16x64xi32>
    %4 = arith.extui %3 : vector<16x64xi1> to vector<16x64xi32>
    %5 = arith.sitofp %4 : vector<16x64xi32> to vector<16x64xf32>
    %c0_1 = arith.constant 0 : index
    %c0_2 = arith.constant 0 : index
    %6 = vector.load %arg1[%c0_1, %c0_2] : memref<64x32xf32, #tpu.memory_space<vmem>>, vector<64x32xf32>
    %cst = arith.constant dense<0.000000e+00> : vector<16x32xf32>
    %7 = tpu.matmul %5, %6, %cst {dimension_numbers = #tpu.dot_dimension_numbers<[1], [0], [0], [1], [0, 0, 1, 1], [], []>} : vector<16x64xf32>, vector<64x32xf32>, vector<16x32xf32> -> vector<16x32xf32>
    %c0_3 = arith.constant 0 : index
    %c0_4 = arith.constant 0 : index
    %8 = vector.load %arg2[%c0_3, %c0_4] : memref<8x32xf32, #tpu.memory_space<vmem>>, vector<8x32xf32>
    %9 = tpu.concatenate %8, %8 in 0 : vector<8x32xf32>, vector<8x32xf32> -> vector<16x32xf32>
    %cst_5 = arith.constant 5.65685415 : f32
    %10 = vector.broadcast %cst_5 : f32 to vector<16x32xf32>
    %11 = arith.mulf %7, %10 : vector<16x32xf32>
    %12 = arith.addf %11, %9 : vector<16x32xf32>
    %c0_6 = arith.constant 0 : index
    %c0_7 = arith.constant 0 : index
    %13 = vector.load %arg3[%c0_6, %c0_7] : memref<20x32xf32, #tpu.memory_space<vmem>>, vector<20x32xf32>
    %c0_8 = arith.constant 0 : index
    %c0_9 = arith.constant 0 : index
    %14 = vector.load %arg4[%c0_8, %c0_9] : memref<16x16xf32, #tpu.memory_space<vmem>>, vector<16x16xf32>
    %c0_10 = arith.constant 0 : index
    %c0_11 = arith.constant 0 : index
    %15 = vector.load %arg5[%c0_10, %c0_11] : memref<16x20xf32, #tpu.memory_space<vmem>>, vector<16x20xf32>
    %c0_12 = arith.constant 0 : index
    %c0_13 = arith.constant 0 : index
    %c0_14 = arith.constant 0 : index
    %c0_15 = arith.constant 0 : index
    %16 = vector.load %arg6[%c0_12, %c0_13, %c0_14, %c0_15] : memref<2x3x2x32xf32, #tpu.memory_space<vmem>>, vector<1x3x2x32xf32>
    %17 = vector.shape_cast %16 : vector<1x3x2x32xf32> to vector<3x2x32xf32>
    %18 = vector.extract_strided_slice %17 {offsets = [0, 0, 0], sizes = [1, 1, 32], strides = [1, 1, 1]} : vector<3x2x32xf32> to vector<1x1x32xf32>
    %19 = vector.shape_cast %18 : vector<1x1x32xf32> to vector<1x32xf32>
    %20 = vector.extract_strided_slice %17 {offsets = [0, 1, 0], sizes = [1, 1, 32], strides = [1, 1, 1]} : vector<3x2x32xf32> to vector<1x1x32xf32>
    %21 = vector.shape_cast %20 : vector<1x1x32xf32> to vector<1x32xf32>
    %cst_16 = arith.constant dense<0.000000e+00> : vector<16xf32>
    %22 = vector.multi_reduction <add>, %12, %cst_16 [1] : vector<16x32xf32> to vector<16xf32>
    %23 = vector.shape_cast %22 : vector<16xf32> to vector<16x1xf32>
    %cst_17 = arith.constant 3.200000e+01 : f32
    %24 = vector.broadcast %cst_17 : f32 to vector<16x1xf32>
    %25 = arith.divf %23, %24 : vector<16x1xf32>
    %26 = vector.broadcast %25 : vector<16x1xf32> to vector<16x32xf32>
    %27 = arith.subf %12, %26 : vector<16x32xf32>
    %28 = arith.mulf %27, %27 : vector<16x32xf32>
    %cst_18 = arith.constant dense<0.000000e+00> : vector<16xf32>
    %29 = vector.multi_reduction <add>, %28, %cst_18 [1] : vector<16x32xf32> to vector<16xf32>
    %30 = vector.shape_cast %29 : vector<16xf32> to vector<16x1xf32>
    %cst_19 = arith.constant 0.0322580636 : f32
    %31 = vector.broadcast %cst_19 : f32 to vector<16x1xf32>
    %32 = arith.mulf %30, %31 : vector<16x1xf32>
    %33 = vector.broadcast %25 : vector<16x1xf32> to vector<16x32xf32>
    %34 = arith.subf %12, %33 : vector<16x32xf32>
    %35 = vector.broadcast %19 : vector<1x32xf32> to vector<16x32xf32>
    %36 = arith.mulf %35, %34 : vector<16x32xf32>
    %37 = math.sqrt %32 : vector<16x1xf32>
    %cst_20 = arith.constant 9.99999997E-7 : f32
    %38 = vector.broadcast %cst_20 : f32 to vector<16x1xf32>
    %39 = arith.addf %37, %38 : vector<16x1xf32>
    %40 = vector.broadcast %39 : vector<16x1xf32> to vector<16x32xf32>
    %41 = arith.divf %36, %40 : vector<16x32xf32>
    %42 = vector.broadcast %21 : vector<1x32xf32> to vector<16x32xf32>
    %43 = arith.addf %41, %42 : vector<16x32xf32>
    %44 = arith.truncf %43 : vector<16x32xf32> to vector<16x32xbf16>
    %c0_21 = arith.constant 0 : index
    %c0_22 = arith.constant 0 : index
    %c0_23 = arith.constant 0 : index
    %45 = vector.load %arg7[%c0_21, %c0_22, %c0_23] : memref<2x32x96xbf16, #tpu.memory_space<vmem>>, vector<1x32x96xbf16>
    %46 = vector.shape_cast %45 : vector<1x32x96xbf16> to vector<32x96xbf16>
    %cst_24 = arith.constant dense<0.000000e+00> : vector<16x96xf32>
    %47 = tpu.matmul %44, %46, %cst_24 {dimension_numbers = #tpu.dot_dimension_numbers<[1], [0], [0], [1], [0, 0, 1, 1], [], []>} : vector<16x32xbf16>, vector<32x96xbf16>, vector<16x96xf32> -> vector<16x96xf32>
    %c0_25 = arith.constant 0 : index
    %c0_26 = arith.constant 0 : index
    %c0_27 = arith.constant 0 : index
    %48 = vector.load %arg8[%c0_25, %c0_26, %c0_27] : memref<2x1x96xf32, #tpu.memory_space<vmem>>, vector<1x1x96xf32>
    %49 = vector.shape_cast %48 : vector<1x1x96xf32> to vector<1x96xf32>
    %50 = vector.broadcast %49 : vector<1x96xf32> to vector<16x96xf32>
    %51 = arith.addf %47, %50 : vector<16x96xf32>
    %52 = vector.extract_strided_slice %51 {offsets = [0, 0], sizes = [16, 32], strides = [1, 1]} : vector<16x96xf32> to vector<16x32xf32>
    %53 = vector.extract_strided_slice %51 {offsets = [0, 32], sizes = [16, 32], strides = [1, 1]} : vector<16x96xf32> to vector<16x32xf32>
    %54 = vector.extract_strided_slice %51 {offsets = [0, 64], sizes = [16, 32], strides = [1, 1]} : vector<16x96xf32> to vector<16x32xf32>
    %55 = arith.truncf %52 : vector<16x32xf32> to vector<16x32xbf16>
    %56 = arith.truncf %53 : vector<16x32xf32> to vector<16x32xbf16>
    %57 = arith.truncf %54 : vector<16x32xf32> to vector<16x32xbf16>
    %58 = vector.extract_strided_slice %55 {offsets = [0, 0], sizes = [16, 8], strides = [1, 1]} : vector<16x32xbf16> to vector<16x8xbf16>
    %59 = vector.extract_strided_slice %56 {offsets = [0, 0], sizes = [16, 8], strides = [1, 1]} : vector<16x32xbf16> to vector<16x8xbf16>
    %60 = vector.extract_strided_slice %57 {offsets = [0, 0], sizes = [16, 8], strides = [1, 1]} : vector<16x32xbf16> to vector<16x8xbf16>
    %cst_28 = arith.constant dense<0.000000e+00> : vector<16x16xf32>
    %61 = tpu.matmul %58, %59, %cst_28 {dimension_numbers = #tpu.dot_dimension_numbers<[1], [1], [0], [0], [0, 0, 1, 0], [], []>} : vector<16x8xbf16>, vector<16x8xbf16>, vector<16x16xf32> -> vector<16x16xf32>
    %cst_29 = arith.constant 0.353553385 : f32
    %62 = vector.broadcast %cst_29 : f32 to vector<16x16xf32>
    %63 = arith.mulf %61, %62 : vector<16x16xf32>
    %64 = arith.addf %63, %14 : vector<16x16xf32>
    %cst_30 = arith.constant dense<0xFF800000> : vector<16xf32>
    %65 = vector.multi_reduction <maximumf>, %64, %cst_30 [1] : vector<16x16xf32> to vector<16xf32>
    %66 = vector.shape_cast %65 : vector<16xf32> to vector<16x1xf32>
    %67 = vector.broadcast %66 : vector<16x1xf32> to vector<16x16xf32>
    %68 = arith.subf %64, %67 : vector<16x16xf32>
    %69 = math.exp %68 : vector<16x16xf32>
    %cst_31 = arith.constant dense<0.000000e+00> : vector<16xf32>
    %70 = vector.multi_reduction <add>, %69, %cst_31 [1] : vector<16x16xf32> to vector<16xf32>
    %71 = vector.shape_cast %70 : vector<16xf32> to vector<16x1xf32>
    %72 = vector.broadcast %71 : vector<16x1xf32> to vector<16x16xf32>
    %73 = arith.divf %69, %72 : vector<16x16xf32>
    %74 = arith.truncf %73 : vector<16x16xf32> to vector<16x16xbf16>
    %cst_32 = arith.constant dense<0.000000e+00> : vector<16x8xf32>
    %75 = tpu.matmul %74, %60, %cst_32 {dimension_numbers = #tpu.dot_dimension_numbers<[1], [0], [0], [1], [0, 0, 1, 1], [], []>} : vector<16x16xbf16>, vector<16x8xbf16>, vector<16x8xf32> -> vector<16x8xf32>
    %76 = vector.extract_strided_slice %55 {offsets = [0, 8], sizes = [16, 8], strides = [1, 1]} : vector<16x32xbf16> to vector<16x8xbf16>
    %77 = vector.extract_strided_slice %56 {offsets = [0, 8], sizes = [16, 8], strides = [1, 1]} : vector<16x32xbf16> to vector<16x8xbf16>
    %78 = vector.extract_strided_slice %57 {offsets = [0, 8], sizes = [16, 8], strides = [1, 1]} : vector<16x32xbf16> to vector<16x8xbf16>
    %cst_33 = arith.constant dense<0.000000e+00> : vector<16x16xf32>
    %79 = tpu.matmul %76, %77, %cst_33 {dimension_numbers = #tpu.dot_dimension_numbers<[1], [1], [0], [0], [0, 0, 1, 0], [], []>} : vector<16x8xbf16>, vector<16x8xbf16>, vector<16x16xf32> -> vector<16x16xf32>
    %cst_34 = arith.constant 0.353553385 : f32
    %80 = vector.broadcast %cst_34 : f32 to vector<16x16xf32>
    %81 = arith.mulf %79, %80 : vector<16x16xf32>
    %82 = arith.addf %81, %14 : vector<16x16xf32>
    %cst_35 = arith.constant dense<0xFF800000> : vector<16xf32>
    %83 = vector.multi_reduction <maximumf>, %82, %cst_35 [1] : vector<16x16xf32> to vector<16xf32>
    %84 = vector.shape_cast %83 : vector<16xf32> to vector<16x1xf32>
    %85 = vector.broadcast %84 : vector<16x1xf32> to vector<16x16xf32>
    %86 = arith.subf %82, %85 : vector<16x16xf32>
    %87 = math.exp %86 : vector<16x16xf32>
    %cst_36 = arith.constant dense<0.000000e+00> : vector<16xf32>
    %88 = vector.multi_reduction <add>, %87, %cst_36 [1] : vector<16x16xf32> to vector<16xf32>
    %89 = vector.shape_cast %88 : vector<16xf32> to vector<16x1xf32>
    %90 = vector.broadcast %89 : vector<16x1xf32> to vector<16x16xf32>
    %91 = arith.divf %87, %90 : vector<16x16xf32>
    %92 = arith.truncf %91 : vector<16x16xf32> to vector<16x16xbf16>
    %cst_37 = arith.constant dense<0.000000e+00> : vector<16x8xf32>
    %93 = tpu.matmul %92, %78, %cst_37 {dimension_numbers = #tpu.dot_dimension_numbers<[1], [0], [0], [1], [0, 0, 1, 1], [], []>} : vector<16x16xbf16>, vector<16x8xbf16>, vector<16x8xf32> -> vector<16x8xf32>
    %94 = vector.extract_strided_slice %55 {offsets = [0, 16], sizes = [16, 8], strides = [1, 1]} : vector<16x32xbf16> to vector<16x8xbf16>
    %95 = vector.extract_strided_slice %56 {offsets = [0, 16], sizes = [16, 8], strides = [1, 1]} : vector<16x32xbf16> to vector<16x8xbf16>
    %96 = vector.extract_strided_slice %57 {offsets = [0, 16], sizes = [16, 8], strides = [1, 1]} : vector<16x32xbf16> to vector<16x8xbf16>
    %cst_38 = arith.constant dense<0.000000e+00> : vector<16x16xf32>
    %97 = tpu.matmul %94, %95, %cst_38 {dimension_numbers = #tpu.dot_dimension_numbers<[1], [1], [0], [0], [0, 0, 1, 0], [], []>} : vector<16x8xbf16>, vector<16x8xbf16>, vector<16x16xf32> -> vector<16x16xf32>
    %cst_39 = arith.constant 0.353553385 : f32
    %98 = vector.broadcast %cst_39 : f32 to vector<16x16xf32>
    %99 = arith.mulf %97, %98 : vector<16x16xf32>
    %100 = arith.addf %99, %14 : vector<16x16xf32>
    %cst_40 = arith.constant dense<0xFF800000> : vector<16xf32>
    %101 = vector.multi_reduction <maximumf>, %100, %cst_40 [1] : vector<16x16xf32> to vector<16xf32>
    %102 = vector.shape_cast %101 : vector<16xf32> to vector<16x1xf32>
    %103 = vector.broadcast %102 : vector<16x1xf32> to vector<16x16xf32>
    %104 = arith.subf %100, %103 : vector<16x16xf32>
    %105 = math.exp %104 : vector<16x16xf32>
    %cst_41 = arith.constant dense<0.000000e+00> : vector<16xf32>
    %106 = vector.multi_reduction <add>, %105, %cst_41 [1] : vector<16x16xf32> to vector<16xf32>
    %107 = vector.shape_cast %106 : vector<16xf32> to vector<16x1xf32>
    %108 = vector.broadcast %107 : vector<16x1xf32> to vector<16x16xf32>
    %109 = arith.divf %105, %108 : vector<16x16xf32>
    %110 = arith.truncf %109 : vector<16x16xf32> to vector<16x16xbf16>
    %cst_42 = arith.constant dense<0.000000e+00> : vector<16x8xf32>
    %111 = tpu.matmul %110, %96, %cst_42 {dimension_numbers = #tpu.dot_dimension_numbers<[1], [0], [0], [1], [0, 0, 1, 1], [], []>} : vector<16x16xbf16>, vector<16x8xbf16>, vector<16x8xf32> -> vector<16x8xf32>
    %112 = vector.extract_strided_slice %55 {offsets = [0, 24], sizes = [16, 8], strides = [1, 1]} : vector<16x32xbf16> to vector<16x8xbf16>
    %113 = vector.extract_strided_slice %56 {offsets = [0, 24], sizes = [16, 8], strides = [1, 1]} : vector<16x32xbf16> to vector<16x8xbf16>
    %114 = vector.extract_strided_slice %57 {offsets = [0, 24], sizes = [16, 8], strides = [1, 1]} : vector<16x32xbf16> to vector<16x8xbf16>
    %cst_43 = arith.constant dense<0.000000e+00> : vector<16x16xf32>
    %115 = tpu.matmul %112, %113, %cst_43 {dimension_numbers = #tpu.dot_dimension_numbers<[1], [1], [0], [0], [0, 0, 1, 0], [], []>} : vector<16x8xbf16>, vector<16x8xbf16>, vector<16x16xf32> -> vector<16x16xf32>
    %cst_44 = arith.constant 0.353553385 : f32
    %116 = vector.broadcast %cst_44 : f32 to vector<16x16xf32>
    %117 = arith.mulf %115, %116 : vector<16x16xf32>
    %118 = arith.addf %117, %14 : vector<16x16xf32>
    %cst_45 = arith.constant dense<0xFF800000> : vector<16xf32>
    %119 = vector.multi_reduction <maximumf>, %118, %cst_45 [1] : vector<16x16xf32> to vector<16xf32>
    %120 = vector.shape_cast %119 : vector<16xf32> to vector<16x1xf32>
    %121 = vector.broadcast %120 : vector<16x1xf32> to vector<16x16xf32>
    %122 = arith.subf %118, %121 : vector<16x16xf32>
    %123 = math.exp %122 : vector<16x16xf32>
    %cst_46 = arith.constant dense<0.000000e+00> : vector<16xf32>
    %124 = vector.multi_reduction <add>, %123, %cst_46 [1] : vector<16x16xf32> to vector<16xf32>
    %125 = vector.shape_cast %124 : vector<16xf32> to vector<16x1xf32>
    %126 = vector.broadcast %125 : vector<16x1xf32> to vector<16x16xf32>
    %127 = arith.divf %123, %126 : vector<16x16xf32>
    %128 = arith.truncf %127 : vector<16x16xf32> to vector<16x16xbf16>
    %cst_47 = arith.constant dense<0.000000e+00> : vector<16x8xf32>
    %129 = tpu.matmul %128, %114, %cst_47 {dimension_numbers = #tpu.dot_dimension_numbers<[1], [0], [0], [1], [0, 0, 1, 1], [], []>} : vector<16x16xbf16>, vector<16x8xbf16>, vector<16x8xf32> -> vector<16x8xf32>
    %130 = tpu.concatenate %75, %93, %111, %129 in 1 : vector<16x8xf32>, vector<16x8xf32>, vector<16x8xf32>, vector<16x8xf32> -> vector<16x32xf32>
    %131 = arith.truncf %130 : vector<16x32xf32> to vector<16x32xbf16>
    %c0_48 = arith.constant 0 : index
    %c0_49 = arith.constant 0 : index
    %c0_50 = arith.constant 0 : index
    %132 = vector.load %arg9[%c0_48, %c0_49, %c0_50] : memref<2x32x32xbf16, #tpu.memory_space<vmem>>, vector<1x32x32xbf16>
    %133 = vector.shape_cast %132 : vector<1x32x32xbf16> to vector<32x32xbf16>
    %cst_51 = arith.constant dense<0.000000e+00> : vector<16x32xf32>
    %134 = tpu.matmul %131, %133, %cst_51 {dimension_numbers = #tpu.dot_dimension_numbers<[1], [0], [0], [1], [0, 0, 1, 1], [], []>} : vector<16x32xbf16>, vector<32x32xbf16>, vector<16x32xf32> -> vector<16x32xf32>
    %c0_52 = arith.constant 0 : index
    %c0_53 = arith.constant 0 : index
    %c0_54 = arith.constant 0 : index
    %135 = vector.load %arg10[%c0_52, %c0_53, %c0_54] : memref<2x1x32xf32, #tpu.memory_space<vmem>>, vector<1x1x32xf32>
    %136 = vector.shape_cast %135 : vector<1x1x32xf32> to vector<1x32xf32>
    %137 = vector.broadcast %136 : vector<1x32xf32> to vector<16x32xf32>
    %138 = arith.addf %134, %137 : vector<16x32xf32>
    %139 = arith.addf %12, %138 : vector<16x32xf32>
    %140 = vector.extract_strided_slice %17 {offsets = [1, 0, 0], sizes = [1, 1, 32], strides = [1, 1, 1]} : vector<3x2x32xf32> to vector<1x1x32xf32>
    %141 = vector.shape_cast %140 : vector<1x1x32xf32> to vector<1x32xf32>
    %142 = vector.extract_strided_slice %17 {offsets = [1, 1, 0], sizes = [1, 1, 32], strides = [1, 1, 1]} : vector<3x2x32xf32> to vector<1x1x32xf32>
    %143 = vector.shape_cast %142 : vector<1x1x32xf32> to vector<1x32xf32>
    %cst_55 = arith.constant dense<0.000000e+00> : vector<16xf32>
    %144 = vector.multi_reduction <add>, %139, %cst_55 [1] : vector<16x32xf32> to vector<16xf32>
    %145 = vector.shape_cast %144 : vector<16xf32> to vector<16x1xf32>
    %cst_56 = arith.constant 3.200000e+01 : f32
    %146 = vector.broadcast %cst_56 : f32 to vector<16x1xf32>
    %147 = arith.divf %145, %146 : vector<16x1xf32>
    %148 = vector.broadcast %147 : vector<16x1xf32> to vector<16x32xf32>
    %149 = arith.subf %139, %148 : vector<16x32xf32>
    %150 = arith.mulf %149, %149 : vector<16x32xf32>
    %cst_57 = arith.constant dense<0.000000e+00> : vector<16xf32>
    %151 = vector.multi_reduction <add>, %150, %cst_57 [1] : vector<16x32xf32> to vector<16xf32>
    %152 = vector.shape_cast %151 : vector<16xf32> to vector<16x1xf32>
    %cst_58 = arith.constant 0.0322580636 : f32
    %153 = vector.broadcast %cst_58 : f32 to vector<16x1xf32>
    %154 = arith.mulf %152, %153 : vector<16x1xf32>
    %155 = vector.broadcast %147 : vector<16x1xf32> to vector<16x32xf32>
    %156 = arith.subf %139, %155 : vector<16x32xf32>
    %157 = vector.broadcast %141 : vector<1x32xf32> to vector<16x32xf32>
    %158 = arith.mulf %157, %156 : vector<16x32xf32>
    %159 = math.sqrt %154 : vector<16x1xf32>
    %cst_59 = arith.constant 9.99999997E-7 : f32
    %160 = vector.broadcast %cst_59 : f32 to vector<16x1xf32>
    %161 = arith.addf %159, %160 : vector<16x1xf32>
    %162 = vector.broadcast %161 : vector<16x1xf32> to vector<16x32xf32>
    %163 = arith.divf %158, %162 : vector<16x32xf32>
    %164 = vector.broadcast %143 : vector<1x32xf32> to vector<16x32xf32>
    %165 = arith.addf %163, %164 : vector<16x32xf32>
    %166 = arith.truncf %165 : vector<16x32xf32> to vector<16x32xbf16>
    %c0_60 = arith.constant 0 : index
    %c0_61 = arith.constant 0 : index
    %c0_62 = arith.constant 0 : index
    %167 = vector.load %arg11[%c0_60, %c0_61, %c0_62] : memref<2x32x32xbf16, #tpu.memory_space<vmem>>, vector<1x32x32xbf16>
    %168 = vector.shape_cast %167 : vector<1x32x32xbf16> to vector<32x32xbf16>
    %cst_63 = arith.constant dense<0.000000e+00> : vector<16x32xf32>
    %169 = tpu.matmul %166, %168, %cst_63 {dimension_numbers = #tpu.dot_dimension_numbers<[1], [0], [0], [1], [0, 0, 1, 1], [], []>} : vector<16x32xbf16>, vector<32x32xbf16>, vector<16x32xf32> -> vector<16x32xf32>
    %c0_64 = arith.constant 0 : index
    %c0_65 = arith.constant 0 : index
    %c0_66 = arith.constant 0 : index
    %170 = vector.load %arg12[%c0_64, %c0_65, %c0_66] : memref<2x1x32xf32, #tpu.memory_space<vmem>>, vector<1x1x32xf32>
    %171 = vector.shape_cast %170 : vector<1x1x32xf32> to vector<1x32xf32>
    %172 = vector.broadcast %171 : vector<1x32xf32> to vector<16x32xf32>
    %173 = arith.addf %169, %172 : vector<16x32xf32>
    %174 = arith.truncf %13 : vector<20x32xf32> to vector<20x32xbf16>
    %c0_67 = arith.constant 0 : index
    %c0_68 = arith.constant 0 : index
    %c0_69 = arith.constant 0 : index
    %175 = vector.load %arg13[%c0_67, %c0_68, %c0_69] : memref<2x32x64xbf16, #tpu.memory_space<vmem>>, vector<1x32x64xbf16>
    %176 = vector.shape_cast %175 : vector<1x32x64xbf16> to vector<32x64xbf16>
    %cst_70 = arith.constant dense<0.000000e+00> : vector<20x64xf32>
    %177 = tpu.matmul %174, %176, %cst_70 {dimension_numbers = #tpu.dot_dimension_numbers<[1], [0], [0], [1], [0, 0, 1, 1], [], []>} : vector<20x32xbf16>, vector<32x64xbf16>, vector<20x64xf32> -> vector<20x64xf32>
    %c0_71 = arith.constant 0 : index
    %c0_72 = arith.constant 0 : index
    %c0_73 = arith.constant 0 : index
    %178 = vector.load %arg14[%c0_71, %c0_72, %c0_73] : memref<2x1x64xf32, #tpu.memory_space<vmem>>, vector<1x1x64xf32>
    %179 = vector.shape_cast %178 : vector<1x1x64xf32> to vector<1x64xf32>
    %180 = vector.broadcast %179 : vector<1x64xf32> to vector<20x64xf32>
    %181 = arith.addf %177, %180 : vector<20x64xf32>
    %182 = vector.extract_strided_slice %181 {offsets = [0, 0], sizes = [20, 32], strides = [1, 1]} : vector<20x64xf32> to vector<20x32xf32>
    %183 = vector.extract_strided_slice %181 {offsets = [0, 32], sizes = [20, 32], strides = [1, 1]} : vector<20x64xf32> to vector<20x32xf32>
    %184 = arith.truncf %173 : vector<16x32xf32> to vector<16x32xbf16>
    %185 = arith.truncf %182 : vector<20x32xf32> to vector<20x32xbf16>
    %186 = arith.truncf %183 : vector<20x32xf32> to vector<20x32xbf16>
    %187 = vector.extract_strided_slice %184 {offsets = [0, 0], sizes = [16, 8], strides = [1, 1]} : vector<16x32xbf16> to vector<16x8xbf16>
    %188 = vector.extract_strided_slice %185 {offsets = [0, 0], sizes = [20, 8], strides = [1, 1]} : vector<20x32xbf16> to vector<20x8xbf16>
    %189 = vector.extract_strided_slice %186 {offsets = [0, 0], sizes = [20, 8], strides = [1, 1]} : vector<20x32xbf16> to vector<20x8xbf16>
    %cst_74 = arith.constant dense<0.000000e+00> : vector<16x20xf32>
    %190 = tpu.matmul %187, %188, %cst_74 {dimension_numbers = #tpu.dot_dimension_numbers<[1], [1], [0], [0], [0, 0, 1, 0], [], []>} : vector<16x8xbf16>, vector<20x8xbf16>, vector<16x20xf32> -> vector<16x20xf32>
    %cst_75 = arith.constant 0.353553385 : f32
    %191 = vector.broadcast %cst_75 : f32 to vector<16x20xf32>
    %192 = arith.mulf %190, %191 : vector<16x20xf32>
    %193 = arith.addf %192, %15 : vector<16x20xf32>
    %cst_76 = arith.constant dense<0xFF800000> : vector<16xf32>
    %194 = vector.multi_reduction <maximumf>, %193, %cst_76 [1] : vector<16x20xf32> to vector<16xf32>
    %195 = vector.shape_cast %194 : vector<16xf32> to vector<16x1xf32>
    %196 = vector.broadcast %195 : vector<16x1xf32> to vector<16x20xf32>
    %197 = arith.subf %193, %196 : vector<16x20xf32>
    %198 = math.exp %197 : vector<16x20xf32>
    %cst_77 = arith.constant dense<0.000000e+00> : vector<16xf32>
    %199 = vector.multi_reduction <add>, %198, %cst_77 [1] : vector<16x20xf32> to vector<16xf32>
    %200 = vector.shape_cast %199 : vector<16xf32> to vector<16x1xf32>
    %201 = vector.broadcast %200 : vector<16x1xf32> to vector<16x20xf32>
    %202 = arith.divf %198, %201 : vector<16x20xf32>
    %203 = arith.truncf %202 : vector<16x20xf32> to vector<16x20xbf16>
    %cst_78 = arith.constant dense<0.000000e+00> : vector<16x8xf32>
    %204 = tpu.matmul %203, %189, %cst_78 {dimension_numbers = #tpu.dot_dimension_numbers<[1], [0], [0], [1], [0, 0, 1, 1], [], []>} : vector<16x20xbf16>, vector<20x8xbf16>, vector<16x8xf32> -> vector<16x8xf32>
    %205 = vector.extract_strided_slice %184 {offsets = [0, 8], sizes = [16, 8], strides = [1, 1]} : vector<16x32xbf16> to vector<16x8xbf16>
    %206 = vector.extract_strided_slice %185 {offsets = [0, 8], sizes = [20, 8], strides = [1, 1]} : vector<20x32xbf16> to vector<20x8xbf16>
    %207 = vector.extract_strided_slice %186 {offsets = [0, 8], sizes = [20, 8], strides = [1, 1]} : vector<20x32xbf16> to vector<20x8xbf16>
    %cst_79 = arith.constant dense<0.000000e+00> : vector<16x20xf32>
    %208 = tpu.matmul %205, %206, %cst_79 {dimension_numbers = #tpu.dot_dimension_numbers<[1], [1], [0], [0], [0, 0, 1, 0], [], []>} : vector<16x8xbf16>, vector<20x8xbf16>, vector<16x20xf32> -> vector<16x20xf32>
    %cst_80 = arith.constant 0.353553385 : f32
    %209 = vector.broadcast %cst_80 : f32 to vector<16x20xf32>
    %210 = arith.mulf %208, %209 : vector<16x20xf32>
    %211 = arith.addf %210, %15 : vector<16x20xf32>
    %cst_81 = arith.constant dense<0xFF800000> : vector<16xf32>
    %212 = vector.multi_reduction <maximumf>, %211, %cst_81 [1] : vector<16x20xf32> to vector<16xf32>
    %213 = vector.shape_cast %212 : vector<16xf32> to vector<16x1xf32>
    %214 = vector.broadcast %213 : vector<16x1xf32> to vector<16x20xf32>
    %215 = arith.subf %211, %214 : vector<16x20xf32>
    %216 = math.exp %215 : vector<16x20xf32>
    %cst_82 = arith.constant dense<0.000000e+00> : vector<16xf32>
    %217 = vector.multi_reduction <add>, %216, %cst_82 [1] : vector<16x20xf32> to vector<16xf32>
    %218 = vector.shape_cast %217 : vector<16xf32> to vector<16x1xf32>
    %219 = vector.broadcast %218 : vector<16x1xf32> to vector<16x20xf32>
    %220 = arith.divf %216, %219 : vector<16x20xf32>
    %221 = arith.truncf %220 : vector<16x20xf32> to vector<16x20xbf16>
    %cst_83 = arith.constant dense<0.000000e+00> : vector<16x8xf32>
    %222 = tpu.matmul %221, %207, %cst_83 {dimension_numbers = #tpu.dot_dimension_numbers<[1], [0], [0], [1], [0, 0, 1, 1], [], []>} : vector<16x20xbf16>, vector<20x8xbf16>, vector<16x8xf32> -> vector<16x8xf32>
    %223 = vector.extract_strided_slice %184 {offsets = [0, 16], sizes = [16, 8], strides = [1, 1]} : vector<16x32xbf16> to vector<16x8xbf16>
    %224 = vector.extract_strided_slice %185 {offsets = [0, 16], sizes = [20, 8], strides = [1, 1]} : vector<20x32xbf16> to vector<20x8xbf16>
    %225 = vector.extract_strided_slice %186 {offsets = [0, 16], sizes = [20, 8], strides = [1, 1]} : vector<20x32xbf16> to vector<20x8xbf16>
    %cst_84 = arith.constant dense<0.000000e+00> : vector<16x20xf32>
    %226 = tpu.matmul %223, %224, %cst_84 {dimension_numbers = #tpu.dot_dimension_numbers<[1], [1], [0], [0], [0, 0, 1, 0], [], []>} : vector<16x8xbf16>, vector<20x8xbf16>, vector<16x20xf32> -> vector<16x20xf32>
    %cst_85 = arith.constant 0.353553385 : f32
    %227 = vector.broadcast %cst_85 : f32 to vector<16x20xf32>
    %228 = arith.mulf %226, %227 : vector<16x20xf32>
    %229 = arith.addf %228, %15 : vector<16x20xf32>
    %cst_86 = arith.constant dense<0xFF800000> : vector<16xf32>
    %230 = vector.multi_reduction <maximumf>, %229, %cst_86 [1] : vector<16x20xf32> to vector<16xf32>
    %231 = vector.shape_cast %230 : vector<16xf32> to vector<16x1xf32>
    %232 = vector.broadcast %231 : vector<16x1xf32> to vector<16x20xf32>
    %233 = arith.subf %229, %232 : vector<16x20xf32>
    %234 = math.exp %233 : vector<16x20xf32>
    %cst_87 = arith.constant dense<0.000000e+00> : vector<16xf32>
    %235 = vector.multi_reduction <add>, %234, %cst_87 [1] : vector<16x20xf32> to vector<16xf32>
    %236 = vector.shape_cast %235 : vector<16xf32> to vector<16x1xf32>
    %237 = vector.broadcast %236 : vector<16x1xf32> to vector<16x20xf32>
    %238 = arith.divf %234, %237 : vector<16x20xf32>
    %239 = arith.truncf %238 : vector<16x20xf32> to vector<16x20xbf16>
    %cst_88 = arith.constant dense<0.000000e+00> : vector<16x8xf32>
    %240 = tpu.matmul %239, %225, %cst_88 {dimension_numbers = #tpu.dot_dimension_numbers<[1], [0], [0], [1], [0, 0, 1, 1], [], []>} : vector<16x20xbf16>, vector<20x8xbf16>, vector<16x8xf32> -> vector<16x8xf32>
    %241 = vector.extract_strided_slice %184 {offsets = [0, 24], sizes = [16, 8], strides = [1, 1]} : vector<16x32xbf16> to vector<16x8xbf16>
    %242 = vector.extract_strided_slice %185 {offsets = [0, 24], sizes = [20, 8], strides = [1, 1]} : vector<20x32xbf16> to vector<20x8xbf16>
    %243 = vector.extract_strided_slice %186 {offsets = [0, 24], sizes = [20, 8], strides = [1, 1]} : vector<20x32xbf16> to vector<20x8xbf16>
    %cst_89 = arith.constant dense<0.000000e+00> : vector<16x20xf32>
    %244 = tpu.matmul %241, %242, %cst_89 {dimension_numbers = #tpu.dot_dimension_numbers<[1], [1], [0], [0], [0, 0, 1, 0], [], []>} : vector<16x8xbf16>, vector<20x8xbf16>, vector<16x20xf32> -> vector<16x20xf32>
    %cst_90 = arith.constant 0.353553385 : f32
    %245 = vector.broadcast %cst_90 : f32 to vector<16x20xf32>
    %246 = arith.mulf %244, %245 : vector<16x20xf32>
    %247 = arith.addf %246, %15 : vector<16x20xf32>
    %cst_91 = arith.constant dense<0xFF800000> : vector<16xf32>
    %248 = vector.multi_reduction <maximumf>, %247, %cst_91 [1] : vector<16x20xf32> to vector<16xf32>
    %249 = vector.shape_cast %248 : vector<16xf32> to vector<16x1xf32>
    %250 = vector.broadcast %249 : vector<16x1xf32> to vector<16x20xf32>
    %251 = arith.subf %247, %250 : vector<16x20xf32>
    %252 = math.exp %251 : vector<16x20xf32>
    %cst_92 = arith.constant dense<0.000000e+00> : vector<16xf32>
    %253 = vector.multi_reduction <add>, %252, %cst_92 [1] : vector<16x20xf32> to vector<16xf32>
    %254 = vector.shape_cast %253 : vector<16xf32> to vector<16x1xf32>
    %255 = vector.broadcast %254 : vector<16x1xf32> to vector<16x20xf32>
    %256 = arith.divf %252, %255 : vector<16x20xf32>
    %257 = arith.truncf %256 : vector<16x20xf32> to vector<16x20xbf16>
    %cst_93 = arith.constant dense<0.000000e+00> : vector<16x8xf32>
    %258 = tpu.matmul %257, %243, %cst_93 {dimension_numbers = #tpu.dot_dimension_numbers<[1], [0], [0], [1], [0, 0, 1, 1], [], []>} : vector<16x20xbf16>, vector<20x8xbf16>, vector<16x8xf32> -> vector<16x8xf32>
    %259 = tpu.concatenate %204, %222, %240, %258 in 1 : vector<16x8xf32>, vector<16x8xf32>, vector<16x8xf32>, vector<16x8xf32> -> vector<16x32xf32>
    %260 = arith.truncf %259 : vector<16x32xf32> to vector<16x32xbf16>
    %c0_94 = arith.constant 0 : index
    %c0_95 = arith.constant 0 : index
    %c0_96 = arith.constant 0 : index
    %261 = vector.load %arg15[%c0_94, %c0_95, %c0_96] : memref<2x32x32xbf16, #tpu.memory_space<vmem>>, vector<1x32x32xbf16>
    %262 = vector.shape_cast %261 : vector<1x32x32xbf16> to vector<32x32xbf16>
    %cst_97 = arith.constant dense<0.000000e+00> : vector<16x32xf32>
    %263 = tpu.matmul %260, %262, %cst_97 {dimension_numbers = #tpu.dot_dimension_numbers<[1], [0], [0], [1], [0, 0, 1, 1], [], []>} : vector<16x32xbf16>, vector<32x32xbf16>, vector<16x32xf32> -> vector<16x32xf32>
    %c0_98 = arith.constant 0 : index
    %c0_99 = arith.constant 0 : index
    %c0_100 = arith.constant 0 : index
    %264 = vector.load %arg16[%c0_98, %c0_99, %c0_100] : memref<2x1x32xf32, #tpu.memory_space<vmem>>, vector<1x1x32xf32>
    %265 = vector.shape_cast %264 : vector<1x1x32xf32> to vector<1x32xf32>
    %266 = vector.broadcast %265 : vector<1x32xf32> to vector<16x32xf32>
    %267 = arith.addf %263, %266 : vector<16x32xf32>
    %268 = arith.addf %139, %267 : vector<16x32xf32>
    %269 = vector.extract_strided_slice %17 {offsets = [2, 0, 0], sizes = [1, 1, 32], strides = [1, 1, 1]} : vector<3x2x32xf32> to vector<1x1x32xf32>
    %270 = vector.shape_cast %269 : vector<1x1x32xf32> to vector<1x32xf32>
    %271 = vector.extract_strided_slice %17 {offsets = [2, 1, 0], sizes = [1, 1, 32], strides = [1, 1, 1]} : vector<3x2x32xf32> to vector<1x1x32xf32>
    %272 = vector.shape_cast %271 : vector<1x1x32xf32> to vector<1x32xf32>
    %cst_101 = arith.constant dense<0.000000e+00> : vector<16xf32>
    %273 = vector.multi_reduction <add>, %268, %cst_101 [1] : vector<16x32xf32> to vector<16xf32>
    %274 = vector.shape_cast %273 : vector<16xf32> to vector<16x1xf32>
    %cst_102 = arith.constant 3.200000e+01 : f32
    %275 = vector.broadcast %cst_102 : f32 to vector<16x1xf32>
    %276 = arith.divf %274, %275 : vector<16x1xf32>
    %277 = vector.broadcast %276 : vector<16x1xf32> to vector<16x32xf32>
    %278 = arith.subf %268, %277 : vector<16x32xf32>
    %279 = arith.mulf %278, %278 : vector<16x32xf32>
    %cst_103 = arith.constant dense<0.000000e+00> : vector<16xf32>
    %280 = vector.multi_reduction <add>, %279, %cst_103 [1] : vector<16x32xf32> to vector<16xf32>
    %281 = vector.shape_cast %280 : vector<16xf32> to vector<16x1xf32>
    %cst_104 = arith.constant 0.0322580636 : f32
    %282 = vector.broadcast %cst_104 : f32 to vector<16x1xf32>
    %283 = arith.mulf %281, %282 : vector<16x1xf32>
    %284 = vector.broadcast %276 : vector<16x1xf32> to vector<16x32xf32>
    %285 = arith.subf %268, %284 : vector<16x32xf32>
    %286 = vector.broadcast %270 : vector<1x32xf32> to vector<16x32xf32>
    %287 = arith.mulf %286, %285 : vector<16x32xf32>
    %288 = math.sqrt %283 : vector<16x1xf32>
    %cst_105 = arith.constant 9.99999997E-7 : f32
    %289 = vector.broadcast %cst_105 : f32 to vector<16x1xf32>
    %290 = arith.addf %288, %289 : vector<16x1xf32>
    %291 = vector.broadcast %290 : vector<16x1xf32> to vector<16x32xf32>
    %292 = arith.divf %287, %291 : vector<16x32xf32>
    %293 = vector.broadcast %272 : vector<1x32xf32> to vector<16x32xf32>
    %294 = arith.addf %292, %293 : vector<16x32xf32>
    %295 = arith.truncf %294 : vector<16x32xf32> to vector<16x32xbf16>
    %c0_106 = arith.constant 0 : index
    %c0_107 = arith.constant 0 : index
    %c0_108 = arith.constant 0 : index
    %296 = vector.load %arg17[%c0_106, %c0_107, %c0_108] : memref<2x32x2048xbf16, #tpu.memory_space<vmem>>, vector<1x32x2048xbf16>
    %297 = vector.shape_cast %296 : vector<1x32x2048xbf16> to vector<32x2048xbf16>
    %cst_109 = arith.constant dense<0.000000e+00> : vector<16x2048xf32>
    %298 = tpu.matmul %295, %297, %cst_109 {dimension_numbers = #tpu.dot_dimension_numbers<[1], [0], [0], [1], [0, 0, 1, 1], [], []>} : vector<16x32xbf16>, vector<32x2048xbf16>, vector<16x2048xf32> -> vector<16x2048xf32>
    %c0_110 = arith.constant 0 : index
    %c0_111 = arith.constant 0 : index
    %c0_112 = arith.constant 0 : index
    %299 = vector.load %arg18[%c0_110, %c0_111, %c0_112] : memref<2x1x2048xf32, #tpu.memory_space<vmem>>, vector<1x1x2048xf32>
    %300 = vector.shape_cast %299 : vector<1x1x2048xf32> to vector<1x2048xf32>
    %301 = vector.broadcast %300 : vector<1x2048xf32> to vector<16x2048xf32>
    %302 = arith.addf %298, %301 : vector<16x2048xf32>
    %cst_113 = arith.constant 0.000000e+00 : f32
    %303 = vector.broadcast %cst_113 : f32 to vector<16x2048xf32>
    %304 = arith.maximumf %302, %303 : vector<16x2048xf32>
    %305 = arith.truncf %304 : vector<16x2048xf32> to vector<16x2048xbf16>
    %c0_114 = arith.constant 0 : index
    %c0_115 = arith.constant 0 : index
    %c0_116 = arith.constant 0 : index
    %306 = vector.load %arg19[%c0_114, %c0_115, %c0_116] : memref<2x32x2048xbf16, #tpu.memory_space<vmem>>, vector<1x32x2048xbf16>
    %307 = vector.shape_cast %306 : vector<1x32x2048xbf16> to vector<32x2048xbf16>
    %cst_117 = arith.constant dense<0.000000e+00> : vector<16x32xf32>
    %308 = tpu.matmul %305, %307, %cst_117 {dimension_numbers = #tpu.dot_dimension_numbers<[1], [1], [0], [0], [0, 0, 1, 0], [], []>} : vector<16x2048xbf16>, vector<32x2048xbf16>, vector<16x32xf32> -> vector<16x32xf32>
    %c0_118 = arith.constant 0 : index
    %c0_119 = arith.constant 0 : index
    %c0_120 = arith.constant 0 : index
    %309 = vector.load %arg20[%c0_118, %c0_119, %c0_120] : memref<2x1x32xf32, #tpu.memory_space<vmem>>, vector<1x1x32xf32>
    %310 = vector.shape_cast %309 : vector<1x1x32xf32> to vector<1x32xf32>
    %311 = vector.broadcast %310 : vector<1x32xf32> to vector<16x32xf32>
    %312 = arith.addf %308, %311 : vector<16x32xf32>
    %313 = arith.addf %268, %312 : vector<16x32xf32>
    %c1 = arith.constant 1 : index
    %c0_121 = arith.constant 0 : index
    %c0_122 = arith.constant 0 : index
    %c0_123 = arith.constant 0 : index
    %314 = vector.load %arg6[%c1, %c0_121, %c0_122, %c0_123] : memref<2x3x2x32xf32, #tpu.memory_space<vmem>>, vector<1x3x2x32xf32>
    %315 = vector.shape_cast %314 : vector<1x3x2x32xf32> to vector<3x2x32xf32>
    %316 = vector.extract_strided_slice %315 {offsets = [0, 0, 0], sizes = [1, 1, 32], strides = [1, 1, 1]} : vector<3x2x32xf32> to vector<1x1x32xf32>
    %317 = vector.shape_cast %316 : vector<1x1x32xf32> to vector<1x32xf32>
    %318 = vector.extract_strided_slice %315 {offsets = [0, 1, 0], sizes = [1, 1, 32], strides = [1, 1, 1]} : vector<3x2x32xf32> to vector<1x1x32xf32>
    %319 = vector.shape_cast %318 : vector<1x1x32xf32> to vector<1x32xf32>
    %cst_124 = arith.constant dense<0.000000e+00> : vector<16xf32>
    %320 = vector.multi_reduction <add>, %313, %cst_124 [1] : vector<16x32xf32> to vector<16xf32>
    %321 = vector.shape_cast %320 : vector<16xf32> to vector<16x1xf32>
    %cst_125 = arith.constant 3.200000e+01 : f32
    %322 = vector.broadcast %cst_125 : f32 to vector<16x1xf32>
    %323 = arith.divf %321, %322 : vector<16x1xf32>
    %324 = vector.broadcast %323 : vector<16x1xf32> to vector<16x32xf32>
    %325 = arith.subf %313, %324 : vector<16x32xf32>
    %326 = arith.mulf %325, %325 : vector<16x32xf32>
    %cst_126 = arith.constant dense<0.000000e+00> : vector<16xf32>
    %327 = vector.multi_reduction <add>, %326, %cst_126 [1] : vector<16x32xf32> to vector<16xf32>
    %328 = vector.shape_cast %327 : vector<16xf32> to vector<16x1xf32>
    %cst_127 = arith.constant 0.0322580636 : f32
    %329 = vector.broadcast %cst_127 : f32 to vector<16x1xf32>
    %330 = arith.mulf %328, %329 : vector<16x1xf32>
    %331 = vector.broadcast %323 : vector<16x1xf32> to vector<16x32xf32>
    %332 = arith.subf %313, %331 : vector<16x32xf32>
    %333 = vector.broadcast %317 : vector<1x32xf32> to vector<16x32xf32>
    %334 = arith.mulf %333, %332 : vector<16x32xf32>
    %335 = math.sqrt %330 : vector<16x1xf32>
    %cst_128 = arith.constant 9.99999997E-7 : f32
    %336 = vector.broadcast %cst_128 : f32 to vector<16x1xf32>
    %337 = arith.addf %335, %336 : vector<16x1xf32>
    %338 = vector.broadcast %337 : vector<16x1xf32> to vector<16x32xf32>
    %339 = arith.divf %334, %338 : vector<16x32xf32>
    %340 = vector.broadcast %319 : vector<1x32xf32> to vector<16x32xf32>
    %341 = arith.addf %339, %340 : vector<16x32xf32>
    %342 = arith.truncf %341 : vector<16x32xf32> to vector<16x32xbf16>
    %c1_129 = arith.constant 1 : index
    %c0_130 = arith.constant 0 : index
    %c0_131 = arith.constant 0 : index
    %343 = vector.load %arg7[%c1_129, %c0_130, %c0_131] : memref<2x32x96xbf16, #tpu.memory_space<vmem>>, vector<1x32x96xbf16>
    %344 = vector.shape_cast %343 : vector<1x32x96xbf16> to vector<32x96xbf16>
    %cst_132 = arith.constant dense<0.000000e+00> : vector<16x96xf32>
    %345 = tpu.matmul %342, %344, %cst_132 {dimension_numbers = #tpu.dot_dimension_numbers<[1], [0], [0], [1], [0, 0, 1, 1], [], []>} : vector<16x32xbf16>, vector<32x96xbf16>, vector<16x96xf32> -> vector<16x96xf32>
    %c1_133 = arith.constant 1 : index
    %c0_134 = arith.constant 0 : index
    %c0_135 = arith.constant 0 : index
    %346 = vector.load %arg8[%c1_133, %c0_134, %c0_135] : memref<2x1x96xf32, #tpu.memory_space<vmem>>, vector<1x1x96xf32>
    %347 = vector.shape_cast %346 : vector<1x1x96xf32> to vector<1x96xf32>
    %348 = vector.broadcast %347 : vector<1x96xf32> to vector<16x96xf32>
    %349 = arith.addf %345, %348 : vector<16x96xf32>
    %350 = vector.extract_strided_slice %349 {offsets = [0, 0], sizes = [16, 32], strides = [1, 1]} : vector<16x96xf32> to vector<16x32xf32>
    %351 = vector.extract_strided_slice %349 {offsets = [0, 32], sizes = [16, 32], strides = [1, 1]} : vector<16x96xf32> to vector<16x32xf32>
    %352 = vector.extract_strided_slice %349 {offsets = [0, 64], sizes = [16, 32], strides = [1, 1]} : vector<16x96xf32> to vector<16x32xf32>
    %353 = arith.truncf %350 : vector<16x32xf32> to vector<16x32xbf16>
    %354 = arith.truncf %351 : vector<16x32xf32> to vector<16x32xbf16>
    %355 = arith.truncf %352 : vector<16x32xf32> to vector<16x32xbf16>
    %356 = vector.extract_strided_slice %353 {offsets = [0, 0], sizes = [16, 8], strides = [1, 1]} : vector<16x32xbf16> to vector<16x8xbf16>
    %357 = vector.extract_strided_slice %354 {offsets = [0, 0], sizes = [16, 8], strides = [1, 1]} : vector<16x32xbf16> to vector<16x8xbf16>
    %358 = vector.extract_strided_slice %355 {offsets = [0, 0], sizes = [16, 8], strides = [1, 1]} : vector<16x32xbf16> to vector<16x8xbf16>
    %cst_136 = arith.constant dense<0.000000e+00> : vector<16x16xf32>
    %359 = tpu.matmul %356, %357, %cst_136 {dimension_numbers = #tpu.dot_dimension_numbers<[1], [1], [0], [0], [0, 0, 1, 0], [], []>} : vector<16x8xbf16>, vector<16x8xbf16>, vector<16x16xf32> -> vector<16x16xf32>
    %cst_137 = arith.constant 0.353553385 : f32
    %360 = vector.broadcast %cst_137 : f32 to vector<16x16xf32>
    %361 = arith.mulf %359, %360 : vector<16x16xf32>
    %362 = arith.addf %361, %14 : vector<16x16xf32>
    %cst_138 = arith.constant dense<0xFF800000> : vector<16xf32>
    %363 = vector.multi_reduction <maximumf>, %362, %cst_138 [1] : vector<16x16xf32> to vector<16xf32>
    %364 = vector.shape_cast %363 : vector<16xf32> to vector<16x1xf32>
    %365 = vector.broadcast %364 : vector<16x1xf32> to vector<16x16xf32>
    %366 = arith.subf %362, %365 : vector<16x16xf32>
    %367 = math.exp %366 : vector<16x16xf32>
    %cst_139 = arith.constant dense<0.000000e+00> : vector<16xf32>
    %368 = vector.multi_reduction <add>, %367, %cst_139 [1] : vector<16x16xf32> to vector<16xf32>
    %369 = vector.shape_cast %368 : vector<16xf32> to vector<16x1xf32>
    %370 = vector.broadcast %369 : vector<16x1xf32> to vector<16x16xf32>
    %371 = arith.divf %367, %370 : vector<16x16xf32>
    %372 = arith.truncf %371 : vector<16x16xf32> to vector<16x16xbf16>
    %cst_140 = arith.constant dense<0.000000e+00> : vector<16x8xf32>
    %373 = tpu.matmul %372, %358, %cst_140 {dimension_numbers = #tpu.dot_dimension_numbers<[1], [0], [0], [1], [0, 0, 1, 1], [], []>} : vector<16x16xbf16>, vector<16x8xbf16>, vector<16x8xf32> -> vector<16x8xf32>
    %374 = vector.extract_strided_slice %353 {offsets = [0, 8], sizes = [16, 8], strides = [1, 1]} : vector<16x32xbf16> to vector<16x8xbf16>
    %375 = vector.extract_strided_slice %354 {offsets = [0, 8], sizes = [16, 8], strides = [1, 1]} : vector<16x32xbf16> to vector<16x8xbf16>
    %376 = vector.extract_strided_slice %355 {offsets = [0, 8], sizes = [16, 8], strides = [1, 1]} : vector<16x32xbf16> to vector<16x8xbf16>
    %cst_141 = arith.constant dense<0.000000e+00> : vector<16x16xf32>
    %377 = tpu.matmul %374, %375, %cst_141 {dimension_numbers = #tpu.dot_dimension_numbers<[1], [1], [0], [0], [0, 0, 1, 0], [], []>} : vector<16x8xbf16>, vector<16x8xbf16>, vector<16x16xf32> -> vector<16x16xf32>
    %cst_142 = arith.constant 0.353553385 : f32
    %378 = vector.broadcast %cst_142 : f32 to vector<16x16xf32>
    %379 = arith.mulf %377, %378 : vector<16x16xf32>
    %380 = arith.addf %379, %14 : vector<16x16xf32>
    %cst_143 = arith.constant dense<0xFF800000> : vector<16xf32>
    %381 = vector.multi_reduction <maximumf>, %380, %cst_143 [1] : vector<16x16xf32> to vector<16xf32>
    %382 = vector.shape_cast %381 : vector<16xf32> to vector<16x1xf32>
    %383 = vector.broadcast %382 : vector<16x1xf32> to vector<16x16xf32>
    %384 = arith.subf %380, %383 : vector<16x16xf32>
    %385 = math.exp %384 : vector<16x16xf32>
    %cst_144 = arith.constant dense<0.000000e+00> : vector<16xf32>
    %386 = vector.multi_reduction <add>, %385, %cst_144 [1] : vector<16x16xf32> to vector<16xf32>
    %387 = vector.shape_cast %386 : vector<16xf32> to vector<16x1xf32>
    %388 = vector.broadcast %387 : vector<16x1xf32> to vector<16x16xf32>
    %389 = arith.divf %385, %388 : vector<16x16xf32>
    %390 = arith.truncf %389 : vector<16x16xf32> to vector<16x16xbf16>
    %cst_145 = arith.constant dense<0.000000e+00> : vector<16x8xf32>
    %391 = tpu.matmul %390, %376, %cst_145 {dimension_numbers = #tpu.dot_dimension_numbers<[1], [0], [0], [1], [0, 0, 1, 1], [], []>} : vector<16x16xbf16>, vector<16x8xbf16>, vector<16x8xf32> -> vector<16x8xf32>
    %392 = vector.extract_strided_slice %353 {offsets = [0, 16], sizes = [16, 8], strides = [1, 1]} : vector<16x32xbf16> to vector<16x8xbf16>
    %393 = vector.extract_strided_slice %354 {offsets = [0, 16], sizes = [16, 8], strides = [1, 1]} : vector<16x32xbf16> to vector<16x8xbf16>
    %394 = vector.extract_strided_slice %355 {offsets = [0, 16], sizes = [16, 8], strides = [1, 1]} : vector<16x32xbf16> to vector<16x8xbf16>
    %cst_146 = arith.constant dense<0.000000e+00> : vector<16x16xf32>
    %395 = tpu.matmul %392, %393, %cst_146 {dimension_numbers = #tpu.dot_dimension_numbers<[1], [1], [0], [0], [0, 0, 1, 0], [], []>} : vector<16x8xbf16>, vector<16x8xbf16>, vector<16x16xf32> -> vector<16x16xf32>
    %cst_147 = arith.constant 0.353553385 : f32
    %396 = vector.broadcast %cst_147 : f32 to vector<16x16xf32>
    %397 = arith.mulf %395, %396 : vector<16x16xf32>
    %398 = arith.addf %397, %14 : vector<16x16xf32>
    %cst_148 = arith.constant dense<0xFF800000> : vector<16xf32>
    %399 = vector.multi_reduction <maximumf>, %398, %cst_148 [1] : vector<16x16xf32> to vector<16xf32>
    %400 = vector.shape_cast %399 : vector<16xf32> to vector<16x1xf32>
    %401 = vector.broadcast %400 : vector<16x1xf32> to vector<16x16xf32>
    %402 = arith.subf %398, %401 : vector<16x16xf32>
    %403 = math.exp %402 : vector<16x16xf32>
    %cst_149 = arith.constant dense<0.000000e+00> : vector<16xf32>
    %404 = vector.multi_reduction <add>, %403, %cst_149 [1] : vector<16x16xf32> to vector<16xf32>
    %405 = vector.shape_cast %404 : vector<16xf32> to vector<16x1xf32>
    %406 = vector.broadcast %405 : vector<16x1xf32> to vector<16x16xf32>
    %407 = arith.divf %403, %406 : vector<16x16xf32>
    %408 = arith.truncf %407 : vector<16x16xf32> to vector<16x16xbf16>
    %cst_150 = arith.constant dense<0.000000e+00> : vector<16x8xf32>
    %409 = tpu.matmul %408, %394, %cst_150 {dimension_numbers = #tpu.dot_dimension_numbers<[1], [0], [0], [1], [0, 0, 1, 1], [], []>} : vector<16x16xbf16>, vector<16x8xbf16>, vector<16x8xf32> -> vector<16x8xf32>
    %410 = vector.extract_strided_slice %353 {offsets = [0, 24], sizes = [16, 8], strides = [1, 1]} : vector<16x32xbf16> to vector<16x8xbf16>
    %411 = vector.extract_strided_slice %354 {offsets = [0, 24], sizes = [16, 8], strides = [1, 1]} : vector<16x32xbf16> to vector<16x8xbf16>
    %412 = vector.extract_strided_slice %355 {offsets = [0, 24], sizes = [16, 8], strides = [1, 1]} : vector<16x32xbf16> to vector<16x8xbf16>
    %cst_151 = arith.constant dense<0.000000e+00> : vector<16x16xf32>
    %413 = tpu.matmul %410, %411, %cst_151 {dimension_numbers = #tpu.dot_dimension_numbers<[1], [1], [0], [0], [0, 0, 1, 0], [], []>} : vector<16x8xbf16>, vector<16x8xbf16>, vector<16x16xf32> -> vector<16x16xf32>
    %cst_152 = arith.constant 0.353553385 : f32
    %414 = vector.broadcast %cst_152 : f32 to vector<16x16xf32>
    %415 = arith.mulf %413, %414 : vector<16x16xf32>
    %416 = arith.addf %415, %14 : vector<16x16xf32>
    %cst_153 = arith.constant dense<0xFF800000> : vector<16xf32>
    %417 = vector.multi_reduction <maximumf>, %416, %cst_153 [1] : vector<16x16xf32> to vector<16xf32>
    %418 = vector.shape_cast %417 : vector<16xf32> to vector<16x1xf32>
    %419 = vector.broadcast %418 : vector<16x1xf32> to vector<16x16xf32>
    %420 = arith.subf %416, %419 : vector<16x16xf32>
    %421 = math.exp %420 : vector<16x16xf32>
    %cst_154 = arith.constant dense<0.000000e+00> : vector<16xf32>
    %422 = vector.multi_reduction <add>, %421, %cst_154 [1] : vector<16x16xf32> to vector<16xf32>
    %423 = vector.shape_cast %422 : vector<16xf32> to vector<16x1xf32>
    %424 = vector.broadcast %423 : vector<16x1xf32> to vector<16x16xf32>
    %425 = arith.divf %421, %424 : vector<16x16xf32>
    %426 = arith.truncf %425 : vector<16x16xf32> to vector<16x16xbf16>
    %cst_155 = arith.constant dense<0.000000e+00> : vector<16x8xf32>
    %427 = tpu.matmul %426, %412, %cst_155 {dimension_numbers = #tpu.dot_dimension_numbers<[1], [0], [0], [1], [0, 0, 1, 1], [], []>} : vector<16x16xbf16>, vector<16x8xbf16>, vector<16x8xf32> -> vector<16x8xf32>
    %428 = tpu.concatenate %373, %391, %409, %427 in 1 : vector<16x8xf32>, vector<16x8xf32>, vector<16x8xf32>, vector<16x8xf32> -> vector<16x32xf32>
    %429 = arith.truncf %428 : vector<16x32xf32> to vector<16x32xbf16>
    %c1_156 = arith.constant 1 : index
    %c0_157 = arith.constant 0 : index
    %c0_158 = arith.constant 0 : index
    %430 = vector.load %arg9[%c1_156, %c0_157, %c0_158] : memref<2x32x32xbf16, #tpu.memory_space<vmem>>, vector<1x32x32xbf16>
    %431 = vector.shape_cast %430 : vector<1x32x32xbf16> to vector<32x32xbf16>
    %cst_159 = arith.constant dense<0.000000e+00> : vector<16x32xf32>
    %432 = tpu.matmul %429, %431, %cst_159 {dimension_numbers = #tpu.dot_dimension_numbers<[1], [0], [0], [1], [0, 0, 1, 1], [], []>} : vector<16x32xbf16>, vector<32x32xbf16>, vector<16x32xf32> -> vector<16x32xf32>
    %c1_160 = arith.constant 1 : index
    %c0_161 = arith.constant 0 : index
    %c0_162 = arith.constant 0 : index
    %433 = vector.load %arg10[%c1_160, %c0_161, %c0_162] : memref<2x1x32xf32, #tpu.memory_space<vmem>>, vector<1x1x32xf32>
    %434 = vector.shape_cast %433 : vector<1x1x32xf32> to vector<1x32xf32>
    %435 = vector.broadcast %434 : vector<1x32xf32> to vector<16x32xf32>
    %436 = arith.addf %432, %435 : vector<16x32xf32>
    %437 = arith.addf %313, %436 : vector<16x32xf32>
    %438 = vector.extract_strided_slice %315 {offsets = [1, 0, 0], sizes = [1, 1, 32], strides = [1, 1, 1]} : vector<3x2x32xf32> to vector<1x1x32xf32>
    %439 = vector.shape_cast %438 : vector<1x1x32xf32> to vector<1x32xf32>
    %440 = vector.extract_strided_slice %315 {offsets = [1, 1, 0], sizes = [1, 1, 32], strides = [1, 1, 1]} : vector<3x2x32xf32> to vector<1x1x32xf32>
    %441 = vector.shape_cast %440 : vector<1x1x32xf32> to vector<1x32xf32>
    %cst_163 = arith.constant dense<0.000000e+00> : vector<16xf32>
    %442 = vector.multi_reduction <add>, %437, %cst_163 [1] : vector<16x32xf32> to vector<16xf32>
    %443 = vector.shape_cast %442 : vector<16xf32> to vector<16x1xf32>
    %cst_164 = arith.constant 3.200000e+01 : f32
    %444 = vector.broadcast %cst_164 : f32 to vector<16x1xf32>
    %445 = arith.divf %443, %444 : vector<16x1xf32>
    %446 = vector.broadcast %445 : vector<16x1xf32> to vector<16x32xf32>
    %447 = arith.subf %437, %446 : vector<16x32xf32>
    %448 = arith.mulf %447, %447 : vector<16x32xf32>
    %cst_165 = arith.constant dense<0.000000e+00> : vector<16xf32>
    %449 = vector.multi_reduction <add>, %448, %cst_165 [1] : vector<16x32xf32> to vector<16xf32>
    %450 = vector.shape_cast %449 : vector<16xf32> to vector<16x1xf32>
    %cst_166 = arith.constant 0.0322580636 : f32
    %451 = vector.broadcast %cst_166 : f32 to vector<16x1xf32>
    %452 = arith.mulf %450, %451 : vector<16x1xf32>
    %453 = vector.broadcast %445 : vector<16x1xf32> to vector<16x32xf32>
    %454 = arith.subf %437, %453 : vector<16x32xf32>
    %455 = vector.broadcast %439 : vector<1x32xf32> to vector<16x32xf32>
    %456 = arith.mulf %455, %454 : vector<16x32xf32>
    %457 = math.sqrt %452 : vector<16x1xf32>
    %cst_167 = arith.constant 9.99999997E-7 : f32
    %458 = vector.broadcast %cst_167 : f32 to vector<16x1xf32>
    %459 = arith.addf %457, %458 : vector<16x1xf32>
    %460 = vector.broadcast %459 : vector<16x1xf32> to vector<16x32xf32>
    %461 = arith.divf %456, %460 : vector<16x32xf32>
    %462 = vector.broadcast %441 : vector<1x32xf32> to vector<16x32xf32>
    %463 = arith.addf %461, %462 : vector<16x32xf32>
    %464 = arith.truncf %463 : vector<16x32xf32> to vector<16x32xbf16>
    %c1_168 = arith.constant 1 : index
    %c0_169 = arith.constant 0 : index
    %c0_170 = arith.constant 0 : index
    %465 = vector.load %arg11[%c1_168, %c0_169, %c0_170] : memref<2x32x32xbf16, #tpu.memory_space<vmem>>, vector<1x32x32xbf16>
    %466 = vector.shape_cast %465 : vector<1x32x32xbf16> to vector<32x32xbf16>
    %cst_171 = arith.constant dense<0.000000e+00> : vector<16x32xf32>
    %467 = tpu.matmul %464, %466, %cst_171 {dimension_numbers = #tpu.dot_dimension_numbers<[1], [0], [0], [1], [0, 0, 1, 1], [], []>} : vector<16x32xbf16>, vector<32x32xbf16>, vector<16x32xf32> -> vector<16x32xf32>
    %c1_172 = arith.constant 1 : index
    %c0_173 = arith.constant 0 : index
    %c0_174 = arith.constant 0 : index
    %468 = vector.load %arg12[%c1_172, %c0_173, %c0_174] : memref<2x1x32xf32, #tpu.memory_space<vmem>>, vector<1x1x32xf32>
    %469 = vector.shape_cast %468 : vector<1x1x32xf32> to vector<1x32xf32>
    %470 = vector.broadcast %469 : vector<1x32xf32> to vector<16x32xf32>
    %471 = arith.addf %467, %470 : vector<16x32xf32>
    %472 = arith.truncf %13 : vector<20x32xf32> to vector<20x32xbf16>
    %c1_175 = arith.constant 1 : index
    %c0_176 = arith.constant 0 : index
    %c0_177 = arith.constant 0 : index
    %473 = vector.load %arg13[%c1_175, %c0_176, %c0_177] : memref<2x32x64xbf16, #tpu.memory_space<vmem>>, vector<1x32x64xbf16>
    %474 = vector.shape_cast %473 : vector<1x32x64xbf16> to vector<32x64xbf16>
    %cst_178 = arith.constant dense<0.000000e+00> : vector<20x64xf32>
    %475 = tpu.matmul %472, %474, %cst_178 {dimension_numbers = #tpu.dot_dimension_numbers<[1], [0], [0], [1], [0, 0, 1, 1], [], []>} : vector<20x32xbf16>, vector<32x64xbf16>, vector<20x64xf32> -> vector<20x64xf32>
    %c1_179 = arith.constant 1 : index
    %c0_180 = arith.constant 0 : index
    %c0_181 = arith.constant 0 : index
    %476 = vector.load %arg14[%c1_179, %c0_180, %c0_181] : memref<2x1x64xf32, #tpu.memory_space<vmem>>, vector<1x1x64xf32>
    %477 = vector.shape_cast %476 : vector<1x1x64xf32> to vector<1x64xf32>
    %478 = vector.broadcast %477 : vector<1x64xf32> to vector<20x64xf32>
    %479 = arith.addf %475, %478 : vector<20x64xf32>
    %480 = vector.extract_strided_slice %479 {offsets = [0, 0], sizes = [20, 32], strides = [1, 1]} : vector<20x64xf32> to vector<20x32xf32>
    %481 = vector.extract_strided_slice %479 {offsets = [0, 32], sizes = [20, 32], strides = [1, 1]} : vector<20x64xf32> to vector<20x32xf32>
    %482 = arith.truncf %471 : vector<16x32xf32> to vector<16x32xbf16>
    %483 = arith.truncf %480 : vector<20x32xf32> to vector<20x32xbf16>
    %484 = arith.truncf %481 : vector<20x32xf32> to vector<20x32xbf16>
    %485 = vector.extract_strided_slice %482 {offsets = [0, 0], sizes = [16, 8], strides = [1, 1]} : vector<16x32xbf16> to vector<16x8xbf16>
    %486 = vector.extract_strided_slice %483 {offsets = [0, 0], sizes = [20, 8], strides = [1, 1]} : vector<20x32xbf16> to vector<20x8xbf16>
    %487 = vector.extract_strided_slice %484 {offsets = [0, 0], sizes = [20, 8], strides = [1, 1]} : vector<20x32xbf16> to vector<20x8xbf16>
    %cst_182 = arith.constant dense<0.000000e+00> : vector<16x20xf32>
    %488 = tpu.matmul %485, %486, %cst_182 {dimension_numbers = #tpu.dot_dimension_numbers<[1], [1], [0], [0], [0, 0, 1, 0], [], []>} : vector<16x8xbf16>, vector<20x8xbf16>, vector<16x20xf32> -> vector<16x20xf32>
    %cst_183 = arith.constant 0.353553385 : f32
    %489 = vector.broadcast %cst_183 : f32 to vector<16x20xf32>
    %490 = arith.mulf %488, %489 : vector<16x20xf32>
    %491 = arith.addf %490, %15 : vector<16x20xf32>
    %cst_184 = arith.constant dense<0xFF800000> : vector<16xf32>
    %492 = vector.multi_reduction <maximumf>, %491, %cst_184 [1] : vector<16x20xf32> to vector<16xf32>
    %493 = vector.shape_cast %492 : vector<16xf32> to vector<16x1xf32>
    %494 = vector.broadcast %493 : vector<16x1xf32> to vector<16x20xf32>
    %495 = arith.subf %491, %494 : vector<16x20xf32>
    %496 = math.exp %495 : vector<16x20xf32>
    %cst_185 = arith.constant dense<0.000000e+00> : vector<16xf32>
    %497 = vector.multi_reduction <add>, %496, %cst_185 [1] : vector<16x20xf32> to vector<16xf32>
    %498 = vector.shape_cast %497 : vector<16xf32> to vector<16x1xf32>
    %499 = vector.broadcast %498 : vector<16x1xf32> to vector<16x20xf32>
    %500 = arith.divf %496, %499 : vector<16x20xf32>
    %501 = arith.truncf %500 : vector<16x20xf32> to vector<16x20xbf16>
    %cst_186 = arith.constant dense<0.000000e+00> : vector<16x8xf32>
    %502 = tpu.matmul %501, %487, %cst_186 {dimension_numbers = #tpu.dot_dimension_numbers<[1], [0], [0], [1], [0, 0, 1, 1], [], []>} : vector<16x20xbf16>, vector<20x8xbf16>, vector<16x8xf32> -> vector<16x8xf32>
    %503 = vector.extract_strided_slice %482 {offsets = [0, 8], sizes = [16, 8], strides = [1, 1]} : vector<16x32xbf16> to vector<16x8xbf16>
    %504 = vector.extract_strided_slice %483 {offsets = [0, 8], sizes = [20, 8], strides = [1, 1]} : vector<20x32xbf16> to vector<20x8xbf16>
    %505 = vector.extract_strided_slice %484 {offsets = [0, 8], sizes = [20, 8], strides = [1, 1]} : vector<20x32xbf16> to vector<20x8xbf16>
    %cst_187 = arith.constant dense<0.000000e+00> : vector<16x20xf32>
    %506 = tpu.matmul %503, %504, %cst_187 {dimension_numbers = #tpu.dot_dimension_numbers<[1], [1], [0], [0], [0, 0, 1, 0], [], []>} : vector<16x8xbf16>, vector<20x8xbf16>, vector<16x20xf32> -> vector<16x20xf32>
    %cst_188 = arith.constant 0.353553385 : f32
    %507 = vector.broadcast %cst_188 : f32 to vector<16x20xf32>
    %508 = arith.mulf %506, %507 : vector<16x20xf32>
    %509 = arith.addf %508, %15 : vector<16x20xf32>
    %cst_189 = arith.constant dense<0xFF800000> : vector<16xf32>
    %510 = vector.multi_reduction <maximumf>, %509, %cst_189 [1] : vector<16x20xf32> to vector<16xf32>
    %511 = vector.shape_cast %510 : vector<16xf32> to vector<16x1xf32>
    %512 = vector.broadcast %511 : vector<16x1xf32> to vector<16x20xf32>
    %513 = arith.subf %509, %512 : vector<16x20xf32>
    %514 = math.exp %513 : vector<16x20xf32>
    %cst_190 = arith.constant dense<0.000000e+00> : vector<16xf32>
    %515 = vector.multi_reduction <add>, %514, %cst_190 [1] : vector<16x20xf32> to vector<16xf32>
    %516 = vector.shape_cast %515 : vector<16xf32> to vector<16x1xf32>
    %517 = vector.broadcast %516 : vector<16x1xf32> to vector<16x20xf32>
    %518 = arith.divf %514, %517 : vector<16x20xf32>
    %519 = arith.truncf %518 : vector<16x20xf32> to vector<16x20xbf16>
    %cst_191 = arith.constant dense<0.000000e+00> : vector<16x8xf32>
    %520 = tpu.matmul %519, %505, %cst_191 {dimension_numbers = #tpu.dot_dimension_numbers<[1], [0], [0], [1], [0, 0, 1, 1], [], []>} : vector<16x20xbf16>, vector<20x8xbf16>, vector<16x8xf32> -> vector<16x8xf32>
    %521 = vector.extract_strided_slice %482 {offsets = [0, 16], sizes = [16, 8], strides = [1, 1]} : vector<16x32xbf16> to vector<16x8xbf16>
    %522 = vector.extract_strided_slice %483 {offsets = [0, 16], sizes = [20, 8], strides = [1, 1]} : vector<20x32xbf16> to vector<20x8xbf16>
    %523 = vector.extract_strided_slice %484 {offsets = [0, 16], sizes = [20, 8], strides = [1, 1]} : vector<20x32xbf16> to vector<20x8xbf16>
    %cst_192 = arith.constant dense<0.000000e+00> : vector<16x20xf32>
    %524 = tpu.matmul %521, %522, %cst_192 {dimension_numbers = #tpu.dot_dimension_numbers<[1], [1], [0], [0], [0, 0, 1, 0], [], []>} : vector<16x8xbf16>, vector<20x8xbf16>, vector<16x20xf32> -> vector<16x20xf32>
    %cst_193 = arith.constant 0.353553385 : f32
    %525 = vector.broadcast %cst_193 : f32 to vector<16x20xf32>
    %526 = arith.mulf %524, %525 : vector<16x20xf32>
    %527 = arith.addf %526, %15 : vector<16x20xf32>
    %cst_194 = arith.constant dense<0xFF800000> : vector<16xf32>
    %528 = vector.multi_reduction <maximumf>, %527, %cst_194 [1] : vector<16x20xf32> to vector<16xf32>
    %529 = vector.shape_cast %528 : vector<16xf32> to vector<16x1xf32>
    %530 = vector.broadcast %529 : vector<16x1xf32> to vector<16x20xf32>
    %531 = arith.subf %527, %530 : vector<16x20xf32>
    %532 = math.exp %531 : vector<16x20xf32>
    %cst_195 = arith.constant dense<0.000000e+00> : vector<16xf32>
    %533 = vector.multi_reduction <add>, %532, %cst_195 [1] : vector<16x20xf32> to vector<16xf32>
    %534 = vector.shape_cast %533 : vector<16xf32> to vector<16x1xf32>
    %535 = vector.broadcast %534 : vector<16x1xf32> to vector<16x20xf32>
    %536 = arith.divf %532, %535 : vector<16x20xf32>
    %537 = arith.truncf %536 : vector<16x20xf32> to vector<16x20xbf16>
    %cst_196 = arith.constant dense<0.000000e+00> : vector<16x8xf32>
    %538 = tpu.matmul %537, %523, %cst_196 {dimension_numbers = #tpu.dot_dimension_numbers<[1], [0], [0], [1], [0, 0, 1, 1], [], []>} : vector<16x20xbf16>, vector<20x8xbf16>, vector<16x8xf32> -> vector<16x8xf32>
    %539 = vector.extract_strided_slice %482 {offsets = [0, 24], sizes = [16, 8], strides = [1, 1]} : vector<16x32xbf16> to vector<16x8xbf16>
    %540 = vector.extract_strided_slice %483 {offsets = [0, 24], sizes = [20, 8], strides = [1, 1]} : vector<20x32xbf16> to vector<20x8xbf16>
    %541 = vector.extract_strided_slice %484 {offsets = [0, 24], sizes = [20, 8], strides = [1, 1]} : vector<20x32xbf16> to vector<20x8xbf16>
    %cst_197 = arith.constant dense<0.000000e+00> : vector<16x20xf32>
    %542 = tpu.matmul %539, %540, %cst_197 {dimension_numbers = #tpu.dot_dimension_numbers<[1], [1], [0], [0], [0, 0, 1, 0], [], []>} : vector<16x8xbf16>, vector<20x8xbf16>, vector<16x20xf32> -> vector<16x20xf32>
    %cst_198 = arith.constant 0.353553385 : f32
    %543 = vector.broadcast %cst_198 : f32 to vector<16x20xf32>
    %544 = arith.mulf %542, %543 : vector<16x20xf32>
    %545 = arith.addf %544, %15 : vector<16x20xf32>
    %cst_199 = arith.constant dense<0xFF800000> : vector<16xf32>
    %546 = vector.multi_reduction <maximumf>, %545, %cst_199 [1] : vector<16x20xf32> to vector<16xf32>
    %547 = vector.shape_cast %546 : vector<16xf32> to vector<16x1xf32>
    %548 = vector.broadcast %547 : vector<16x1xf32> to vector<16x20xf32>
    %549 = arith.subf %545, %548 : vector<16x20xf32>
    %550 = math.exp %549 : vector<16x20xf32>
    %cst_200 = arith.constant dense<0.000000e+00> : vector<16xf32>
    %551 = vector.multi_reduction <add>, %550, %cst_200 [1] : vector<16x20xf32> to vector<16xf32>
    %552 = vector.shape_cast %551 : vector<16xf32> to vector<16x1xf32>
    %553 = vector.broadcast %552 : vector<16x1xf32> to vector<16x20xf32>
    %554 = arith.divf %550, %553 : vector<16x20xf32>
    %555 = arith.truncf %554 : vector<16x20xf32> to vector<16x20xbf16>
    %cst_201 = arith.constant dense<0.000000e+00> : vector<16x8xf32>
    %556 = tpu.matmul %555, %541, %cst_201 {dimension_numbers = #tpu.dot_dimension_numbers<[1], [0], [0], [1], [0, 0, 1, 1], [], []>} : vector<16x20xbf16>, vector<20x8xbf16>, vector<16x8xf32> -> vector<16x8xf32>
    %557 = tpu.concatenate %502, %520, %538, %556 in 1 : vector<16x8xf32>, vector<16x8xf32>, vector<16x8xf32>, vector<16x8xf32> -> vector<16x32xf32>
    %558 = arith.truncf %557 : vector<16x32xf32> to vector<16x32xbf16>
    %c1_202 = arith.constant 1 : index
    %c0_203 = arith.constant 0 : index
    %c0_204 = arith.constant 0 : index
    %559 = vector.load %arg15[%c1_202, %c0_203, %c0_204] : memref<2x32x32xbf16, #tpu.memory_space<vmem>>, vector<1x32x32xbf16>
    %560 = vector.shape_cast %559 : vector<1x32x32xbf16> to vector<32x32xbf16>
    %cst_205 = arith.constant dense<0.000000e+00> : vector<16x32xf32>
    %561 = tpu.matmul %558, %560, %cst_205 {dimension_numbers = #tpu.dot_dimension_numbers<[1], [0], [0], [1], [0, 0, 1, 1], [], []>} : vector<16x32xbf16>, vector<32x32xbf16>, vector<16x32xf32> -> vector<16x32xf32>
    %c1_206 = arith.constant 1 : index
    %c0_207 = arith.constant 0 : index
    %c0_208 = arith.constant 0 : index
    %562 = vector.load %arg16[%c1_206, %c0_207, %c0_208] : memref<2x1x32xf32, #tpu.memory_space<vmem>>, vector<1x1x32xf32>
    %563 = vector.shape_cast %562 : vector<1x1x32xf32> to vector<1x32xf32>
    %564 = vector.broadcast %563 : vector<1x32xf32> to vector<16x32xf32>
    %565 = arith.addf %561, %564 : vector<16x32xf32>
    %566 = arith.addf %437, %565 : vector<16x32xf32>
    %567 = vector.extract_strided_slice %315 {offsets = [2, 0, 0], sizes = [1, 1, 32], strides = [1, 1, 1]} : vector<3x2x32xf32> to vector<1x1x32xf32>
    %568 = vector.shape_cast %567 : vector<1x1x32xf32> to vector<1x32xf32>
    %569 = vector.extract_strided_slice %315 {offsets = [2, 1, 0], sizes = [1, 1, 32], strides = [1, 1, 1]} : vector<3x2x32xf32> to vector<1x1x32xf32>
    %570 = vector.shape_cast %569 : vector<1x1x32xf32> to vector<1x32xf32>
    %cst_209 = arith.constant dense<0.000000e+00> : vector<16xf32>
    %571 = vector.multi_reduction <add>, %566, %cst_209 [1] : vector<16x32xf32> to vector<16xf32>
    %572 = vector.shape_cast %571 : vector<16xf32> to vector<16x1xf32>
    %cst_210 = arith.constant 3.200000e+01 : f32
    %573 = vector.broadcast %cst_210 : f32 to vector<16x1xf32>
    %574 = arith.divf %572, %573 : vector<16x1xf32>
    %575 = vector.broadcast %574 : vector<16x1xf32> to vector<16x32xf32>
    %576 = arith.subf %566, %575 : vector<16x32xf32>
    %577 = arith.mulf %576, %576 : vector<16x32xf32>
    %cst_211 = arith.constant dense<0.000000e+00> : vector<16xf32>
    %578 = vector.multi_reduction <add>, %577, %cst_211 [1] : vector<16x32xf32> to vector<16xf32>
    %579 = vector.shape_cast %578 : vector<16xf32> to vector<16x1xf32>
    %cst_212 = arith.constant 0.0322580636 : f32
    %580 = vector.broadcast %cst_212 : f32 to vector<16x1xf32>
    %581 = arith.mulf %579, %580 : vector<16x1xf32>
    %582 = vector.broadcast %574 : vector<16x1xf32> to vector<16x32xf32>
    %583 = arith.subf %566, %582 : vector<16x32xf32>
    %584 = vector.broadcast %568 : vector<1x32xf32> to vector<16x32xf32>
    %585 = arith.mulf %584, %583 : vector<16x32xf32>
    %586 = math.sqrt %581 : vector<16x1xf32>
    %cst_213 = arith.constant 9.99999997E-7 : f32
    %587 = vector.broadcast %cst_213 : f32 to vector<16x1xf32>
    %588 = arith.addf %586, %587 : vector<16x1xf32>
    %589 = vector.broadcast %588 : vector<16x1xf32> to vector<16x32xf32>
    %590 = arith.divf %585, %589 : vector<16x32xf32>
    %591 = vector.broadcast %570 : vector<1x32xf32> to vector<16x32xf32>
    %592 = arith.addf %590, %591 : vector<16x32xf32>
    %593 = arith.truncf %592 : vector<16x32xf32> to vector<16x32xbf16>
    %c1_214 = arith.constant 1 : index
    %c0_215 = arith.constant 0 : index
    %c0_216 = arith.constant 0 : index
    %594 = vector.load %arg17[%c1_214, %c0_215, %c0_216] : memref<2x32x2048xbf16, #tpu.memory_space<vmem>>, vector<1x32x2048xbf16>
    %595 = vector.shape_cast %594 : vector<1x32x2048xbf16> to vector<32x2048xbf16>
    %cst_217 = arith.constant dense<0.000000e+00> : vector<16x2048xf32>
    %596 = tpu.matmul %593, %595, %cst_217 {dimension_numbers = #tpu.dot_dimension_numbers<[1], [0], [0], [1], [0, 0, 1, 1], [], []>} : vector<16x32xbf16>, vector<32x2048xbf16>, vector<16x2048xf32> -> vector<16x2048xf32>
    %c1_218 = arith.constant 1 : index
    %c0_219 = arith.constant 0 : index
    %c0_220 = arith.constant 0 : index
    %597 = vector.load %arg18[%c1_218, %c0_219, %c0_220] : memref<2x1x2048xf32, #tpu.memory_space<vmem>>, vector<1x1x2048xf32>
    %598 = vector.shape_cast %597 : vector<1x1x2048xf32> to vector<1x2048xf32>
    %599 = vector.broadcast %598 : vector<1x2048xf32> to vector<16x2048xf32>
    %600 = arith.addf %596, %599 : vector<16x2048xf32>
    %cst_221 = arith.constant 0.000000e+00 : f32
    %601 = vector.broadcast %cst_221 : f32 to vector<16x2048xf32>
    %602 = arith.maximumf %600, %601 : vector<16x2048xf32>
    %603 = arith.truncf %602 : vector<16x2048xf32> to vector<16x2048xbf16>
    %c1_222 = arith.constant 1 : index
    %c0_223 = arith.constant 0 : index
    %c0_224 = arith.constant 0 : index
    %604 = vector.load %arg19[%c1_222, %c0_223, %c0_224] : memref<2x32x2048xbf16, #tpu.memory_space<vmem>>, vector<1x32x2048xbf16>
    %605 = vector.shape_cast %604 : vector<1x32x2048xbf16> to vector<32x2048xbf16>
    %cst_225 = arith.constant dense<0.000000e+00> : vector<16x32xf32>
    %606 = tpu.matmul %603, %605, %cst_225 {dimension_numbers = #tpu.dot_dimension_numbers<[1], [1], [0], [0], [0, 0, 1, 0], [], []>} : vector<16x2048xbf16>, vector<32x2048xbf16>, vector<16x32xf32> -> vector<16x32xf32>
    %c1_226 = arith.constant 1 : index
    %c0_227 = arith.constant 0 : index
    %c0_228 = arith.constant 0 : index
    %607 = vector.load %arg20[%c1_226, %c0_227, %c0_228] : memref<2x1x32xf32, #tpu.memory_space<vmem>>, vector<1x1x32xf32>
    %608 = vector.shape_cast %607 : vector<1x1x32xf32> to vector<1x32xf32>
    %609 = vector.broadcast %608 : vector<1x32xf32> to vector<16x32xf32>
    %610 = arith.addf %606, %609 : vector<16x32xf32>
    %611 = arith.addf %566, %610 : vector<16x32xf32>
    %c0_229 = arith.constant 0 : index
    %c0_230 = arith.constant 0 : index
    %612 = vector.load %arg21[%c0_229, %c0_230] : memref<2x32xf32, #tpu.memory_space<vmem>>, vector<2x32xf32>
    %613 = vector.extract_strided_slice %612 {offsets = [0, 0], sizes = [1, 32], strides = [1, 1]} : vector<2x32xf32> to vector<1x32xf32>
    %614 = vector.extract_strided_slice %612 {offsets = [1, 0], sizes = [1, 32], strides = [1, 1]} : vector<2x32xf32> to vector<1x32xf32>
    %cst_231 = arith.constant dense<0.000000e+00> : vector<16xf32>
    %615 = vector.multi_reduction <add>, %611, %cst_231 [1] : vector<16x32xf32> to vector<16xf32>
    %616 = vector.shape_cast %615 : vector<16xf32> to vector<16x1xf32>
    %cst_232 = arith.constant 3.200000e+01 : f32
    %617 = vector.broadcast %cst_232 : f32 to vector<16x1xf32>
    %618 = arith.divf %616, %617 : vector<16x1xf32>
    %619 = vector.broadcast %618 : vector<16x1xf32> to vector<16x32xf32>
    %620 = arith.subf %611, %619 : vector<16x32xf32>
    %621 = arith.mulf %620, %620 : vector<16x32xf32>
    %cst_233 = arith.constant dense<0.000000e+00> : vector<16xf32>
    %622 = vector.multi_reduction <add>, %621, %cst_233 [1] : vector<16x32xf32> to vector<16xf32>
    %623 = vector.shape_cast %622 : vector<16xf32> to vector<16x1xf32>
    %cst_234 = arith.constant 0.0322580636 : f32
    %624 = vector.broadcast %cst_234 : f32 to vector<16x1xf32>
    %625 = arith.mulf %623, %624 : vector<16x1xf32>
    %626 = vector.broadcast %618 : vector<16x1xf32> to vector<16x32xf32>
    %627 = arith.subf %611, %626 : vector<16x32xf32>
    %628 = vector.broadcast %613 : vector<1x32xf32> to vector<16x32xf32>
    %629 = arith.mulf %628, %627 : vector<16x32xf32>
    %630 = math.sqrt %625 : vector<16x1xf32>
    %cst_235 = arith.constant 9.99999997E-7 : f32
    %631 = vector.broadcast %cst_235 : f32 to vector<16x1xf32>
    %632 = arith.addf %630, %631 : vector<16x1xf32>
    %633 = vector.broadcast %632 : vector<16x1xf32> to vector<16x32xf32>
    %634 = arith.divf %629, %633 : vector<16x32xf32>
    %635 = vector.broadcast %614 : vector<1x32xf32> to vector<16x32xf32>
    %636 = arith.addf %634, %635 : vector<16x32xf32>
    %c0_236 = arith.constant 0 : index
    %c0_237 = arith.constant 0 : index
    %637 = vector.load %arg22[%c0_236, %c0_237] : memref<16x32xf32, #tpu.memory_space<vmem>>, vector<16x32xf32>
    tpu.vector_store %arg22[%c0_236, %c0_237], %636 {strides = array<i32>} : memref<16x32xf32, #tpu.memory_space<vmem>>, vector<16x32xf32>,
    return
  }
}

</mosaic_0001>

<bundles_post_ra>
// kernel: decoder_forward.1
= control target key start
LH: loop header
LB: loop body
LE: loop exit
PB: predicated region body
PF: predicated region fallthrough
CT: control target
= control target key end

     0   :  { %s9075_s0 = inlined_call_operand.vmem [shape: s32[16,1], index: 0, kind: input, shape index: {}]   ;;  %s9076_s1 = inlined_call_operand.vmem [shape: f32[64,32], index: 1, kind: input, shape index: {}]   ;;  %s9077_s2 = inlined_call_operand.vmem [shape: f32[8,32], index: 2, kind: input, shape index: {}]   ;;  %s9078_s3 = inlined_call_operand.vmem [shape: f32[20,32], index: 3, kind: input, shape index: {}]   ;;  %s9079_s4 = inlined_call_operand.vmem [shape: f32[16,16], index: 4, kind: input, shape index: {}]   ;;  %s9080_s5 = inlined_call_operand.vmem [shape: f32[16,20], index: 5, kind: input, shape index: {}]   ;;  %s9081_s6 = inlined_call_operand.hbm [shape: f32[2,3,2,32], index: 6, kind: input, shape index: {}]   ;;  %s9082_s7 = inlined_call_operand.hbm [shape: bf16[2,32,96], index: 7, kind: input, shape index: {}]   ;;  %s9083_s8 = inlined_call_operand.hbm [shape: f32[2,1,96], index: 8, kind: input, shape index: {}]   ;;  %s9084_s9 = inlined_call_operand.hbm [shape: bf16[2,32,32], index: 9, kind: input, shape index: {}]   ;;  %s9085_s10 = inlined_call_operand.hbm [shape: f32[2,1,32], index: 10, kind: input, shape index: {}]   ;;  %s9086_s11 = inlined_call_operand.hbm [shape: bf16[2,32,32], index: 11, kind: input, shape index: {}]   ;;  %s9087_s12 = inlined_call_operand.hbm [shape: f32[2,1,32], index: 12, kind: input, shape index: {}]   ;;  %s9088_s13 = inlined_call_operand.hbm [shape: bf16[2,32,64], index: 13, kind: input, shape index: {}]   ;;  %s9089_s14 = inlined_call_operand.hbm [shape: f32[2,1,64], index: 14, kind: input, shape index: {}]   ;;  %s9090_s15 = inlined_call_operand.hbm [shape: bf16[2,32,32], index: 15, kind: input, shape index: {}]   ;;  %s9091_s16 = inlined_call_operand.hbm [shape: f32[2,1,32], index: 16, kind: input, shape index: {}]   ;;  %s9092_s17 = inlined_call_operand.vmem [shape: bf16[2,32,2048], index: 17, kind: input, shape index: {}]   ;;  %s9093_s18 = inlined_call_operand.hbm [shape: f32[2,1,2048], index: 18, kind: input, shape index: {}]   ;;  %s9094_s19 = inlined_call_operand.hbm [shape: bf16[2,32,2048], index: 19, kind: input, shape index: {}]   ;;  %s9095_s20 = inlined_call_operand.hbm [shape: f32[2,1,32], index: 20, kind: input, shape index: {}]   ;;  %s9096_s21 = inlined_call_operand.hbm [shape: f32[2,32], index: 21, kind: input, shape index: {}]   ;;  %s9097_s22 = inlined_call_operand.hbm [shape: f32[16,32], index: 22, kind: output, shape index: {}]  }
   0x1   :  { %9105 = sst [smem:[#allocation36_spill]] %s9075_s0 }
   0x2   :  { %9106 = sst [smem:[#allocation37_spill]] %s9076_s1 }
   0x3   :  { %9107 = sst [smem:[#allocation38_spill]] %s9077_s2 }
   0x4   :  { %9108 = sst [smem:[#allocation39_spill]] %s9078_s3 }
   0x5   :  { %9109 = sst [smem:[#allocation40_spill]] %s9079_s4 }
   0x6   :  { %9110 = sst [smem:[#allocation41_spill]] %s9080_s5 }
   0x7   :  { %9111 = sst [smem:[#allocation42_spill]] %s9081_s6 }
   0x8   :  { %9112 = sst [smem:[#allocation43_spill]] %s9097_s22 }
   0x9   :  { %27 = vsyncpa [#allocation3], 0 }
   0xa   :  { %28 = vsyncpa [#allocation6], 0 }
   0xb   :  { %29 = vsyncpa [#allocation9], 0 }
   0xc   :  { %30 = vsyncpa [#allocation12], 0 }
   0xd   :  { %31 = vsyncpa [#allocation15], 0 }
   0xe   :  { %32 = vsyncpa [#allocation18], 0 }
   0xf   :  { %33 = vsyncpa [#allocation21], 0 }
  0x10   :  { %34 = vsyncpa [#allocation24], 0 }
  0x11   :  { %35 = vsyncpa [#allocation4], 0  ;;  %s7511_s3 = smov [#allocation5]   ;;  %s7141_s4 = scalar_lea.hbm %s9082_s7, 512 }
  0x12   :  { %s65_s28 = sshll.u32 %s7511_s3, 4  ;;  %p7142_p0 = scmp.ne.s32.totalorder %s9082_s7, %s7141_s4  ;;  %s66_s28 = int_to_ptr.vmem [resolvable:$true] %s65_s28 }
  0x13   :  { %p7145_p1 = scmp.lt.u32.totalorder %s7141_s4, %s9082_s7 }
  0x15   :  { %p7147_p2 = pnand %p7145_p1, %p7142_p0 }
  0x17   :  { %7150 = shalt.err (!%p7147_p2)
}
  0x18   :  { %s7151_s24 = scalar_lea.vmem %s66_s28, 512  ;;  %p7156_p4 = scmp.lt.s32.totalorder %s66_s28, %s66_s28 }
  0x19   :  { %p7152_p3 = scmp.ne.s32.totalorder %s66_s28, %s7151_s24  ;;  %p7157_p5 = scmp.lt.s32.totalorder %s7151_s24, %s7151_s24 }
  0x1b   :  { %p7158_p6 = por %p7157_p5, %p7156_p4 }
  0x1d   :  { %p7159_p7 = pnand %p7158_p6, %p7152_p3 }
  0x1f   :  { %7162 = shalt.err (!%p7159_p7)
}
  0x20   :  { %s7512_s6 = smov 64   ;;  %s7513_s25 = smov 4  }
  0x21   :  { %71 = dma.hbm_to_vmem [thread:$0]  %s9082_s7, 512, %s66_s28, [#allocation6], %s7512_s6, %s7512_s6, %s7513_s25  }
  0x22   :  { %s7514_s27 = smov [#allocation8]   ;;  %s7515_s29 = smov [#allocation11]  }
  0x23   :  { %s89_s3 = sshll.u32 %s7514_s27, 4  ;;  %s113_s30 = sshll.u32 %s7515_s29, 4  ;;  %s90_s3 = int_to_ptr.vmem [resolvable:$true] %s89_s3  ;;  %s114_s30 = int_to_ptr.vmem [resolvable:$true] %s113_s30 }
  0x24   :  { %s7163_s23 = scalar_lea.hbm %s9084_s9, 512 }
  0x25   :  { %p7164_p8 = scmp.ne.s32.totalorder %s9084_s9, %s7163_s23  ;;  %p7167_p9 = scmp.lt.u32.totalorder %s7163_s23, %s9084_s9 }
  0x27   :  { %p7169_p10 = pnand %p7167_p9, %p7164_p8 }
  0x29   :  { %7172 = shalt.err (!%p7169_p10)
}
  0x2a   :  { %s7173_s7 = scalar_lea.vmem %s90_s3, 512  ;;  %p7178_p12 = scmp.lt.s32.totalorder %s90_s3, %s90_s3 }
  0x2b   :  { %p7174_p11 = scmp.ne.s32.totalorder %s90_s3, %s7173_s7  ;;  %p7179_p13 = scmp.lt.s32.totalorder %s7173_s7, %s7173_s7 }
  0x2d   :  { %p7180_p0 = por %p7179_p13, %p7178_p12 }
  0x2f   :  { %p7181_p1 = pnand %p7180_p0, %p7174_p11 }
  0x31   :  { %7184 = shalt.err (!%p7181_p1)
}
  0x32   :  { %95 = dma.hbm_to_vmem [thread:$0]  %s9084_s9, 512, %s90_s3, [#allocation9], %s7512_s6, %s7512_s6, %s7513_s25  }
  0x33   :  { %s7185_s27 = scalar_lea.hbm %s9086_s11, 512 }
  0x34   :  { %p7186_p2 = scmp.ne.s32.totalorder %s9086_s11, %s7185_s27  ;;  %p7189_p3 = scmp.lt.u32.totalorder %s7185_s27, %s9086_s11 }
  0x36   :  { %p7191_p4 = pnand %p7189_p3, %p7186_p2 }
  0x38   :  { %7194 = shalt.err (!%p7191_p4)
}
  0x39   :  { %s7195_s1 = scalar_lea.vmem %s114_s30, 512  ;;  %p7200_p6 = scmp.lt.s32.totalorder %s114_s30, %s114_s30 }
  0x3a   :  { %p7196_p5 = scmp.ne.s32.totalorder %s114_s30, %s7195_s1  ;;  %p7201_p7 = scmp.lt.s32.totalorder %s7195_s1, %s7195_s1 }
  0x3c   :  { %p7202_p8 = por %p7201_p7, %p7200_p6 }
  0x3e   :  { %p7203_p9 = pnand %p7202_p8, %p7196_p5 }
  0x40   :  { %7206 = shalt.err (!%p7203_p9)
}
  0x41   :  { %119 = dma.hbm_to_vmem [thread:$0]  %s9086_s11, 512, %s114_s30, [#allocation12], %s7512_s6, %s7512_s6, %s7513_s25  }
  0x42   :  { %s7516_s5 = smov [#allocation14]   ;;  %s7517_s7 = smov [#allocation17]  }
  0x43   :  { %s137_s24 = sshll.u32 %s7516_s5, 4  ;;  %s161_s28 = sshll.u32 %s7517_s7, 4  ;;  %s138_s24 = int_to_ptr.vmem [resolvable:$true] %s137_s24  ;;  %s162_s28 = int_to_ptr.vmem [resolvable:$true] %s161_s28 }
  0x44   :  { %s7207_s22 = scalar_lea.hbm %s9088_s13, 512 }
  0x45   :  { %p7208_p10 = scmp.ne.s32.totalorder %s9088_s13, %s7207_s22  ;;  %p7211_p11 = scmp.lt.u32.totalorder %s7207_s22, %s9088_s13 }
  0x47   :  { %p7213_p12 = pnand %p7211_p11, %p7208_p10 }
  0x49   :  { %7216 = shalt.err (!%p7213_p12)
}
  0x4a   :  { %s7217_s11 = scalar_lea.vmem %s138_s24, 512  ;;  %p7222_p0 = scmp.lt.s32.totalorder %s138_s24, %s138_s24 }
  0x4b   :  { %p7218_p13 = scmp.ne.s32.totalorder %s138_s24, %s7217_s11  ;;  %p7223_p1 = scmp.lt.s32.totalorder %s7217_s11, %s7217_s11 }
  0x4d   :  { %p7224_p2 = por %p7223_p1, %p7222_p0 }
  0x4f   :  { %p7225_p3 = pnand %p7224_p2, %p7218_p13 }
  0x51   :  { %7228 = shalt.err (!%p7225_p3)
}
  0x52   :  { %143 = dma.hbm_to_vmem [thread:$0]  %s9088_s13, 512, %s138_s24, [#allocation15], %s7512_s6, %s7512_s6, %s7513_s25  }
  0x53   :  { %s7229_s3 = scalar_lea.hbm %s9090_s15, 512 }
  0x54   :  { %p7230_p4 = scmp.ne.s32.totalorder %s9090_s15, %s7229_s3  ;;  %p7233_p5 = scmp.lt.u32.totalorder %s7229_s3, %s9090_s15 }
  0x56   :  { %p7235_p6 = pnand %p7233_p5, %p7230_p4 }
  0x58   :  { %7238 = shalt.err (!%p7235_p6)
}
  0x59   :  { %s7239_s22 = scalar_lea.vmem %s162_s28, 512  ;;  %p7244_p8 = scmp.lt.s32.totalorder %s162_s28, %s162_s28 }
  0x5a   :  { %p7240_p7 = scmp.ne.s32.totalorder %s162_s28, %s7239_s22  ;;  %p7245_p9 = scmp.lt.s32.totalorder %s7239_s22, %s7239_s22 }
  0x5c   :  { %p7246_p10 = por %p7245_p9, %p7244_p8 }
  0x5e   :  { %p7247_p11 = pnand %p7246_p10, %p7240_p7 }
  0x60   :  { %7250 = shalt.err (!%p7247_p11)
}
  0x61   :  { %167 = dma.hbm_to_vmem [thread:$0]  %s9090_s15, 512, %s162_s28, [#allocation18], %s7512_s6, %s7512_s6, %s7513_s25  }
  0x62   :  { %s7518_s27 = smov [#allocation20]   ;;  %s7251_s11 = scalar_lea.hbm %s9093_s18, 512 }
  0x63   :  { %s187_s29 = sshll.u32 %s7518_s27, 4  ;;  %p7252_p12 = scmp.ne.s32.totalorder %s9093_s18, %s7251_s11  ;;  %s188_s29 = int_to_ptr.vmem [resolvable:$true] %s187_s29 }
  0x64   :  { %p7255_p13 = scmp.lt.u32.totalorder %s7251_s11, %s9093_s18 }
  0x66   :  { %p7257_p0 = pnand %p7255_p13, %p7252_p12 }
  0x68   :  { %7260 = shalt.err (!%p7257_p0)
}
  0x69   :  { %s7261_s3 = scalar_lea.vmem %s188_s29, 512  ;;  %p7266_p2 = scmp.lt.s32.totalorder %s188_s29, %s188_s29 }
  0x6a   :  { %p7262_p1 = scmp.ne.s32.totalorder %s188_s29, %s7261_s3  ;;  %p7267_p3 = scmp.lt.s32.totalorder %s7261_s3, %s7261_s3 }
  0x6c   :  { %p7268_p4 = por %p7267_p3, %p7266_p2 }
  0x6e   :  { %p7269_p5 = pnand %p7268_p4, %p7262_p1 }
  0x70   :  { %7272 = shalt.err (!%p7269_p5)
}
  0x71   :  { %s7519_s15 = smov 256   ;;  %s7520_s25 = smov 16  }
  0x72   :  { %193 = dma.hbm_to_vmem [thread:$0]  %s9093_s18, 512, %s188_s29, [#allocation21], %s7519_s15, %s7519_s15, %s7520_s25  }
  0x73   :  { %s7521_s7 = smov [#allocation23]   ;;  %s7522_s2 = smov [#allocation2]  }
  0x74   :  { %s211_s26 = sshll.u32 %s7521_s7, 4  ;;  %s53_s22 = sshll.u32 %s7522_s2, 4  ;;  %s212_s26 = int_to_ptr.vmem [resolvable:$true] %s211_s26  ;;  %s54_s22 = int_to_ptr.vmem [resolvable:$true] %s53_s22 }
  0x75   :  { %s7273_s27 = scalar_lea.hbm %s9095_s20, 32 }
  0x76   :  { %p7274_p6 = scmp.ne.s32.totalorder %s9095_s20, %s7273_s27  ;;  %p7277_p7 = scmp.lt.u32.totalorder %s7273_s27, %s9095_s20 }
  0x78   :  { %p7279_p8 = pnand %p7277_p7, %p7274_p6 }
  0x7a   :  { %7282 = shalt.err (!%p7279_p8)
}
  0x7b   :  { %s7283_s18 = scalar_lea.vmem %s212_s26, 32  ;;  %p7288_p10 = scmp.lt.s32.totalorder %s212_s26, %s212_s26 }
  0x7c   :  { %p7284_p9 = scmp.ne.s32.totalorder %s212_s26, %s7283_s18  ;;  %p7289_p11 = scmp.lt.s32.totalorder %s7283_s18, %s7283_s18 }
  0x7e   :  { %p7290_p12 = por %p7289_p11, %p7288_p10 }
  0x80   :  { %p7291_p13 = pnand %p7290_p12, %p7284_p9 }
  0x82   :  { %7294 = shalt.err (!%p7291_p13)
}
  0x83   :  { %s7523_s29 = smov 1   ;;  %s9113_s15 = sld [smem:[#allocation42_spill]] }
  0x84   :  { %217 = dma.hbm_to_vmem [thread:$0]  %s9095_s20, 32, %s212_s26, [#allocation24], %s7520_s25, %s7520_s25, %s7523_s29  }
  0x89   :  { %s7295_s28 = scalar_lea.hbm %s9113_s15, 192 }
  0x8a   :  { %p7296_p0 = scmp.ne.s32.totalorder %s9113_s15, %s7295_s28  ;;  %p7299_p1 = scmp.lt.u32.totalorder %s7295_s28, %s9113_s15 }
  0x8c   :  { %p7301_p2 = pnand %p7299_p1, %p7296_p0 }
  0x8e   :  { %7304 = shalt.err (!%p7301_p2)
}
  0x8f   :  { %s7305_s24 = scalar_lea.vmem %s54_s22, 192  ;;  %p7310_p4 = scmp.lt.s32.totalorder %s54_s22, %s54_s22 }
  0x90   :  { %p7306_p3 = scmp.ne.s32.totalorder %s54_s22, %s7305_s24  ;;  %p7311_p5 = scmp.lt.s32.totalorder %s7305_s24, %s7305_s24 }
  0x92   :  { %p7312_p6 = por %p7311_p5, %p7310_p4 }
  0x94   :  { %p7313_p7 = pnand %p7312_p6, %p7306_p3 }
  0x96   :  { %7316 = shalt.err (!%p7313_p7)
}
  0x97   :  { %s7524_s20 = smov 32   ;;  %s7525_s26 = smov 2  }
  0x98   :  { %59 = dma.hbm_to_vmem [thread:$0]  %s9113_s15, 192, %s54_s22, [#allocation3], %s7524_s20, %s7524_s20, %s7525_s26  }
  0x99   :  { %s7526_s0 = smov [#allocation7]   ;;  %s7527_s30 = smov [#allocation10]  }
  0x9a   :  { %s77_s11 = sshll.u32 %s7526_s0, 4  ;;  %s101_s18 = sshll.u32 %s7527_s30, 4  ;;  %s78_s11 = int_to_ptr.vmem [resolvable:$true] %s77_s11  ;;  %s102_s18 = int_to_ptr.vmem [resolvable:$true] %s101_s18 }
  0x9b   :  { %s7317_s9 = scalar_lea.hbm %s9083_s8, 32 }
  0x9c   :  { %p7318_p8 = scmp.ne.s32.totalorder %s9083_s8, %s7317_s9  ;;  %p7321_p9 = scmp.lt.u32.totalorder %s7317_s9, %s9083_s8 }
  0x9e   :  { %p7323_p10 = pnand %p7321_p9, %p7318_p8 }
  0xa0   :  { %7326 = shalt.err (!%p7323_p10)
}
  0xa1   :  { %s7327_s22 = scalar_lea.vmem %s78_s11, 32  ;;  %p7332_p12 = scmp.lt.s32.totalorder %s78_s11, %s78_s11 }
  0xa2   :  { %p7328_p11 = scmp.ne.s32.totalorder %s78_s11, %s7327_s22  ;;  %p7333_p13 = scmp.lt.s32.totalorder %s7327_s22, %s7327_s22 }
  0xa4   :  { %p7334_p0 = por %p7333_p13, %p7332_p12 }
  0xa6   :  { %p7335_p1 = pnand %p7334_p0, %p7328_p11 }
  0xa8   :  { %7338 = shalt.err (!%p7335_p1)
}
  0xa9   :  { %83 = dma.hbm_to_vmem [thread:$0]  %s9083_s8, 32, %s78_s11, [#allocation6], %s7520_s25, %s7520_s25, %s7523_s29  }
  0xaa   :  { %s7339_s20 = scalar_lea.hbm %s9085_s10, 32 }
  0xab   :  { %p7340_p2 = scmp.ne.s32.totalorder %s9085_s10, %s7339_s20  ;;  %p7343_p3 = scmp.lt.u32.totalorder %s7339_s20, %s9085_s10 }
  0xad   :  { %p7345_p4 = pnand %p7343_p3, %p7340_p2 }
  0xaf   :  { %7348 = shalt.err (!%p7345_p4)
}
  0xb0   :  { %s7349_s30 = scalar_lea.vmem %s102_s18, 32  ;;  %p7354_p6 = scmp.lt.s32.totalorder %s102_s18, %s102_s18 }
  0xb1   :  { %p7350_p5 = scmp.ne.s32.totalorder %s102_s18, %s7349_s30  ;;  %p7355_p7 = scmp.lt.s32.totalorder %s7349_s30, %s7349_s30 }
  0xb3   :  { %p7356_p8 = por %p7355_p7, %p7354_p6 }
  0xb5   :  { %p7357_p9 = pnand %p7356_p8, %p7350_p5 }
  0xb7   :  { %7360 = shalt.err (!%p7357_p9)
}
  0xb8   :  { %107 = dma.hbm_to_vmem [thread:$0]  %s9085_s10, 32, %s102_s18, [#allocation9], %s7520_s25, %s7520_s25, %s7523_s29  }
  0xb9   :  { %s7528_s23 = smov [#allocation13]   ;;  %s7529_s9 = smov [#allocation16]  }
  0xba   :  { %s125_s1 = sshll.u32 %s7528_s23, 4  ;;  %s149_s3 = sshll.u32 %s7529_s9, 4  ;;  %s126_s1 = int_to_ptr.vmem [resolvable:$true] %s125_s1  ;;  %s150_s3 = int_to_ptr.vmem [resolvable:$true] %s149_s3 }
  0xbb   :  { %s7361_s7 = scalar_lea.hbm %s9087_s12, 32 }
  0xbc   :  { %p7362_p10 = scmp.ne.s32.totalorder %s9087_s12, %s7361_s7  ;;  %p7365_p11 = scmp.lt.u32.totalorder %s7361_s7, %s9087_s12 }
  0xbe   :  { %p7367_p12 = pnand %p7365_p11, %p7362_p10 }
  0xc0   :  { %7370 = shalt.err (!%p7367_p12)
}
  0xc1   :  { %s7371_s10 = scalar_lea.vmem %s126_s1, 32  ;;  %p7376_p0 = scmp.lt.s32.totalorder %s126_s1, %s126_s1 }
  0xc2   :  { %p7372_p13 = scmp.ne.s32.totalorder %s126_s1, %s7371_s10  ;;  %p7377_p1 = scmp.lt.s32.totalorder %s7371_s10, %s7371_s10 }
  0xc4   :  { %p7378_p2 = por %p7377_p1, %p7376_p0 }
  0xc6   :  { %p7379_p3 = pnand %p7378_p2, %p7372_p13 }
  0xc8   :  { %7382 = shalt.err (!%p7379_p3)
}
  0xc9   :  { %131 = dma.hbm_to_vmem [thread:$0]  %s9087_s12, 32, %s126_s1, [#allocation12], %s7520_s25, %s7520_s25, %s7523_s29  }
  0xca   :  { %s7383_s27 = scalar_lea.hbm %s9089_s14, 32 }
  0xcb   :  { %p7384_p4 = scmp.ne.s32.totalorder %s9089_s14, %s7383_s27  ;;  %p7387_p5 = scmp.lt.u32.totalorder %s7383_s27, %s9089_s14 }
  0xcd   :  { %p7389_p6 = pnand %p7387_p5, %p7384_p4 }
  0xcf   :  { %7392 = shalt.err (!%p7389_p6)
}
  0xd0   :  { %s7393_s11 = scalar_lea.vmem %s150_s3, 32  ;;  %p7398_p8 = scmp.lt.s32.totalorder %s150_s3, %s150_s3 }
  0xd1   :  { %p7394_p7 = scmp.ne.s32.totalorder %s150_s3, %s7393_s11  ;;  %p7399_p9 = scmp.lt.s32.totalorder %s7393_s11, %s7393_s11 }
  0xd3   :  { %p7400_p10 = por %p7399_p9, %p7398_p8 }
  0xd5   :  { %p7401_p11 = pnand %p7400_p10, %p7394_p7 }
  0xd7   :  { %7404 = shalt.err (!%p7401_p11)
}
  0xd8   :  { %155 = dma.hbm_to_vmem [thread:$0]  %s9089_s14, 32, %s150_s3, [#allocation15], %s7520_s25, %s7520_s25, %s7523_s29  }
  0xd9   :  { %s7530_s1 = smov [#allocation19]   ;;  %s7531_s28 = smov [#allocation22]  }
  0xda   :  { %s173_s9 = sshll.u32 %s7530_s1, 4  ;;  %s199_s5 = sshll.u32 %s7531_s28, 4  ;;  %s174_s9 = int_to_ptr.vmem [resolvable:$true] %s173_s9  ;;  %s200_s5 = int_to_ptr.vmem [resolvable:$true] %s199_s5 }
  0xdb   :  { %s7405_s15 = scalar_lea.hbm %s9091_s16, 32 }
  0xdc   :  { %p7406_p12 = scmp.ne.s32.totalorder %s9091_s16, %s7405_s15  ;;  %p7409_p13 = scmp.lt.u32.totalorder %s7405_s15, %s9091_s16 }
  0xde   :  { %p7411_p0 = pnand %p7409_p13, %p7406_p12 }
  0xe0   :  { %7414 = shalt.err (!%p7411_p0)
}
  0xe1   :  { %s7415_s14 = scalar_lea.vmem %s174_s9, 32  ;;  %p7420_p2 = scmp.lt.s32.totalorder %s174_s9, %s174_s9 }
  0xe2   :  { %p7416_p1 = scmp.ne.s32.totalorder %s174_s9, %s7415_s14  ;;  %p7421_p3 = scmp.lt.s32.totalorder %s7415_s14, %s7415_s14 }
  0xe4   :  { %p7422_p4 = por %p7421_p3, %p7420_p2 }
  0xe6   :  { %p7423_p5 = pnand %p7422_p4, %p7416_p1 }
  0xe8   :  { %7426 = shalt.err (!%p7423_p5)
}
  0xe9   :  { %179 = dma.hbm_to_vmem [thread:$0]  %s9091_s16, 32, %s174_s9, [#allocation18], %s7520_s25, %s7520_s25, %s7523_s29  }
  0xea   :  { %s7427_s27 = scalar_lea.hbm %s9094_s19, 8192 }
  0xeb   :  { %p7428_p6 = scmp.ne.s32.totalorder %s9094_s19, %s7427_s27  ;;  %p7431_p7 = scmp.lt.u32.totalorder %s7427_s27, %s9094_s19 }
  0xed   :  { %p7433_p8 = pnand %p7431_p7, %p7428_p6 }
  0xef   :  { %7436 = shalt.err (!%p7433_p8)
}
  0xf0   :  { %s7437_s11 = scalar_lea.vmem %s200_s5, 8192  ;;  %p7442_p10 = scmp.lt.s32.totalorder %s200_s5, %s200_s5 }
  0xf1   :  { %p7438_p9 = scmp.ne.s32.totalorder %s200_s5, %s7437_s11  ;;  %p7443_p11 = scmp.lt.s32.totalorder %s7437_s11, %s7437_s11 }
  0xf3   :  { %p7444_p12 = por %p7443_p11, %p7442_p10 }
  0xf5   :  { %p7445_p13 = pnand %p7444_p12, %p7438_p9 }
  0xf7   :  { %7448 = shalt.err (!%p7445_p13)
}
  0xf8   :  { %s7532_s16 = smov 1024   ;;  %s7533_s23 = smov [#allocation25]  }
  0xf9   :  { %205 = dma.hbm_to_vmem [thread:$0]  %s9094_s19, 8192, %s200_s5, [#allocation21], %s7532_s16, %s7532_s16, %s7512_s6  }
  0xfa   :  { %s224_s1 = sshll.u32 %s7533_s23, 4  ;;  %s7449_s7 = scalar_lea.hbm %s9096_s21, 32  ;;  %s225_s1 = int_to_ptr.vmem [resolvable:$true] %s224_s1 }
  0xfb   :  { %p7450_p0 = scmp.ne.s32.totalorder %s9096_s21, %s7449_s7  ;;  %p7453_p1 = scmp.lt.u32.totalorder %s7449_s7, %s9096_s21 }
  0xfd   :  { %p7455_p2 = pnand %p7453_p1, %p7450_p0 }
  0xff   :  { %7458 = shalt.err (!%p7455_p2)
}
 0x100   :  { %s7459_s10 = scalar_lea.vmem %s225_s1, 32  ;;  %p7464_p4 = scmp.lt.s32.totalorder %s225_s1, %s225_s1 }
 0x101   :  { %p7460_p3 = scmp.ne.s32.totalorder %s225_s1, %s7459_s10  ;;  %p7465_p5 = scmp.lt.s32.totalorder %s7459_s10, %s7459_s10 }
 0x103   :  { %p7466_p6 = por %p7465_p5, %p7464_p4 }
 0x105   :  { %p7467_p7 = pnand %p7466_p6, %p7460_p3 }
 0x107   :  { %7470 = shalt.err (!%p7467_p7)
}
 0x108   :  { %227 = dma.hbm_to_vmem [thread:$0]  %s9096_s21, 32, %s225_s1, [#allocation24]  }
 0x109   :  { %7493 = dma.done.wait [#allocation3], 192  }
 0x10a   :  { %7494 = vsyncadd [#allocation3], 4294967104 }
 0x10b   :  { %7495 = dma.done.wait [#allocation6], 544  }
 0x10c   :  { %7496 = vsyncadd [#allocation6], 4294966752 }
 0x10d   :  { %7497 = dma.done.wait [#allocation9], 544  }
 0x10e   :  { %7498 = vsyncadd [#allocation9], 4294966752 }
 0x10f   :  { %7499 = dma.done.wait [#allocation12], 544  }
 0x110   :  { %7500 = vsyncadd [#allocation12], 4294966752 }
 0x111   :  { %7501 = dma.done.wait [#allocation15], 544  }
 0x112   :  { %7502 = vsyncadd [#allocation15], 4294966752 }
 0x113   :  { %7503 = dma.done.wait [#allocation18], 544  }
 0x114   :  { %7504 = vsyncadd [#allocation18], 4294966752 }
 0x115   :  { %7505 = dma.done.wait [#allocation21], 8704  }
 0x116   :  { %7506 = vsyncadd [#allocation21], 4294958592 }
 0x117   :  { %7507 = dma.done.wait [#allocation24], 64  }
 0x118   :  { %7508 = vsyncadd [#allocation24], 4294967232  ;;  %v7534_v0 = vmov 0   ;;  %s9114_s14 = sld [smem:[#allocation36_spill]]  ;;  %s9115_s20 = sld [smem:[#allocation37_spill]]  ;;  %v7535_v10 = vmov 0.0   ;;  %v276_v16 = vlaneseq }
 0x119   :  { %6872 = vset.pattern.permute.xlu0 %v7534_v0  ;;  %6512 = vmatprep.subr.bf16.mxu1 %v7535_v10  ;;  %vm298_vm0 = vcmask 523264   ;;  %s9116_s13 = sld [smem:[#allocation38_spill]]  ;;  %vm395_vm3 = vcmask 261120   ;;  %v6933_v41 = vld [vmem:[#allocation5] sm:$0xff]   ;;  %vm7536_vm4 = vmmov 0   ;;  %v6934_v42 = vld [vmem:[#allocation5 + $0x8] sm:$0xff]  }
 0x11a   :  { %v277_v17 = vand.u32 127, %v276_v16  ;;  %6516 = vmatprep.mubr.msk.bf16.mxu1 %vm7536_vm4, %v7535_v10  ;;  %6513 = vmatpush3.bf16.msra.mxu1 %v6933_v41  ;;  %v7937_v55 = vshrl.u32 %v276_v16, 7  ;;  %v392_v61 = vld [vmem:[#allocation2] sm:$0x3]  ;;  %s7537_s10 = smov 112   ;;  %s7538_s19 = smov 96  }
 0x11b   :  { %6514 = vmatprep.subr.bf16.mxu1 %v7535_v10  ;;  %s7539_s5 = smov 88   ;;  %s7540_s21 = smov 120   ;;  %vm521_vm9 = vcmask 64512   ;;  %vm573_vm10 = vcmask 130048   ;;  %vm1047_vm11 = vcmask 195584  }
 0x11c   :  { %v7940_v60 = vsub.s32 0, %v7937_v55  ;;  %v7944_v63 = vsub.s32 1, %v7937_v55  ;;  %s7541_s18 = smov 80   ;;  %s7543_s3 = smov 104  }
 0x11d   :  { %s9117_s26 = sld [smem:[#allocation40_spill]]  ;;  %s7544_s0 = smov 56  }
 0x11e   :  { %v274_v1 = vld [vmem:[%s9114_s14] sm:$0xff]  ;;  %v291_v3 = vld [vmem:[%s9115_s20 + $0x8] sm:$0xff]  ;;  %v292_v4 = vld [vmem:[%s9115_s20 + $0x10] sm:$0xff]  ;;  %6515 = vmatpush3.bf16.msra.mxu1 %v6934_v42  ;;  %v420_v62 = vrot.slane %v392_v61, %v7940_v60  ;;  %s7545_s30 = smov 48   ;;  %s7546_s8 = smov 40  }
 0x11f   :  { %v290_v2 = vld [vmem:[%s9115_s20] sm:$0xff]  ;;  %279 = vperm.xlu0 %6872, %v274_v1   ;;  %v293_v5 = vld [vmem:[%s9115_s20 + $0x18] sm:$0xff]  ;;  %v275_v6 = vld [vmem:[%s9114_s14 + $0x8] sm:$0xff]  ;;  %6520 = vmatprep.subr.bf16.mxu1 %v7535_v10  ;;  %s7542_s14 = smov 72   ;;  %s7547_s11 = smov 8  }
 0x120   :  { %v6816_v7 = vpack.c.bf16 %v291_v3, %v290_v2  ;;  %v6820_v8 = vpack.c.bf16 %v293_v5, %v292_v4  ;;  %v294_v9 = vld [vmem:[%s9115_s20 + $0x20] sm:$0xff]  ;;  %v295_v11 = vld [vmem:[%s9115_s20 + $0x28] sm:$0xff]  ;;  %v296_v12 = vld [vmem:[%s9115_s20 + $0x30] sm:$0xff]  ;;  %v446_v3 = vrot.slane %v392_v61, %v7944_v63  ;;  %s7548_s16 = smov 24   ;;  %s9118_s23 = sld [smem:[#allocation39_spill]] }
 0x121   :  { %v297_v13 = vld [vmem:[%s9115_s20 + $0x38] sm:$0xff]  ;;  %v6824_v14 = vpack.c.bf16 %v295_v11, %v294_v9  ;;  %v380_v23 = vld [vmem:[%s9116_s13] sm:$0xff]  ;;  %s9119_s2 = sld [smem:[#allocation41_spill]] }
 0x122   :  { %6817 = vmatprep.subr.bf16.mxu0 %v6816_v7  ;;  %v6828_v15 = vpack.c.bf16 %v297_v13, %v296_v12  ;;  %v6119_v12 = vld [vmem:[#allocation7] ss:$0 sm:$0xff] }
 0x123   :  { %282 = vperm.xlu0 %6872, %v275_v6   ;;  %6819 = vmatpush3.bf16.msra.mxu0 %v6816_v7 }
 0x124   :  { %6821 = vmatprep.subr.bf16.mxu0 %v6820_v8 }
 0x127   :  { %6823 = vmatpush3.bf16.msra.mxu0 %v6820_v8 }
 0x128   :  { %6825 = vmatprep.subr.bf16.mxu0 %v6824_v14 }
 0x12b   :  { %6827 = vmatpush3.bf16.msra.mxu0 %v6824_v14 }
 0x12c   :  { %6829 = vmatprep.subr.bf16.mxu0 %v6828_v15 }
 0x12f   :  { %6831 = vmatpush3.bf16.msra.mxu0 %v6828_v15 }
 0x130   :  { %6526 = vmatprep.subr.bf16.mxu0 %v7535_v10 }
 0x19e   :  { %v280_v18 = vpop.permute.xlu0 %279 }
 0x19f   :  { %vm284_vm1 = vcmp.eq.s32.totalorder %v277_v17, %v280_v18 }
 0x1a0   :  { %v6115_v19 = vsel %vm284_vm1, 1.0, %v7535_v10  ;;  %vm1410_vm1 = vcmask 1041408  }
 0x1a1   :  { %6509 = vmatprep.mubr.msk.f32.mxu0 %vm298_vm0, %v6115_v19 }
 0x1a2   :  { %v283_v20 = vpop.permute.xlu0 %282 }
 0x1a3   :  { %vm285_vm2 = vcmp.eq.s32.totalorder %v277_v17, %v283_v20 }
 0x1a4   :  { %v6116_v21 = vsel %vm285_vm2, 1.0, %v7535_v10 }
 0x1a5   :  { %6510 = vmatmul.mubr.msk.f32.vlgmr.msra.gmra.mrb[0].mxu0 %vm298_vm0, %v6116_v21  ;;  %vm1376_vm0 = vcmask 162816  }
 0x1a6   :  { %6528 = vmatprep.mubr.msk.bf16.mxu0 %vm7536_vm4, %v7535_v10 }
 0x278   :  { %v6511_v22 = vpop.f32.mrb[0].mxu0 }
 0x279   :  { %v371_v24 = vpop.f32.mrb[1].mxu0  ;;  %v382_v25 = vmul.f32 5.656854, %v6511_v22 }
 0x27a   :  { %v381_v26 = vmul.f32 5.656854, %v371_v24 }
 0x27b   :  { %v7921_v28 = vadd.f32 %v382_v25, %v380_v23 }
 0x27c   :  { %v7919_v27 = vadd.f32 %v381_v26, %v380_v23 }
 0x27d   :  { %v399_v30 = vsel %vm395_vm3, %v7921_v28, 0.0 }
 0x27e   :  { %v396_v29 = vsel %vm395_vm3, %v7919_v27, 0.0 }
 0x27f   :  { %397 = vadd.xlane.f32.xlu1 %v396_v29 }
 0x283   :  { %400 = vadd.xlane.f32.xlu1 %v399_v30 }
 0x30c   :  { %v398_v31 = vpop.xlane.xlu1 %397 }
 0x30d   :  { %v403_v32 = vmul.f32 0.03125, %v398_v31 }
 0x30f   :  { %v405_v33 = vsub.f32 %v7919_v27, %v403_v32 }
 0x310   :  { %v401_v34 = vpop.xlane.xlu1 %400 }
 0x311   :  { %v404_v35 = vmul.f32 0.03125, %v401_v34  ;;  %v407_v36 = vmul.f32 %v405_v33, %v405_v33  ;;  %v421_v2 = vmul.f32 %v420_v62, %v405_v33  ;;  %v388_v34 = vld [vmem:[%s9117_s26] sm:$0xff] }
 0x313   :  { %v406_v37 = vsub.f32 %v7921_v28, %v404_v35  ;;  %v409_v38 = vsel %vm395_vm3, %v407_v36, 0.0 }
 0x314   :  { %410 = vadd.xlane.f32.xlu0 %v409_v38  ;;  %v389_v38 = vld [vmem:[%s9117_s26 + $0x8] sm:$0xff] }
 0x315   :  { %v408_v39 = vmul.f32 %v406_v37, %v406_v37  ;;  %v422_v4 = vmul.f32 %v420_v62, %v406_v37 }
 0x317   :  { %v412_v40 = vsel %vm395_vm3, %v408_v39, 0.0 }
 0x318   :  { %413 = vadd.xlane.f32.xlu1 %v412_v40 }
 0x3a1   :  { %v411_v43 = vpop.xlane.xlu0 %410 }
 0x3a2   :  { %v415_v44 = vmul.f32 0.032258064, %v411_v43 }
 0x3a4   :  { %6953 = vrsqrt.f32 %v415_v44  ;;  %vm425_vm5 = vcmp.eq.f32.partialorder %v415_v44, inf  ;;  %v428_v49 = vand.u32 2147483648, %v415_v44  ;;  %vm427_vm6 = vcmp.eq.f32.partialorder %v415_v44, 0.0 }
 0x3a5   :  { %v414_v45 = vpop.xlane.xlu1 %413 }
 0x3a6   :  { %v416_v46 = vmul.f32 0.032258064, %v414_v45 }
 0x3a8   :  { %6955 = vrsqrt.f32 %v416_v46  ;;  %vm432_vm7 = vcmp.eq.f32.partialorder %v416_v46, inf  ;;  %v435_v56 = vand.u32 2147483648, %v416_v46  ;;  %vm434_vm8 = vcmp.eq.f32.partialorder %v416_v46, 0.0 }
 0x3ae   :  { %v6954_v47 = vpop.eup %6953 }
 0x3af   :  { %v424_v48 = vmul.f32 %v6954_v47, %v415_v44 }
 0x3b1   :  { %v426_v50 = vsel %vm425_vm5, %v415_v44, %v424_v48 }
 0x3b2   :  { %v6956_v51 = vpop.eup %6955  ;;  %v429_v52 = vsel %vm427_vm6, %v428_v49, %v426_v50 }
 0x3b3   :  { %v437_v53 = vadd.f32 1e-06, %v429_v52  ;;  %v431_v54 = vmul.f32 %v6956_v51, %v416_v46 }
 0x3b5   :  { %v433_v57 = vsel %vm432_vm7, %v416_v46, %v431_v54  ;;  %6957 = vrcp.f32 %v437_v53 }
 0x3b6   :  { %v436_v58 = vsel %vm434_vm8, %v435_v56, %v433_v57 }
 0x3b7   :  { %v438_v59 = vadd.f32 1e-06, %v436_v58 }
 0x3b9   :  { %6959 = vrcp.f32 %v438_v59 }
 0x3bf   :  { %v6958_v1 = vpop.eup %6957 }
 0x3c0   :  { %v440_v5 = vmul.f32 %v6958_v1, %v421_v2 }
 0x3c2   :  { %v447_v8 = vadd.f32 %v446_v3, %v440_v5 }
 0x3c3   :  { %v6960_v6 = vpop.eup %6959 }
 0x3c4   :  { %v442_v7 = vmul.f32 %v6960_v6, %v422_v4 }
 0x3c6   :  { %v448_v9 = vadd.f32 %v446_v3, %v442_v7 }
 0x3c8   :  { %v449_v11 = vpack.c.bf16 %v448_v9, %v447_v8 }
 0x3ca   :  { %6517 = vmatmul.mubr.msk.bf16.vlgmr.msra.gmra.mrb[0].mxu1 %vm395_vm3, %v449_v11 }
 0x3cb   :  { %6522 = vmatprep.mubr.msk.bf16.mxu1 %vm7536_vm4, %v7535_v10 }
 0x49d   :  { %v510_v13 = vpop.f32.mrb[0].mxu1 }
 0x49e   :  { %v6518_v14 = vpop.f32.mrb[1].mxu1  ;;  %v511_v16 = vadd.f32 %v6119_v12, %v510_v13 }
 0x49f   :  { %v513_v15 = vpop.f32.mrb[2].mxu1 }
 0x4a0   :  { %v514_v17 = vadd.f32 %v6119_v12, %v513_v15  ;;  %v6519_v18 = vpop.f32.mrb[3].mxu1 }
 0x4a2   :  { %v7950_v19 = vpack.c.bf16 %v514_v17, %v511_v16 }
 0x4a4   :  { %769 = vrot.lane.b32.xlu0 %v7950_v19, %s7537_s10  ;;  %519 = vrot.lane.b32.xlu1 %v7950_v19, %s7538_s19 }
 0x4a8   :  { %646 = vrot.lane.b32.xlu1 %v7950_v19, %s7539_s5 }
 0x4ac   :  { %644 = vrot.lane.b32.xlu1 %v7950_v19, %s7540_s21 }
 0x4b0   :  { %771 = vrot.lane.b32.xlu1 %v7950_v19, %s7541_s18 }
 0x4b4   :  { %896 = vrot.lane.b32.xlu1 %v7950_v19, %s7542_s14 }
 0x4b8   :  { %894 = vrot.lane.b32.xlu1 %v7950_v19, %s7543_s3 }
 0x516   :  { %v520_v20 = vpop.permute.xlu1 %519  ;;  %v770_v30 = vpop.permute.xlu0 %769 }
 0x517   :  { %v526_v21 = vsel %vm521_vm9, %v520_v20, 0 }
 0x518   :  { %6521 = vmatpush3.bf16.xpose.msra.mxu1 %v526_v21 }
 0x519   :  { %6532 = vmatprep.subr.bf16.mxu1 %v7535_v10 }
 0x51a   :  { %v647_v22 = vpop.permute.xlu1 %646 }
 0x51b   :  { %v652_v24 = vsel %vm521_vm9, %v647_v22, 0 }
 0x51e   :  { %v645_v23 = vpop.permute.xlu1 %644 }
 0x51f   :  { %6523 = vmatmul.mubr.msk.bf16.vlgmr.msra.gmra.mrb[4].mxu1 %vm521_vm9, %v7950_v19 }
 0x520   :  { %6533 = vmatpush3.bf16.xpose.msra.mxu1 %v652_v24  ;;  %6534 = vmatprep.mubr.msk.bf16.mxu1 %vm7536_vm4, %v7535_v10 }
 0x521   :  { %6544 = vmatprep.subr.bf16.mxu1 %v7535_v10 }
 0x522   :  { %v772_v25 = vpop.permute.xlu1 %771 }
 0x523   :  { %v777_v26 = vsel %vm521_vm9, %v772_v25, 0 }
 0x526   :  { %v897_v29 = vpop.permute.xlu1 %896 }
 0x527   :  { %6535 = vmatmul.mubr.msk.bf16.vlgmr.msra.gmra.mrb[8].mxu1 %vm521_vm9, %v645_v23  ;;  %v902_v31 = vsel %vm521_vm9, %v897_v29, 0 }
 0x528   :  { %6545 = vmatpush3.bf16.xpose.msra.mxu1 %v777_v26  ;;  %6546 = vmatprep.mubr.msk.bf16.mxu1 %vm7536_vm4, %v7535_v10 }
 0x529   :  { %6556 = vmatprep.subr.bf16.mxu1 %v7535_v10 }
 0x52a   :  { %v895_v32 = vpop.permute.xlu1 %894 }
 0x52f   :  { %6547 = vmatmul.mubr.msk.bf16.vlgmr.msra.gmra.mrb[12].mxu1 %vm521_vm9, %v770_v30 }
 0x530   :  { %6557 = vmatpush3.bf16.xpose.msra.mxu1 %v902_v31  ;;  %6558 = vmatprep.mubr.msk.bf16.mxu1 %vm7536_vm4, %v7535_v10 }
 0x531   :  { %6568 = vmatprep.subr.bf16.mxu1 %v7535_v10 }
 0x537   :  { %6559 = vmatmul.mubr.msk.bf16.vlgmr.msra.gmra.mrb[16].mxu1 %vm521_vm9, %v895_v32 }
 0x538   :  { %6572 = vmatprep.mubr.msk.bf16.mxu1 %vm7536_vm4, %v7535_v10 }
 0x5f2   :  { %v562_v33 = vpop.f32.mrb[4].mxu1 }
 0x5f3   :  { %v569_v35 = vmul.f32 0.35355338, %v562_v33  ;;  %v6524_v36 = vpop.f32.mrb[5].mxu1 }
 0x5f4   :  { %v565_v37 = vpop.f32.mrb[6].mxu1 }
 0x5f5   :  { %v570_v39 = vmul.f32 0.35355338, %v565_v37  ;;  %v6525_v40 = vpop.f32.mrb[7].mxu1  ;;  %v571_v41 = vadd.f32 %v569_v35, %v388_v34 }
 0x5f7   :  { %v574_v42 = vsel %vm573_vm10, %v571_v41, -inf  ;;  %v572_v43 = vadd.f32 %v570_v39, %v389_v38 }
 0x5f8   :  { %575 = vmax.xlane.f32.xlu1 %v574_v42 }
 0x5f9   :  { %v577_v44 = vsel %vm573_vm10, %v572_v43, -inf }
 0x5fa   :  { %578 = vmax.xlane.f32.xlu0 %v577_v44  ;;  %v688_v45 = vpop.f32.mrb[8].mxu1 }
 0x5fb   :  { %v695_v46 = vmul.f32 0.35355338, %v688_v45  ;;  %v6536_v47 = vpop.f32.mrb[9].mxu1 }
 0x5fc   :  { %v691_v48 = vpop.f32.mrb[10].mxu1 }
 0x5fd   :  { %v696_v49 = vmul.f32 0.35355338, %v691_v48  ;;  %v6537_v50 = vpop.f32.mrb[11].mxu1  ;;  %v697_v51 = vadd.f32 %v695_v46, %v388_v34 }
 0x5ff   :  { %v699_v52 = vsel %vm573_vm10, %v697_v51, -inf  ;;  %v698_v53 = vadd.f32 %v696_v49, %v389_v38 }
 0x600   :  { %700 = vmax.xlane.f32.xlu1 %v699_v52 }
 0x601   :  { %v702_v58 = vsel %vm573_vm10, %v698_v53, -inf }
 0x602   :  { %v813_v54 = vpop.f32.mrb[12].mxu1 }
 0x603   :  { %v820_v56 = vmul.f32 0.35355338, %v813_v54  ;;  %v6548_v57 = vpop.f32.mrb[13].mxu1 }
 0x604   :  { %703 = vmax.xlane.f32.xlu1 %v702_v58  ;;  %v816_v59 = vpop.f32.mrb[14].mxu1 }
 0x605   :  { %v821_v61 = vmul.f32 0.35355338, %v816_v59  ;;  %v6549_v62 = vpop.f32.mrb[15].mxu1  ;;  %v822_v1 = vadd.f32 %v820_v56, %v388_v34 }
 0x607   :  { %v824_v2 = vsel %vm573_vm10, %v822_v1, -inf  ;;  %v823_v3 = vadd.f32 %v821_v61, %v389_v38 }
 0x608   :  { %825 = vmax.xlane.f32.xlu0 %v824_v2 }
 0x609   :  { %v827_v4 = vsel %vm573_vm10, %v823_v3, -inf }
 0x60a   :  { %828 = vmax.xlane.f32.xlu1 %v827_v4  ;;  %v938_v5 = vpop.f32.mrb[16].mxu1 }
 0x60b   :  { %v945_v6 = vmul.f32 0.35355338, %v938_v5  ;;  %v6560_v7 = vpop.f32.mrb[17].mxu1 }
 0x60c   :  { %v941_v8 = vpop.f32.mrb[18].mxu1 }
 0x60d   :  { %v946_v9 = vmul.f32 0.35355338, %v941_v8  ;;  %v6561_v11 = vpop.f32.mrb[19].mxu1  ;;  %v947_v12 = vadd.f32 %v945_v6, %v388_v34 }
 0x60f   :  { %v949_v13 = vsel %vm573_vm10, %v947_v12, -inf  ;;  %v948_v14 = vadd.f32 %v946_v9, %v389_v38 }
 0x610   :  { %950 = vmax.xlane.f32.xlu0 %v949_v13 }
 0x611   :  { %v952_v15 = vsel %vm573_vm10, %v948_v14, -inf }
 0x612   :  { %953 = vmax.xlane.f32.xlu1 %v952_v15 }
 0x685   :  { %v576_v16 = vpop.xlane.xlu1 %575 }
 0x686   :  { %v580_v17 = vsub.f32 %v571_v41, %v576_v16 }
 0x687   :  { %v579_v18 = vpop.xlane.xlu0 %578 }
 0x688   :  { %v582_v20 = vmul.f32 1.442695, %v580_v17  ;;  %v581_v21 = vsub.f32 %v572_v43, %v579_v18 }
 0x68a   :  { %6961 = vpow2.f32 %v582_v20  ;;  %v584_v22 = vmul.f32 1.442695, %v581_v21 }
 0x68c   :  { %6963 = vpow2.f32 %v584_v22 }
 0x68d   :  { %v701_v23 = vpop.xlane.xlu1 %700 }
 0x68e   :  { %v705_v24 = vsub.f32 %v697_v51, %v701_v23 }
 0x690   :  { %v707_v25 = vmul.f32 1.442695, %v705_v24 }
 0x691   :  { %v704_v34 = vpop.xlane.xlu1 %703 }
 0x692   :  { %6965 = vpow2.f32 %v707_v25  ;;  %v706_v35 = vsub.f32 %v698_v53, %v704_v34 }
 0x694   :  { %v6962_v26 = vpop.eup %6961  ;;  %v709_v38 = vmul.f32 1.442695, %v706_v35 }
 0x695   :  { %v586_v29 = vsel %vm573_vm10, %v6962_v26, 0.0  ;;  %v826_v37 = vpop.xlane.xlu0 %825 }
 0x696   :  { %v6964_v30 = vpop.eup %6963  ;;  %587 = vadd.xlane.f32.xlu0 %v586_v29  ;;  %v830_v41 = vsub.f32 %v822_v1, %v826_v37  ;;  %6967 = vpow2.f32 %v709_v38 }
 0x697   :  { %v589_v31 = vsel %vm573_vm10, %v6964_v30, 0.0  ;;  %v829_v36 = vpop.xlane.xlu1 %828 }
 0x698   :  { %590 = vadd.xlane.f32.xlu1 %v589_v31  ;;  %v831_v39 = vsub.f32 %v823_v3, %v829_v36  ;;  %v832_v45 = vmul.f32 1.442695, %v830_v41  ;;  %v6935_v41 = vld [vmem:[#allocation8] sm:$0xff]  }
 0x699   :  { %6569 = vmatpush3.bf16.msra.mxu1 %v6935_v41  ;;  %v6940_v41 = vld [vmem:[#allocation11 + $0x8] sm:$0xff]  }
 0x69a   :  { %v834_v43 = vmul.f32 1.442695, %v831_v39  ;;  %6570 = vmatprep.subr.bf16.mxu1 %v7535_v10 }
 0x69c   :  { %v8003_v32 = vpop.eup %6965  ;;  %6969 = vpow2.f32 %v834_v43 }
 0x69d   :  { %v711_v33 = vsel %vm573_vm10, %v8003_v32, 0.0  ;;  %v951_v42 = vpop.xlane.xlu0 %950  ;;  %6971 = vpow2.f32 %v832_v45 }
 0x69e   :  { %712 = vadd.xlane.f32.xlu0 %v711_v33  ;;  %v955_v46 = vsub.f32 %v947_v12, %v951_v42 }
 0x69f   :  { %v954_v40 = vpop.xlane.xlu1 %953 }
 0x6a0   :  { %v956_v44 = vsub.f32 %v948_v14, %v954_v40  ;;  %v957_v48 = vmul.f32 1.442695, %v955_v46  ;;  %v6968_v49 = vpop.eup %6967  ;;  %v6936_v46 = vld [vmem:[#allocation8 + $0x8] sm:$0xff]  }
 0x6a1   :  { %v714_v50 = vsel %vm573_vm10, %v6968_v49, 0.0  ;;  %6571 = vmatpush3.bf16.msra.mxu1 %v6936_v46 }
 0x6a2   :  { %v959_v47 = vmul.f32 1.442695, %v956_v44 }
 0x6a4   :  { %6973 = vpow2.f32 %v959_v47 }
 0x6a5   :  { %6975 = vpow2.f32 %v957_v48 }
 0x6a6   :  { %v6970_v51 = vpop.eup %6969 }
 0x6a7   :  { %v6972_v52 = vpop.eup %6971  ;;  %v839_v53 = vsel %vm573_vm10, %v6970_v51, 0.0 }
 0x6a8   :  { %v836_v56 = vsel %vm573_vm10, %v6972_v52, 0.0 }
 0x6a9   :  { %722 = vrot.lane.b32.xlu1 %v7950_v19, %s7544_s0 }
 0x6ae   :  { %v8013_v54 = vpop.eup %6973 }
 0x6af   :  { %v6976_v57 = vpop.eup %6975  ;;  %v964_v58 = vsel %vm573_vm10, %v8013_v54, 0.0 }
 0x6b0   :  { %v961_v59 = vsel %vm573_vm10, %v6976_v57, 0.0 }
 0x6b4   :  { %597 = vrot.lane.b32.xlu0 %v7950_v19, %s7512_s6 }
 0x6cd   :  { %715 = vadd.xlane.f32.xlu1 %v714_v50 }
 0x6d1   :  { %840 = vadd.xlane.f32.xlu1 %v839_v53 }
 0x6d3   :  { %837 = vadd.xlane.f32.xlu0 %v836_v56 }
 0x6d5   :  { %965 = vadd.xlane.f32.xlu1 %v964_v58 }
 0x6d7   :  { %962 = vadd.xlane.f32.xlu0 %v961_v59 }
 0x6e6   :  { %847 = vrot.lane.b32.xlu1 %v7950_v19, %s7545_s30 }
 0x6ed   :  { %972 = vrot.lane.b32.xlu0 %v7950_v19, %s7546_s8 }
 0x723   :  { %v588_v61 = vpop.xlane.xlu0 %587 }
 0x724   :  { %6977 = vrcp.f32 %v588_v61 }
 0x725   :  { %v591_v62 = vpop.xlane.xlu1 %590 }
 0x726   :  { %6979 = vrcp.f32 %v591_v62 }
 0x729   :  { %v723_v8 = vpop.permute.xlu1 %722 }
 0x72b   :  { %v713_v1 = vpop.xlane.xlu0 %712 }
 0x72c   :  { %6981 = vrcp.f32 %v713_v1 }
 0x72e   :  { %v6978_v2 = vpop.eup %6977 }
 0x72f   :  { %v598_v3 = vpop.permute.xlu0 %597  ;;  %v593_v5 = vmul.f32 %v6978_v2, %v6962_v26 }
 0x730   :  { %v6980_v4 = vpop.eup %6979  ;;  %6527 = vmatpush3.bf16.msra.mxu0 %v598_v3 }
 0x731   :  { %v595_v6 = vmul.f32 %v6980_v4, %v6964_v30  ;;  %6538 = vmatprep.subr.bf16.mxu0 %v7535_v10 }
 0x733   :  { %v596_v7 = vpack.c.bf16 %v595_v6, %v593_v5 }
 0x735   :  { %6529 = vmatmul.mubr.msk.bf16.vlgmr.msra.gmra.mrb[4].mxu0 %vm573_vm10, %v596_v7 }
 0x736   :  { %6539 = vmatpush3.bf16.msra.mxu0 %v723_v8  ;;  %6540 = vmatprep.mubr.msk.bf16.mxu0 %vm7536_vm4, %v7535_v10  ;;  %v6982_v12 = vpop.eup %6981 }
 0x737   :  { %6550 = vmatprep.subr.bf16.mxu0 %v7535_v10  ;;  %v718_v16 = vmul.f32 %v6982_v12, %v8003_v32 }
 0x75a   :  { %v716_v19 = vpop.xlane.xlu1 %715 }
 0x75b   :  { %6983 = vrcp.f32 %v716_v19 }
 0x75e   :  { %v841_v9 = vpop.xlane.xlu1 %840 }
 0x75f   :  { %6985 = vrcp.f32 %v841_v9 }
 0x760   :  { %v838_v11 = vpop.xlane.xlu0 %837 }
 0x761   :  { %6987 = vrcp.f32 %v838_v11  ;;  %v6131_v11 = vld [vmem:[#allocation10] ss:$0 sm:$0xff] }
 0x762   :  { %v966_v13 = vpop.xlane.xlu1 %965 }
 0x764   :  { %v963_v14 = vpop.xlane.xlu0 %962 }
 0x765   :  { %v6984_v15 = vpop.eup %6983  ;;  %6989 = vrcp.f32 %v963_v14 }
 0x766   :  { %v720_v17 = vmul.f32 %v6984_v15, %v6968_v49  ;;  %6991 = vrcp.f32 %v966_v13  ;;  %v848_v21 = vpop.permute.xlu1 %847 }
 0x768   :  { %v721_v18 = vpack.c.bf16 %v720_v17, %v718_v16  ;;  %v973_v29 = vpop.permute.xlu0 %972 }
 0x769   :  { %v6986_v20 = vpop.eup %6985 }
 0x76a   :  { %6541 = vmatmul.mubr.msk.bf16.vlgmr.msra.gmra.mrb[8].mxu0 %vm573_vm10, %v721_v18  ;;  %v845_v24 = vmul.f32 %v6986_v20, %v6970_v51 }
 0x76b   :  { %v6988_v22 = vpop.eup %6987  ;;  %6551 = vmatpush3.bf16.msra.mxu0 %v848_v21  ;;  %6552 = vmatprep.mubr.msk.bf16.mxu0 %vm7536_vm4, %v7535_v10 }
 0x76c   :  { %v843_v23 = vmul.f32 %v6988_v22, %v6972_v52  ;;  %6562 = vmatprep.subr.bf16.mxu0 %v7535_v10 }
 0x76e   :  { %v846_v25 = vpack.c.bf16 %v845_v24, %v843_v23 }
 0x76f   :  { %v6990_v26 = vpop.eup %6989 }
 0x770   :  { %v6992_v30 = vpop.eup %6991  ;;  %v968_v31 = vmul.f32 %v6990_v26, %v6976_v57 }
 0x771   :  { %v970_v32 = vmul.f32 %v6992_v30, %v8013_v54 }
 0x772   :  { %6553 = vmatmul.mubr.msk.bf16.vlgmr.msra.gmra.mrb[12].mxu0 %vm573_vm10, %v846_v25 }
 0x773   :  { %6563 = vmatpush3.bf16.msra.mxu0 %v973_v29  ;;  %6564 = vmatprep.mubr.msk.bf16.mxu0 %vm7536_vm4, %v7535_v10  ;;  %v971_v33 = vpack.c.bf16 %v970_v32, %v968_v31 }
 0x774   :  { %6576 = vmatprep.subr.bf16.mxu0 %v7535_v10 }
 0x77a   :  { %6565 = vmatmul.mubr.msk.bf16.vlgmr.msra.gmra.mrb[16].mxu0 %vm573_vm10, %v971_v33  ;;  %v6937_v33 = vld [vmem:[#allocation14] sm:$0xff]  }
 0x77b   :  { %6580 = vmatprep.mubr.msk.bf16.mxu0 %vm7536_vm4, %v7535_v10  ;;  %6584 = vmatprep.subr.bf16.mxu1 %v6937_v33 }
 0x808   :  { %v637_v34 = vpop.f32.mrb[4].mxu0 }
 0x809   :  { %v6530_v35 = vpop.f32.mrb[5].mxu0 }
 0x80a   :  { %v640_v36 = vpop.f32.mrb[6].mxu0  ;;  %v385_v35 = vld [vmem:[%s9118_s23] sm:$0xff] }
 0x80b   :  { %v6531_v37 = vpop.f32.mrb[7].mxu0 }
 0x83d   :  { %v762_v38 = vpop.f32.mrb[8].mxu0 }
 0x83e   :  { %v6542_v39 = vpop.f32.mrb[9].mxu0 }
 0x83f   :  { %v765_v40 = vpop.f32.mrb[10].mxu0 }
 0x840   :  { %v6873_v42 = vpack.i.bf16 %v765_v40, %v762_v38  ;;  %v6543_v43 = vpop.f32.mrb[11].mxu0  ;;  %v387_v38 = vld [vmem:[%s9118_s23 + $0x10] sm:$0xf] }
 0x841   :  { %v8077_v39 = vpack.c.bf16 %v387_v38, %v387_v38  ;;  %v6939_v40 = vld [vmem:[#allocation11] sm:$0xff]  }
 0x842   :  { %6874 = vrot.lane.b32.xlu1 %v6873_v42, %s7547_s11  ;;  %6577 = vmatpush3.bf16.msra.mxu0 %v6939_v40  ;;  %v8117_v40 = vld [vmem:[%s9119_s2 + $0x8] sm:$0xff] }
 0x843   :  { %6578 = vmatprep.subr.bf16.mxu0 %v7535_v10 }
 0x845   :  { %v887_v44 = vpop.f32.mrb[12].mxu0 }
 0x846   :  { %v6554_v45 = vpop.f32.mrb[13].mxu0  ;;  %6579 = vmatpush3.bf16.msra.mxu0 %v6940_v41 }
 0x847   :  { %v890_v47 = vpop.f32.mrb[14].mxu0  ;;  %6592 = vmatprep.subr.bf16.mxu0 %v7535_v10 }
 0x848   :  { %v6878_v48 = vpack.i.bf16 %v890_v47, %v887_v44  ;;  %v6555_v49 = vpop.f32.mrb[15].mxu0 }
 0x84a   :  { %6879 = vrot.lane.b32.xlu0 %v6878_v48, %s7520_s25 }
 0x84d   :  { %v1012_v50 = vpop.f32.mrb[16].mxu0 }
 0x84e   :  { %v6566_v51 = vpop.f32.mrb[17].mxu0 }
 0x84f   :  { %v1015_v52 = vpop.f32.mrb[18].mxu0 }
 0x850   :  { %v6883_v53 = vpack.i.bf16 %v1015_v52, %v1012_v50  ;;  %v6567_v54 = vpop.f32.mrb[19].mxu0 }
 0x852   :  { %6884 = vrot.lane.b32.xlu1 %v6883_v53, %s7548_s16 }
 0x8b4   :  { %v6875_v56 = vpop.permute.xlu1 %6874 }
 0x8b5   :  { %v6877_v58 = vunpack.i.h.bf16 %v6875_v56  ;;  %v6876_v59 = vunpack.i.l.bf16 %v6875_v56 }
 0x8b7   :  { %v1044_v2 = vsel %vm521_vm9, %v640_v36, %v6877_v58  ;;  %v1043_v3 = vsel %vm521_vm9, %v637_v34, %v6876_v59  ;;  %v6938_v34 = vld [vmem:[#allocation14 + $0x8] sm:$0xff]   ;;  %v386_v36 = vld [vmem:[%s9118_s23 + $0x8] sm:$0xff]  ;;  %v393_v59 = vld [vmem:[#allocation2 + $0x2] sm:$0x3] }
 0x8b8   :  { %v8072_v37 = vpack.c.bf16 %v386_v36, %v385_v35 }
 0x8bc   :  { %v6880_v57 = vpop.permute.xlu0 %6879 }
 0x8bd   :  { %v6882_v61 = vunpack.i.h.bf16 %v6880_v57  ;;  %v6881_v62 = vunpack.i.l.bf16 %v6880_v57 }
 0x8bf   :  { %v1045_v6 = vsel %vm573_vm10, %v1043_v3, %v6881_v62  ;;  %v1046_v7 = vsel %vm573_vm10, %v1044_v2, %v6882_v61  ;;  %v1143_v61 = vrot.slane %v393_v59, %v7940_v60  ;;  %v1169_v2 = vrot.slane %v393_v59, %v7944_v63 }
 0x8c4   :  { %v6885_v1 = vpop.permute.xlu1 %6884 }
 0x8c5   :  { %v6887_v4 = vunpack.i.h.bf16 %v6885_v1  ;;  %v6886_v5 = vunpack.i.l.bf16 %v6885_v1 }
 0x8c7   :  { %v1048_v8 = vsel %vm1047_vm11, %v1045_v6, %v6886_v5  ;;  %v1049_v19 = vsel %vm1047_vm11, %v1046_v7, %v6887_v4 }
 0x8c8   :  { %v1050_v9 = vpack.c.bf16 %v1049_v19, %v1048_v8 }
 0x8ca   :  { %6573 = vmatmul.mubr.msk.bf16.vlgmr.msra.gmra.mrb[20].mxu1 %vm395_vm3, %v1050_v9  ;;  %v6139_v9 = vld [vmem:[#allocation16] ss:$0 sm:$0xff] }
 0x8cb   :  { %6585 = vmatpush3.bf16.msra.mxu1 %v6937_v33  ;;  %6588 = vmatprep.mubr.msk.bf16.mxu1 %vm395_vm3, %v8072_v37 }
 0x8cc   :  { %6586 = vmatprep.subr.bf16.mxu1 %v6938_v34 }
 0x8cf   :  { %6587 = vmatpush3.bf16.msra.mxu1 %v6938_v34  ;;  %v8112_v34 = vld [vmem:[%s9119_s2] sm:$0xff] }
 0x8d0   :  { %6600 = vmatprep.subr.bf16.mxu1 %v7535_v10 }
 0x8d2   :  { %6589 = vmatmul.mubr.msk.bf16.vlgmr.msra.gmra.mrb[24].mxu1 %vm395_vm3, %v8077_v39 }
 0x8d3   :  { %6604 = vmatprep.mubr.msk.bf16.mxu1 %vm7536_vm4, %v7535_v10 }
 0x99d   :  { %v1111_v12 = vpop.f32.mrb[20].mxu1 }
 0x99e   :  { %v1112_v13 = vadd.f32 %v6131_v11, %v1111_v12  ;;  %v6574_v14 = vpop.f32.mrb[21].mxu1 }
 0x99f   :  { %v1114_v15 = vpop.f32.mrb[22].mxu1 }
 0x9a0   :  { %v8053_v16 = vadd.f32 %v1112_v13, %v7919_v27  ;;  %v1115_v17 = vadd.f32 %v6131_v11, %v1114_v15  ;;  %v6575_v18 = vpop.f32.mrb[23].mxu1 }
 0x9a2   :  { %v8056_v20 = vadd.f32 %v1115_v17, %v7921_v28  ;;  %v1120_v21 = vsel %vm395_vm3, %v8053_v16, 0.0 }
 0x9a3   :  { %1121 = vadd.xlane.f32.xlu0 %v1120_v21 }
 0x9a4   :  { %v1123_v22 = vsel %vm395_vm3, %v8056_v20, 0.0 }
 0x9a5   :  { %1124 = vadd.xlane.f32.xlu1 %v1123_v22  ;;  %v6590_v11 = vpop.f32.mrb[24].mxu1 }
 0x9a6   :  { %v1305_v12 = vpop.f32.mrb[25].mxu1  ;;  %v1314_v18 = vadd.f32 %v6590_v11, %v6139_v9 }
 0x9a7   :  { %v1306_v13 = vadd.f32 %v6139_v9, %v1305_v12  ;;  %v6591_v14 = vpop.f32.mrb[26].mxu1 }
 0x9a8   :  { %v1308_v15 = vpop.f32.mrb[27].mxu1 }
 0x9a9   :  { %v1309_v17 = vadd.f32 %v6139_v9, %v1308_v15 }
 0x9ab   :  { %v8093_v21 = vpack.c.bf16 %v1309_v17, %v1306_v13 }
 0x9ad   :  { %v1326_v22 = vsel %vm521_vm9, %v8093_v21, 0 }
 0xa30   :  { %v1122_v23 = vpop.xlane.xlu0 %1121 }
 0xa31   :  { %v1126_v24 = vmul.f32 0.03125, %v1122_v23  ;;  %v8097_v23 = vpack.c.bf16 %v1314_v18, %v1314_v18 }
 0xa32   :  { %v1125_v25 = vpop.xlane.xlu1 %1124 }
 0xa33   :  { %v1128_v26 = vsub.f32 %v8053_v16, %v1126_v24  ;;  %v1127_v27 = vmul.f32 0.03125, %v1125_v25  ;;  %v1329_v24 = vsel %vm521_vm9, %v8097_v23, 0  ;;  %v6135_v25 = vld [vmem:[#allocation13] ss:$0 sm:$0xff] }
 0xa35   :  { %v1129_v29 = vsub.f32 %v8056_v20, %v1127_v27  ;;  %v1130_v30 = vmul.f32 %v1128_v26, %v1128_v26  ;;  %v1144_v1 = vmul.f32 %v1143_v61, %v1128_v26 }
 0xa37   :  { %v1132_v28 = vsel %vm395_vm3, %v1130_v30, 0.0  ;;  %v1131_v31 = vmul.f32 %v1129_v29, %v1129_v29  ;;  %v1145_v3 = vmul.f32 %v1143_v61, %v1129_v29 }
 0xa38   :  { %1133 = vadd.xlane.f32.xlu0 %v1132_v28 }
 0xa39   :  { %v1135_v32 = vsel %vm395_vm3, %v1131_v31, 0.0 }
 0xa3c   :  { %1136 = vadd.xlane.f32.xlu0 %v1135_v32 }
 0xac5   :  { %v1134_v42 = vpop.xlane.xlu0 %1133 }
 0xac6   :  { %v1138_v43 = vmul.f32 0.032258064, %v1134_v42 }
 0xac8   :  { %6993 = vrsqrt.f32 %v1138_v43  ;;  %vm1148_vm12 = vcmp.eq.f32.partialorder %v1138_v43, inf  ;;  %v1151_v48 = vand.u32 2147483648, %v1138_v43  ;;  %vm1150_vm13 = vcmp.eq.f32.partialorder %v1138_v43, 0.0 }
 0xac9   :  { %v1137_v44 = vpop.xlane.xlu0 %1136 }
 0xaca   :  { %v1139_v45 = vmul.f32 0.032258064, %v1137_v44 }
 0xacc   :  { %6995 = vrsqrt.f32 %v1139_v45  ;;  %vm1155_vm14 = vcmp.eq.f32.partialorder %v1139_v45, inf  ;;  %v1158_v54 = vand.u32 2147483648, %v1139_v45  ;;  %vm1157_vm15 = vcmp.eq.f32.partialorder %v1139_v45, 0.0 }
 0xad2   :  { %v6994_v46 = vpop.eup %6993 }
 0xad3   :  { %v1147_v47 = vmul.f32 %v6994_v46, %v1138_v43 }
 0xad5   :  { %v1149_v49 = vsel %vm1148_vm12, %v1138_v43, %v1147_v47 }
 0xad6   :  { %v6996_v50 = vpop.eup %6995  ;;  %v1152_v51 = vsel %vm1150_vm13, %v1151_v48, %v1149_v49 }
 0xad7   :  { %v1160_v52 = vadd.f32 1e-06, %v1152_v51  ;;  %v1154_v53 = vmul.f32 %v6996_v50, %v1139_v45 }
 0xad9   :  { %6997 = vrcp.f32 %v1160_v52  ;;  %v1156_v56 = vsel %vm1155_vm14, %v1139_v45, %v1154_v53 }
 0xada   :  { %v1159_v57 = vsel %vm1157_vm15, %v1158_v54, %v1156_v56 }
 0xadb   :  { %v1161_v58 = vadd.f32 1e-06, %v1159_v57 }
 0xadd   :  { %6999 = vrcp.f32 %v1161_v58 }
 0xae3   :  { %v6998_v62 = vpop.eup %6997 }
 0xae4   :  { %v1163_v4 = vmul.f32 %v6998_v62, %v1144_v1 }
 0xae6   :  { %v1170_v7 = vadd.f32 %v1169_v2, %v1163_v4 }
 0xae7   :  { %v7000_v5 = vpop.eup %6999 }
 0xae8   :  { %v1165_v6 = vmul.f32 %v7000_v5, %v1145_v3 }
 0xaea   :  { %v1171_v8 = vadd.f32 %v1169_v2, %v1165_v6 }
 0xaec   :  { %v1172_v19 = vpack.c.bf16 %v1171_v8, %v1170_v7 }
 0xaee   :  { %6581 = vmatmul.mubr.msk.bf16.vlgmr.msra.gmra.mrb[20].mxu0 %vm395_vm3, %v1172_v19 }
 0xaef   :  { %6596 = vmatprep.mubr.msk.bf16.mxu0 %vm7536_vm4, %v7535_v10  ;;  %6593 = vmatpush3.bf16.xpose.msra.mxu0 %v1326_v22 }
 0xaf0   :  { %6594 = vmatprep.subr.bf16.mxu0 %v7535_v10 }
 0xaf7   :  { %6595 = vmatpush3.bf16.xpose.msra.mxu0 %v1329_v24 }
 0xaf8   :  { %6616 = vmatprep.subr.bf16.mxu0 %v7535_v10 }
 0xbc1   :  { %v1233_v26 = vpop.f32.mrb[20].mxu0 }
 0xbc2   :  { %v6582_v27 = vpop.f32.mrb[21].mxu0  ;;  %v1234_v30 = vadd.f32 %v6135_v25, %v1233_v26 }
 0xbc3   :  { %v1236_v29 = vpop.f32.mrb[22].mxu0 }
 0xbc4   :  { %v1237_v28 = vadd.f32 %v6135_v25, %v1236_v29  ;;  %v6583_v31 = vpop.f32.mrb[23].mxu0 }
 0xbc6   :  { %v8103_v32 = vpack.c.bf16 %v1237_v28, %v1234_v30 }
 0xbc8   :  { %6597 = vmatmul.mubr.msk.bf16.vlgmr.msra.gmra.mrb[24].mxu0 %vm521_vm9, %v8103_v32 }
 0xbc9   :  { %6620 = vmatprep.mubr.msk.bf16.mxu0 %vm7536_vm4, %v7535_v10 }
 0xc9b   :  { %v1365_v33 = vpop.f32.mrb[24].mxu0 }
 0xc9c   :  { %v1372_v35 = vmul.f32 0.35355338, %v1365_v33  ;;  %v6598_v36 = vpop.f32.mrb[25].mxu0 }
 0xc9d   :  { %v1368_v38 = vpop.f32.mrb[26].mxu0 }
 0xc9e   :  { %v1373_v41 = vmul.f32 0.35355338, %v1368_v38  ;;  %v6599_v42 = vpop.f32.mrb[27].mxu0  ;;  %v1374_v43 = vadd.f32 %v1372_v35, %v8112_v34 }
 0xca0   :  { %v1377_v44 = vsel %vm1376_vm0, %v1374_v43, -inf  ;;  %v1375_v45 = vadd.f32 %v1373_v41, %v8117_v40 }
 0xca1   :  { %1378 = vmax.xlane.f32.xlu1 %v1377_v44 }
 0xca2   :  { %v1380_v46 = vsel %vm1376_vm0, %v1375_v45, -inf }
 0xca3   :  { %1381 = vmax.xlane.f32.xlu0 %v1380_v46 }
 0xcb2   :  { %1402 = vrot.lane.b32.xlu1 %v8093_v21, %s7538_s19 }
 0xd2e   :  { %v1379_v47 = vpop.xlane.xlu1 %1378 }
 0xd2f   :  { %v1383_v48 = vsub.f32 %v1374_v43, %v1379_v47 }
 0xd30   :  { %v1382_v49 = vpop.xlane.xlu0 %1381 }
 0xd31   :  { %v1385_v50 = vmul.f32 1.442695, %v1383_v48  ;;  %v1384_v51 = vsub.f32 %v1375_v45, %v1382_v49 }
 0xd32   :  { %v1403_v52 = vpop.permute.xlu1 %1402 }
 0xd33   :  { %7001 = vpow2.f32 %v1385_v50  ;;  %v1387_v53 = vmul.f32 1.442695, %v1384_v51  ;;  %6601 = vmatpush3.bf16.msra.mxu1 %v1403_v52 }
 0xd34   :  { %6602 = vmatprep.subr.bf16.mxu1 %v7535_v10 }
 0xd35   :  { %7003 = vpow2.f32 %v1387_v53 }
 0xd3d   :  { %v7002_v54 = vpop.eup %7001 }
 0xd3e   :  { %v1389_v56 = vsel %vm1376_vm0, %v7002_v54, 0.0 }
 0xd3f   :  { %v7004_v57 = vpop.eup %7003  ;;  %1390 = vadd.xlane.f32.xlu1 %v1389_v56 }
 0xd40   :  { %v1392_v58 = vsel %vm1376_vm0, %v7004_v57, 0.0 }
 0xd41   :  { %1393 = vadd.xlane.f32.xlu0 %v1392_v58 }
 0xd50   :  { %1458 = vrot.lane.b32.xlu1 %v8093_v21, %s7540_s21 }
 0xd54   :  { %1460 = vrot.lane.b32.xlu1 %v8097_v23, %s7540_s21 }
 0xd57   :  { %1404 = vrot.lane.b32.xlu0 %v8097_v23, %s7538_s19 }
 0xd5b   :  { %1456 = vrot.lane.b32.xlu0 %v8103_v32, %s7540_s21 }
 0xdcc   :  { %v1391_v59 = vpop.xlane.xlu1 %1390 }
 0xdcd   :  { %7005 = vrcp.f32 %v1391_v59 }
 0xdce   :  { %v1394_v61 = vpop.xlane.xlu0 %1393 }
 0xdcf   :  { %7007 = vrcp.f32 %v1394_v61 }
 0xdd0   :  { %v1459_v6 = vpop.permute.xlu1 %1458 }
 0xdd1   :  { %v1466_v8 = vsel %vm521_vm9, %v1459_v6, 0 }
 0xdd2   :  { %v1405_v62 = vpop.permute.xlu0 %1404 }
 0xdd3   :  { %v1412_v1 = vsel %vm1410_vm1, %v1405_v62, 0 }
 0xdd4   :  { %6603 = vmatpush3.bf16.msra.mxu1 %v1412_v1  ;;  %v1461_v19 = vpop.permute.xlu1 %1460 }
 0xdd5   :  { %6608 = vmatprep.subr.bf16.mxu1 %v7535_v10  ;;  %v1469_v9 = vsel %vm521_vm9, %v1461_v19, 0 }
 0xdd6   :  { %v1457_v11 = vpop.permute.xlu0 %1456 }
 0xdd7   :  { %v7006_v2 = vpop.eup %7005 }
 0xdd8   :  { %v1396_v4 = vmul.f32 %v7006_v2, %v7002_v54 }
 0xdd9   :  { %v7008_v3 = vpop.eup %7007 }
 0xdda   :  { %v1398_v5 = vmul.f32 %v7008_v3, %v7004_v57 }
 0xddc   :  { %v1399_v7 = vpack.c.bf16 %v1398_v5, %v1396_v4 }
 0xdde   :  { %6605 = vmatmul.mubr.msk.bf16.vlgmr.msra.gmra.mrb[28].mxu1 %vm1376_vm0, %v1399_v7 }
 0xddf   :  { %6609 = vmatpush3.bf16.xpose.msra.mxu1 %v1466_v8  ;;  %6612 = vmatprep.mubr.msk.bf16.mxu1 %vm7536_vm4, %v7535_v10 }
 0xde0   :  { %6610 = vmatprep.subr.bf16.mxu1 %v7535_v10 }
 0xde7   :  { %6611 = vmatpush3.bf16.xpose.msra.mxu1 %v1469_v9 }
 0xde8   :  { %6632 = vmatprep.subr.bf16.mxu1 %v7535_v10 }
 0xdee   :  { %6613 = vmatmul.mubr.msk.bf16.vlgmr.msra.gmra.mrb[32].mxu1 %vm521_vm9, %v1457_v11 }
 0xdef   :  { %6636 = vmatprep.mubr.msk.bf16.mxu1 %vm7536_vm4, %v7535_v10 }
 0xeb1   :  { %v8148_v12 = vpop.f32.mrb[28].mxu1 }
 0xeb2   :  { %v6606_v13 = vpop.f32.mrb[29].mxu1 }
 0xeb3   :  { %v8150_v14 = vpop.f32.mrb[30].mxu1 }
 0xeb4   :  { %v6607_v15 = vpop.f32.mrb[31].mxu1 }
 0xec1   :  { %v1505_v17 = vpop.f32.mrb[32].mxu1 }
 0xec2   :  { %v1512_v18 = vmul.f32 0.35355338, %v1505_v17  ;;  %v6614_v22 = vpop.f32.mrb[33].mxu1 }
 0xec3   :  { %v1508_v24 = vpop.f32.mrb[34].mxu1 }
 0xec4   :  { %v1513_v25 = vmul.f32 0.35355338, %v1508_v24  ;;  %v6615_v26 = vpop.f32.mrb[35].mxu1  ;;  %v1514_v27 = vadd.f32 %v1512_v18, %v8112_v34 }
 0xec6   :  { %v1516_v29 = vsel %vm1376_vm0, %v1514_v27, -inf  ;;  %v1515_v30 = vadd.f32 %v1513_v25, %v8117_v40 }
 0xec7   :  { %1517 = vmax.xlane.f32.xlu1 %v1516_v29 }
 0xec8   :  { %v1519_v28 = vsel %vm1376_vm0, %v1515_v30, -inf }
 0xec9   :  { %1520 = vmax.xlane.f32.xlu0 %v1519_v28 }
 0xed8   :  { %1541 = vrot.lane.b32.xlu1 %v8097_v23, %s7539_s5 }
 0xf54   :  { %v1518_v31 = vpop.xlane.xlu1 %1517 }
 0xf55   :  { %v1522_v33 = vsub.f32 %v1514_v27, %v1518_v31 }
 0xf56   :  { %v1521_v35 = vpop.xlane.xlu0 %1520 }
 0xf57   :  { %v1524_v36 = vmul.f32 1.442695, %v1522_v33  ;;  %v1523_v38 = vsub.f32 %v1515_v30, %v1521_v35 }
 0xf58   :  { %v1542_v46 = vpop.permute.xlu1 %1541 }
 0xf59   :  { %7009 = vpow2.f32 %v1524_v36  ;;  %v1526_v41 = vmul.f32 1.442695, %v1523_v38  ;;  %v1548_v50 = vsel %vm1410_vm1, %v1542_v46, 0 }
 0xf5b   :  { %7011 = vpow2.f32 %v1526_v41 }
 0xf63   :  { %v7010_v42 = vpop.eup %7009 }
 0xf64   :  { %v1528_v43 = vsel %vm1376_vm0, %v7010_v42, 0.0 }
 0xf65   :  { %v7012_v44 = vpop.eup %7011  ;;  %1529 = vadd.xlane.f32.xlu0 %v1528_v43 }
 0xf66   :  { %v1531_v45 = vsel %vm1376_vm0, %v7012_v44, 0.0 }
 0xf67   :  { %1532 = vadd.xlane.f32.xlu1 %v1531_v45 }
 0xf78   :  { %1593 = vrot.lane.b32.xlu1 %v8093_v21, %s7537_s10 }
 0xf7b   :  { %1539 = vrot.lane.b32.xlu0 %v8093_v21, %s7539_s5 }
 0xf7c   :  { %1591 = vrot.lane.b32.xlu1 %v8103_v32, %s7537_s10 }
 0xf7f   :  { %1595 = vrot.lane.b32.xlu0 %v8097_v23, %s7537_s10 }
 0xff2   :  { %v1530_v47 = vpop.xlane.xlu0 %1529 }
 0xff3   :  { %7013 = vrcp.f32 %v1530_v47 }
 0xff4   :  { %v1533_v48 = vpop.xlane.xlu1 %1532 }
 0xff5   :  { %7015 = vrcp.f32 %v1533_v48 }
 0xff6   :  { %v1540_v49 = vpop.permute.xlu0 %1539 }
 0xff7   :  { %6617 = vmatpush3.bf16.msra.mxu0 %v1540_v49 }
 0xff8   :  { %6618 = vmatprep.subr.bf16.mxu0 %v7535_v10  ;;  %v1594_v56 = vpop.permute.xlu1 %1593 }
 0xff9   :  { %v1601_v58 = vsel %vm521_vm9, %v1594_v56, 0 }
 0xffa   :  { %v1596_v59 = vpop.permute.xlu0 %1595 }
 0xffb   :  { %6619 = vmatpush3.bf16.msra.mxu0 %v1548_v50  ;;  %v1604_v61 = vsel %vm521_vm9, %v1596_v59, 0 }
 0xffc   :  { %6624 = vmatprep.subr.bf16.mxu0 %v7535_v10  ;;  %v1592_v62 = vpop.permute.xlu1 %1591 }
 0xffd   :  { %v7014_v51 = vpop.eup %7013 }
 0xffe   :  { %v1535_v53 = vmul.f32 %v7014_v51, %v7010_v42 }
 0xfff   :  { %v7016_v52 = vpop.eup %7015 }
0x1000   :  { %v1537_v54 = vmul.f32 %v7016_v52, %v7012_v44 }
0x1002   :  { %v1538_v57 = vpack.c.bf16 %v1537_v54, %v1535_v53 }
0x1004   :  { %6621 = vmatmul.mubr.msk.bf16.vlgmr.msra.gmra.mrb[28].mxu0 %vm1376_vm0, %v1538_v57 }
0x1005   :  { %6625 = vmatpush3.bf16.xpose.msra.mxu0 %v1601_v58  ;;  %6628 = vmatprep.mubr.msk.bf16.mxu0 %vm7536_vm4, %v7535_v10 }
0x1006   :  { %6626 = vmatprep.subr.bf16.mxu0 %v7535_v10 }
0x100d   :  { %6627 = vmatpush3.bf16.xpose.msra.mxu0 %v1604_v61 }
0x100e   :  { %6648 = vmatprep.subr.bf16.mxu0 %v7535_v10 }
0x1014   :  { %6629 = vmatmul.mubr.msk.bf16.vlgmr.msra.gmra.mrb[32].mxu0 %vm521_vm9, %v1592_v62 }
0x1015   :  { %6652 = vmatprep.mubr.msk.bf16.mxu0 %vm7536_vm4, %v7535_v10 }
0x10d7   :  { %v8181_v1 = vpop.f32.mrb[28].mxu0 }
0x10d8   :  { %v6622_v2 = vpop.f32.mrb[29].mxu0 }
0x10d9   :  { %v8183_v3 = vpop.f32.mrb[30].mxu0 }
0x10da   :  { %v6888_v4 = vpack.i.bf16 %v8183_v3, %v8181_v1  ;;  %v6623_v5 = vpop.f32.mrb[31].mxu0 }
0x10e7   :  { %v1640_v6 = vpop.f32.mrb[32].mxu0 }
0x10e8   :  { %v1647_v7 = vmul.f32 0.35355338, %v1640_v6  ;;  %v6630_v8 = vpop.f32.mrb[33].mxu0 }
0x10e9   :  { %v1643_v19 = vpop.f32.mrb[34].mxu0 }
0x10ea   :  { %v1648_v9 = vmul.f32 0.35355338, %v1643_v19  ;;  %v6631_v11 = vpop.f32.mrb[35].mxu0  ;;  %v1649_v13 = vadd.f32 %v1647_v7, %v8112_v34 }
0x10ec   :  { %v1651_v15 = vsel %vm1376_vm0, %v1649_v13, -inf  ;;  %v1650_v17 = vadd.f32 %v1648_v9, %v8117_v40 }
0x10ed   :  { %1652 = vmax.xlane.f32.xlu0 %v1651_v15 }
0x10ee   :  { %v1654_v18 = vsel %vm1376_vm0, %v1650_v17, -inf }
0x10ef   :  { %1655 = vmax.xlane.f32.xlu1 %v1654_v18 }
0x1100   :  { %1674 = vrot.lane.b32.xlu1 %v8093_v21, %s7541_s18 }
0x1104   :  { %1728 = vrot.lane.b32.xlu1 %v8093_v21, %s7543_s3 }
0x1108   :  { %1730 = vrot.lane.b32.xlu1 %v8097_v23, %s7543_s3 }
0x117a   :  { %v1653_v22 = vpop.xlane.xlu0 %1652 }
0x117b   :  { %v1657_v24 = vsub.f32 %v1649_v13, %v1653_v22 }
0x117c   :  { %v1656_v25 = vpop.xlane.xlu1 %1655 }
0x117d   :  { %v1659_v26 = vmul.f32 1.442695, %v1657_v24  ;;  %v1658_v27 = vsub.f32 %v1650_v17, %v1656_v25 }
0x117f   :  { %7017 = vpow2.f32 %v1659_v26  ;;  %v1661_v29 = vmul.f32 1.442695, %v1658_v27 }
0x1180   :  { %v1675_v30 = vpop.permute.xlu1 %1674 }
0x1181   :  { %7019 = vpow2.f32 %v1661_v29  ;;  %6633 = vmatpush3.bf16.msra.mxu1 %v1675_v30 }
0x1182   :  { %6634 = vmatprep.subr.bf16.mxu1 %v7535_v10 }
0x1184   :  { %v1729_v47 = vpop.permute.xlu1 %1728 }
0x1185   :  { %v1736_v49 = vsel %vm521_vm9, %v1729_v47, 0 }
0x1189   :  { %v7018_v28 = vpop.eup %7017 }
0x118a   :  { %v1663_v31 = vsel %vm1376_vm0, %v7018_v28, 0.0 }
0x118b   :  { %v7020_v33 = vpop.eup %7019  ;;  %1664 = vadd.xlane.f32.xlu0 %v1663_v31  ;;  %v6942_v31 = vld [vmem:[#allocation17 + $0x8] sm:$0xff]  }
0x118c   :  { %v1666_v35 = vsel %vm1376_vm0, %v7020_v33, 0.0 }
0x118f   :  { %1667 = vadd.xlane.f32.xlu0 %v1666_v35 }
0x11a5   :  { %1676 = vrot.lane.b32.xlu0 %v8097_v23, %s7541_s18 }
0x11a9   :  { %1726 = vrot.lane.b32.xlu0 %v8103_v32, %s7543_s3  ;;  %v1731_v32 = vpop.permute.xlu1 %1730 }
0x11aa   :  { %v1739_v50 = vsel %vm521_vm9, %v1731_v32, 0 }
0x1218   :  { %v1665_v36 = vpop.xlane.xlu0 %1664 }
0x1219   :  { %7021 = vrcp.f32 %v1665_v36 }
0x121c   :  { %v1668_v38 = vpop.xlane.xlu0 %1667 }
0x121d   :  { %7023 = vrcp.f32 %v1668_v38 }
0x1220   :  { %v1677_v41 = vpop.permute.xlu0 %1676 }
0x1221   :  { %v1683_v42 = vsel %vm1410_vm1, %v1677_v41, 0 }
0x1222   :  { %6635 = vmatpush3.bf16.msra.mxu1 %v1683_v42 }
0x1223   :  { %6640 = vmatprep.subr.bf16.mxu1 %v7535_v10  ;;  %v7022_v43 = vpop.eup %7021 }
0x1224   :  { %v1670_v45 = vmul.f32 %v7022_v43, %v7018_v28  ;;  %v1727_v51 = vpop.permute.xlu0 %1726  ;;  %v6941_v28 = vld [vmem:[#allocation17] sm:$0xff]  }
0x1227   :  { %v7024_v44 = vpop.eup %7023 }
0x1228   :  { %v1672_v46 = vmul.f32 %v7024_v44, %v7020_v33 }
0x122a   :  { %v1673_v48 = vpack.c.bf16 %v1672_v46, %v1670_v45 }
0x122c   :  { %6637 = vmatmul.mubr.msk.bf16.vlgmr.msra.gmra.mrb[36].mxu1 %vm1376_vm0, %v1673_v48 }
0x122d   :  { %6641 = vmatpush3.bf16.xpose.msra.mxu1 %v1736_v49  ;;  %6644 = vmatprep.mubr.msk.bf16.mxu1 %vm7536_vm4, %v7535_v10 }
0x122e   :  { %6642 = vmatprep.subr.bf16.mxu1 %v7535_v10 }
0x1235   :  { %6643 = vmatpush3.bf16.xpose.msra.mxu1 %v1739_v50 }
0x123c   :  { %6645 = vmatmul.mubr.msk.bf16.vlgmr.msra.gmra.mrb[40].mxu1 %vm521_vm9, %v1727_v51 }
0x123d   :  { %2325 = vmatprep.mubr.bf16.mxu1 %v7534_v0 }
0x12ff   :  { %v1719_v52 = vpop.f32.mrb[36].mxu1 }
0x1300   :  { %v6638_v53 = vpop.f32.mrb[37].mxu1 }
0x1301   :  { %v1722_v54 = vpop.f32.mrb[38].mxu1 }
0x1302   :  { %v6893_v56 = vpack.i.bf16 %v1722_v54, %v1719_v52  ;;  %v6639_v57 = vpop.f32.mrb[39].mxu1 }
0x130f   :  { %v1775_v58 = vpop.f32.mrb[40].mxu1 }
0x1310   :  { %v1782_v59 = vmul.f32 0.35355338, %v1775_v58  ;;  %v6646_v61 = vpop.f32.mrb[41].mxu1 }
0x1311   :  { %v1778_v62 = vpop.f32.mrb[42].mxu1 }
0x1312   :  { %v1783_v2 = vmul.f32 0.35355338, %v1778_v62  ;;  %v6647_v5 = vpop.f32.mrb[43].mxu1  ;;  %v1784_v6 = vadd.f32 %v1782_v59, %v8112_v34 }
0x1314   :  { %v1786_v7 = vsel %vm1376_vm0, %v1784_v6, -inf  ;;  %v1785_v8 = vadd.f32 %v1783_v2, %v8117_v40 }
0x1315   :  { %1787 = vmax.xlane.f32.xlu1 %v1786_v7 }
0x1316   :  { %v1789_v19 = vsel %vm1376_vm0, %v1785_v8, -inf }
0x1317   :  { %1790 = vmax.xlane.f32.xlu0 %v1789_v19 }
0x13a2   :  { %v1788_v9 = vpop.xlane.xlu1 %1787 }
0x13a3   :  { %v1792_v11 = vsub.f32 %v1784_v6, %v1788_v9 }
0x13a4   :  { %v1791_v13 = vpop.xlane.xlu0 %1790 }
0x13a5   :  { %v1794_v15 = vmul.f32 1.442695, %v1792_v11  ;;  %v1793_v17 = vsub.f32 %v1785_v8, %v1791_v13 }
0x13a7   :  { %7025 = vpow2.f32 %v1794_v15  ;;  %v1796_v18 = vmul.f32 1.442695, %v1793_v17 }
0x13a9   :  { %7027 = vpow2.f32 %v1796_v18 }
0x13b1   :  { %v7026_v22 = vpop.eup %7025 }
0x13b2   :  { %v1798_v24 = vsel %vm1376_vm0, %v7026_v22, 0.0 }
0x13b3   :  { %v7028_v34 = vpop.eup %7027  ;;  %1799 = vadd.xlane.f32.xlu0 %v1798_v24  ;;  %v2014_v24 = vld [vmem:[%s9092_s17] sm:$0xff] }
0x13b4   :  { %v1801_v25 = vsel %vm1376_vm0, %v7028_v34, 0.0 }
0x13b5   :  { %1802 = vadd.xlane.f32.xlu1 %v1801_v25  ;;  %v2015_v25 = vld [vmem:[%s9092_s17 + $0x8] sm:$0xff] }
0x13c6   :  { %1811 = vrot.lane.b32.xlu1 %v8097_v23, %s7542_s14 }
0x13c9   :  { %1809 = vrot.lane.b32.xlu0 %v8093_v21, %s7542_s14 }
0x13ca   :  { %6889 = vrot.lane.b32.xlu1 %v6888_v4, %s7547_s11 }
0x13cd   :  { %6894 = vrot.lane.b32.xlu0 %v6893_v56, %s7520_s25 }
0x1440   :  { %v1800_v40 = vpop.xlane.xlu0 %1799 }
0x1441   :  { %7029 = vrcp.f32 %v1800_v40 }
0x1442   :  { %v1803_v26 = vpop.xlane.xlu1 %1802 }
0x1443   :  { %7031 = vrcp.f32 %v1803_v26  ;;  %v2023_v26 = vld [vmem:[%s9092_s17 + $0x48] sm:$0xff] }
0x1444   :  { %v1810_v27 = vpop.permute.xlu0 %1809 }
0x1445   :  { %6649 = vmatpush3.bf16.msra.mxu0 %v1810_v27 }
0x1446   :  { %v1812_v29 = vpop.permute.xlu1 %1811  ;;  %6650 = vmatprep.subr.bf16.mxu0 %v7535_v10 }
0x1447   :  { %v1818_v23 = vsel %vm1410_vm1, %v1812_v29, 0  ;;  %v6158_v29 = vcombine.low %v2015_v25, %v2023_v26 }
0x1448   :  { %v6895_v45 = vpop.permute.xlu0 %6894 }
0x1449   :  { %6651 = vmatpush3.bf16.msra.mxu0 %v1818_v23  ;;  %v6897_v48 = vunpack.i.h.bf16 %v6895_v45  ;;  %v6896_v49 = vunpack.i.l.bf16 %v6895_v45  ;;  %v6159_v23 = vcombine.high %v2015_v25, %v2023_v26  ;;  %v2026_v26 = vld [vmem:[%s9092_s17 + $0x60] sm:$0xff] }
0x144a   :  { %6656 = vmatprep.subr.bf16.mxu0 %v7535_v10  ;;  %v6890_v42 = vpop.permute.xlu1 %6889 }
0x144b   :  { %v7030_v21 = vpop.eup %7029  ;;  %v6892_v43 = vunpack.i.h.bf16 %v6890_v42  ;;  %v6891_v44 = vunpack.i.l.bf16 %v6890_v42  ;;  %v2025_v42 = vld [vmem:[%s9092_s17 + $0x58] sm:$0xff] }
0x144c   :  { %v1805_v1 = vmul.f32 %v7030_v21, %v7026_v22  ;;  %v2030_v21 = vld [vmem:[%s9092_s17 + $0x80] sm:$0xff] }
0x144d   :  { %v7032_v30 = vpop.eup %7031  ;;  %v1886_v46 = vsel %vm521_vm9, %v8150_v14, %v6892_v43  ;;  %v1885_v47 = vsel %vm521_vm9, %v8148_v12, %v6891_v44  ;;  %v6152_v14 = vld [vmem:[#allocation19] ss:$0 sm:$0xff] }
0x144e   :  { %v1807_v3 = vmul.f32 %v7032_v30, %v7028_v34  ;;  %v1887_v52 = vsel %vm573_vm10, %v1885_v47, %v6896_v49  ;;  %v1888_v53 = vsel %vm573_vm10, %v1886_v46, %v6897_v48  ;;  %v2022_v34 = vld [vmem:[%s9092_s17 + $0x40] sm:$0xff] }
0x144f   :  { %v6157_v40 = vcombine.high %v2014_v24, %v2022_v34  ;;  %v6156_v27 = vcombine.low %v2014_v24, %v2022_v34  ;;  %v2038_v30 = vld [vmem:[%s9092_s17 + $0xc0] sm:$0xff] }
0x1450   :  { %v1808_v4 = vpack.c.bf16 %v1807_v3, %v1805_v1  ;;  %v2031_v1 = vld [vmem:[%s9092_s17 + $0x88] sm:$0xff]  ;;  %v6172_v3 = vcombine.low %v2030_v21, %v2038_v30 }
0x1451   :  { %2293 = vmatprep.subr.bf16.mxu1 %v6157_v40  ;;  %v2018_v40 = vld [vmem:[%s9092_s17 + $0x20] sm:$0xff] }
0x1452   :  { %6653 = vmatmul.mubr.msk.bf16.vlgmr.msra.gmra.mrb[36].mxu0 %vm1376_vm0, %v1808_v4  ;;  %2294 = vmatpush1.bf16.msra.mxu1 %v6156_v27  ;;  %v6173_v4 = vcombine.high %v2030_v21, %v2038_v30  ;;  %v2019_v27 = vld [vmem:[%s9092_s17 + $0x28] sm:$0xff]  ;;  %v6165_v30 = vcombine.high %v2018_v40, %v2026_v26 }
0x1453   :  { %6660 = vmatprep.mubr.msk.bf16.mxu0 %vm7536_vm4, %v7535_v10  ;;  %6657 = vmatpush3.bf16.msra.mxu0 %v6941_v28  ;;  %v2039_v28 = vld [vmem:[%s9092_s17 + $0xc8] sm:$0xff] }
0x1454   :  { %6658 = vmatprep.subr.bf16.mxu0 %v7535_v10  ;;  %2295 = vmatprep.subr.bf16.mxu1 %v6173_v4  ;;  %v2042_v4 = vld [vmem:[%s9092_s17 + $0xe0] sm:$0xff] }
0x1456   :  { %2296 = vmatpush1.bf16.msra.mxu1 %v6172_v3  ;;  %v2034_v3 = vld [vmem:[%s9092_s17 + $0xa0] sm:$0xff] }
0x1457   :  { %6659 = vmatpush3.bf16.msra.mxu0 %v6942_v31  ;;  %v6174_v31 = vcombine.low %v2031_v1, %v2039_v28 }
0x1458   :  { %2336 = vmatprep.subr.bf16.mxu0 %v6159_v23 }
0x1525   :  { %v1854_v33 = vpop.f32.mrb[36].mxu0 }
0x1526   :  { %v6654_v35 = vpop.f32.mrb[37].mxu0 }
0x1527   :  { %v1857_v36 = vpop.f32.mrb[38].mxu0  ;;  %v2016_v35 = vld [vmem:[%s9092_s17 + $0x10] sm:$0xff] }
0x1528   :  { %v6898_v38 = vpack.i.bf16 %v1857_v36, %v1854_v33  ;;  %v6655_v41 = vpop.f32.mrb[39].mxu0  ;;  %v6175_v33 = vcombine.high %v2031_v1, %v2039_v28  ;;  %v2024_v36 = vld [vmem:[%s9092_s17 + $0x50] sm:$0xff]  ;;  %v2035_v28 = vld [vmem:[%s9092_s17 + $0xa8] sm:$0xff] }
0x1529   :  { %v6161_v41 = vcombine.high %v2016_v35, %v2024_v36  ;;  %v6160_v43 = vcombine.low %v2016_v35, %v2024_v36  ;;  %v6181_v36 = vcombine.high %v2034_v3, %v2042_v4 }
0x152a   :  { %6899 = vrot.lane.b32.xlu1 %v6898_v38, %s7548_s16  ;;  %v2017_v38 = vld [vmem:[%s9092_s17 + $0x18] sm:$0xff] }
0x152b   :  { %v6162_v44 = vcombine.low %v2017_v38, %v2025_v42  ;;  %v6163_v45 = vcombine.high %v2017_v38, %v2025_v42  ;;  %2379 = vmatprep.subr.bf16.mxu1 %v6161_v41  ;;  %v2020_v41 = vld [vmem:[%s9092_s17 + $0x30] sm:$0xff] }
0x152c   :  { %v2028_v42 = vld [vmem:[%s9092_s17 + $0x70] sm:$0xff] }
0x159c   :  { %v6900_v32 = vpop.permute.xlu1 %6899 }
0x159d   :  { %v6902_v50 = vunpack.i.h.bf16 %v6900_v32  ;;  %v6901_v51 = vunpack.i.l.bf16 %v6900_v32 }
0x159f   :  { %v1890_v54 = vsel %vm1047_vm11, %v1888_v53, %v6902_v50  ;;  %v1889_v56 = vsel %vm1047_vm11, %v1887_v52, %v6901_v51 }
0x15a0   :  { %v1891_v57 = vpack.c.bf16 %v1890_v54, %v1889_v56 }
0x15a2   :  { %6661 = vmatmul.mubr.msk.bf16.vlgmr.msra.gmra.mrb[40].mxu0 %vm395_vm3, %v1891_v57 }
0x15a3   :  { %2368 = vmatprep.mubr.bf16.mxu0 %v7534_v0  ;;  %2337 = vmatpush1.bf16.msra.mxu0 %v6158_v29  ;;  %v2027_v29 = vld [vmem:[%s9092_s17 + $0x68] sm:$0xff] }
0x15a4   :  { %2338 = vmatprep.subr.bf16.mxu0 %v6175_v33  ;;  %v6167_v1 = vcombine.high %v2019_v27, %v2027_v29  ;;  %v6164_v33 = vcombine.low %v2018_v40, %v2026_v26  ;;  %v6166_v35 = vcombine.low %v2019_v27, %v2027_v29  ;;  %v8410_v29 = vsub.s32 2, %v7937_v55 }
0x15a7   :  { %2339 = vmatpush1.bf16.msra.mxu0 %v6174_v31  ;;  %v2043_v31 = vld [vmem:[%s9092_s17 + $0xe8] sm:$0xff] }
0x15a8   :  { %2422 = vmatprep.subr.bf16.mxu0 %v6163_v45  ;;  %v6183_v38 = vcombine.high %v2035_v28, %v2043_v31  ;;  %v6180_v45 = vcombine.low %v2034_v3, %v2042_v4 }
0x1675   :  { %v1952_v12 = vpop.f32.mrb[40].mxu0 }
0x1676   :  { %v1953_v58 = vadd.f32 %v6152_v14, %v1952_v12  ;;  %v6662_v59 = vpop.f32.mrb[41].mxu0 }
0x1677   :  { %v1955_v61 = vpop.f32.mrb[42].mxu0 }
0x1678   :  { %v8248_v62 = vadd.f32 %v1953_v58, %v8053_v16  ;;  %v1956_v2 = vadd.f32 %v6152_v14, %v1955_v61  ;;  %v6663_v5 = vpop.f32.mrb[43].mxu0  ;;  %v394_v61 = vld [vmem:[#allocation2 + $0x4] sm:$0x3] }
0x167a   :  { %v8251_v6 = vadd.f32 %v1956_v2, %v8056_v20  ;;  %v1961_v7 = vsel %vm395_vm3, %v8248_v62, 0.0  ;;  %v1984_v2 = vrot.slane %v394_v61, %v7940_v60 }
0x167b   :  { %1962 = vadd.xlane.f32.xlu0 %v1961_v7 }
0x167c   :  { %v1964_v8 = vsel %vm395_vm3, %v8251_v6, 0.0 }
0x167d   :  { %1965 = vadd.xlane.f32.xlu1 %v1964_v8  ;;  %v2010_v8 = vrot.slane %v394_v61, %v7944_v63 }
0x1708   :  { %v1963_v19 = vpop.xlane.xlu0 %1962 }
0x1709   :  { %v1967_v9 = vmul.f32 0.03125, %v1963_v19 }
0x170a   :  { %v1966_v11 = vpop.xlane.xlu1 %1965 }
0x170b   :  { %v8258_v13 = vsub.f32 %v8248_v62, %v1967_v9  ;;  %v1968_v16 = vmul.f32 0.03125, %v1966_v11 }
0x170d   :  { %v8261_v15 = vsub.f32 %v8251_v6, %v1968_v16  ;;  %v1971_v20 = vmul.f32 %v8258_v13, %v8258_v13  ;;  %v1985_v7 = vmul.f32 %v1984_v2, %v8258_v13  ;;  %v2041_v13 = vld [vmem:[%s9092_s17 + $0xd8] sm:$0xff] }
0x170f   :  { %v1973_v17 = vsel %vm395_vm3, %v1971_v20, 0.0  ;;  %v1972_v18 = vmul.f32 %v8261_v15, %v8261_v15  ;;  %v1986_v19 = vmul.f32 %v1984_v2, %v8261_v15  ;;  %v2032_v20 = vld [vmem:[%s9092_s17 + $0x90] sm:$0xff] }
0x1710   :  { %1974 = vadd.xlane.f32.xlu0 %v1973_v17  ;;  %v2040_v17 = vld [vmem:[%s9092_s17 + $0xd0] sm:$0xff] }
0x1711   :  { %v1976_v22 = vsel %vm395_vm3, %v1972_v18, 0.0  ;;  %v2033_v18 = vld [vmem:[%s9092_s17 + $0x98] sm:$0xff]  ;;  %v6177_v34 = vcombine.high %v2032_v20, %v2040_v17  ;;  %v6176_v23 = vcombine.low %v2032_v20, %v2040_v17 }
0x1712   :  { %v6179_v25 = vcombine.high %v2033_v18, %v2041_v13  ;;  %v6178_v21 = vcombine.low %v2033_v18, %v2041_v13  ;;  %v2710_v20 = vld [vmem:[#allocation22 + $0xc8] sm:$0xff] }
0x1714   :  { %1977 = vadd.xlane.f32.xlu0 %v1976_v22 }
0x179d   :  { %v1975_v46 = vpop.xlane.xlu0 %1974 }
0x179e   :  { %v1979_v47 = vmul.f32 0.032258064, %v1975_v46  ;;  %v6182_v46 = vcombine.low %v2035_v28, %v2043_v31  ;;  %v8420_v28 = vsub.s32 4, %v7937_v55  ;;  %v8423_v31 = vsub.s32 6, %v7937_v55 }
0x17a0   :  { %7033 = vrsqrt.f32 %v1979_v47  ;;  %vm1989_vm2 = vcmp.eq.f32.partialorder %v1979_v47, inf  ;;  %v1992_v51 = vand.u32 2147483648, %v1979_v47  ;;  %vm1991_vm5 = vcmp.eq.f32.partialorder %v1979_v47, 0.0 }
0x17a1   :  { %v1978_v48 = vpop.xlane.xlu0 %1977 }
0x17a2   :  { %v1980_v49 = vmul.f32 0.032258064, %v1978_v48 }
0x17a4   :  { %7035 = vrsqrt.f32 %v1980_v49  ;;  %vm1996_vm6 = vcmp.eq.f32.partialorder %v1980_v49, inf  ;;  %v1999_v14 = vand.u32 2147483648, %v1980_v49  ;;  %vm1998_vm7 = vcmp.eq.f32.partialorder %v1980_v49, 0.0 }
0x17aa   :  { %v7034_v32 = vpop.eup %7033 }
0x17ab   :  { %v1988_v50 = vmul.f32 %v7034_v32, %v1979_v47  ;;  %v2044_v32 = vld [vmem:[%s9092_s17 + $0xf0] sm:$0xff] }
0x17ad   :  { %v1990_v52 = vsel %vm1989_vm2, %v1979_v47, %v1988_v50  ;;  %v6169_v47 = vcombine.high %v2020_v41, %v2028_v42  ;;  %v2037_v50 = vld [vmem:[%s9092_s17 + $0xb8] sm:$0xff] }
0x17ae   :  { %v7036_v53 = vpop.eup %7035  ;;  %v1993_v54 = vsel %vm1991_vm5, %v1992_v51, %v1990_v52  ;;  %v2045_v51 = vld [vmem:[%s9092_s17 + $0xf8] sm:$0xff]  ;;  %v6168_v52 = vcombine.low %v2020_v41, %v2028_v42 }
0x17af   :  { %v2001_v56 = vadd.f32 1e-06, %v1993_v54  ;;  %v1995_v57 = vmul.f32 %v7036_v53, %v1980_v49  ;;  %v6186_v61 = vcombine.low %v2037_v50, %v2045_v51 }
0x17b1   :  { %7037 = vrcp.f32 %v2001_v56  ;;  %v1997_v12 = vsel %vm1996_vm6, %v1980_v49, %v1995_v57  ;;  %v2036_v49 = vld [vmem:[%s9092_s17 + $0xb0] sm:$0xff]  ;;  %v6187_v56 = vcombine.high %v2037_v50, %v2045_v51 }
0x17b2   :  { %v2000_v58 = vsel %vm1998_vm7, %v1999_v14, %v1997_v12  ;;  %v6185_v54 = vcombine.high %v2036_v49, %v2044_v32  ;;  %v2685_v57 = vld [vmem:[#allocation22] sm:$0xff]  ;;  %v2686_v12 = vld [vmem:[#allocation22 + $0x8] sm:$0xff] }
0x17b3   :  { %v2002_v59 = vadd.f32 1e-06, %v2000_v58  ;;  %v2693_v14 = vld [vmem:[#allocation22 + $0x40] sm:$0xff]  ;;  %v2694_v58 = vld [vmem:[#allocation22 + $0x48] sm:$0xff] }
0x17b4   :  { %v6198_v2 = vcombine.high %v2685_v57, %v2693_v14 }
0x17b5   :  { %7039 = vrcp.f32 %v2002_v59  ;;  %v6184_v59 = vcombine.low %v2036_v49, %v2044_v32 }
0x17bb   :  { %v7038_v5 = vpop.eup %7037 }
0x17bc   :  { %v2004_v9 = vmul.f32 %v7038_v5, %v1985_v7  ;;  %v6200_v5 = vcombine.high %v2686_v12, %v2694_v58  ;;  %v6197_v7 = vcombine.low %v2685_v57, %v2693_v14  ;;  %v8435_v14 = vld [vmem:[#allocation20 + $0x8] sm:$0xff] }
0x17be   :  { %v2011_v15 = vadd.f32 %v2010_v8, %v2004_v9  ;;  %v2709_v9 = vld [vmem:[#allocation22 + $0xc0] sm:$0xff] }
0x17bf   :  { %v7040_v11 = vpop.eup %7039 }
0x17c0   :  { %v2006_v16 = vmul.f32 %v7040_v11, %v1986_v19  ;;  %v2701_v19 = vld [vmem:[#allocation22 + $0x80] sm:$0xff]  ;;  %v2702_v11 = vld [vmem:[#allocation22 + $0x88] sm:$0xff] }
0x17c1   :  { %v6213_v17 = vcombine.low %v2701_v19, %v2709_v9  ;;  %v6215_v18 = vcombine.low %v2702_v11, %v2710_v20  ;;  %v6216_v13 = vcombine.high %v2702_v11, %v2710_v20  ;;  %v8441_v11 = vld [vmem:[#allocation22 + $0x98] sm:$0xff] }
0x17c2   :  { %v2012_v22 = vadd.f32 %v2010_v8, %v2006_v16  ;;  %v6199_v8 = vcombine.low %v2686_v12, %v2694_v58  ;;  %v6214_v16 = vcombine.high %v2701_v19, %v2709_v9 }
0x17c4   :  { %v8321_v24 = vpack.c.bf16 %v2012_v22, %v2011_v15  ;;  %v8393_v15 = vld [vmem:[#allocation22 + $0x10] sm:$0xff] }
0x17c5   :  { %v8395_v22 = vld [vmem:[#allocation22 + $0x50] sm:$0xff] }
0x17c6   :  { %6188 = vmatmul.mubr.msk.bf16.vlgmr.msra.gmra.mrb[44].mxu1 %vm395_vm3, %v8321_v24  ;;  %6189 = vmatmul.mubr.msk.bf16.vlgmr.msra.gmra.mrb[44].mxu0 %vm395_vm3, %v8321_v24  ;;  %v6201_v40 = vcombine.low %v8393_v15, %v8395_v22 }
0x17c7   :  { %2380 = vmatpush1.bf16.msra.mxu1 %v6160_v43  ;;  %2423 = vmatpush1.bf16.msra.mxu0 %v6162_v44  ;;  %v2021_v43 = vld [vmem:[%s9092_s17 + $0x38] sm:$0xff] }
0x17c8   :  { %2381 = vmatprep.subr.bf16.mxu1 %v6177_v34  ;;  %2424 = vmatprep.subr.bf16.mxu0 %v6179_v25  ;;  %v2029_v44 = vld [vmem:[%s9092_s17 + $0x78] sm:$0xff]  ;;  %v6202_v34 = vcombine.high %v8393_v15, %v8395_v22  ;;  %v8401_v25 = vld [vmem:[#allocation22 + $0x58] sm:$0xff] }
0x17c9   :  { %2411 = vmatprep.mubr.bf16.mxu1 %v7534_v0  ;;  %2454 = vmatprep.mubr.bf16.mxu0 %v7534_v0  ;;  %v6171_v48 = vcombine.high %v2021_v43, %v2029_v44  ;;  %v6170_v53 = vcombine.low %v2021_v43, %v2029_v44 }
0x17cb   :  { %2382 = vmatpush1.bf16.msra.mxu1 %v6176_v23  ;;  %2425 = vmatpush1.bf16.msra.mxu0 %v6178_v21  ;;  %v2046_v23 = vld [vmem:[#allocation20] sm:$0xff]  ;;  %v8413_v21 = vsub.s32 3, %v7937_v55 }
0x17cc   :  { %2465 = vmatprep.subr.bf16.mxu1 %v6165_v30  ;;  %2508 = vmatprep.subr.bf16.mxu0 %v6167_v1  ;;  %v2053_v30 = vrot.slane %v2046_v23, %v7940_v60  ;;  %v2061_v1 = vrot.slane %v2046_v23, %v8410_v29  ;;  %v2057_v3 = vrot.slane %v2046_v23, %v7944_v63 }
0x17cd   :  { %v2065_v4 = vrot.slane %v2046_v23, %v8413_v21 }
0x17ce   :  { %6190 = vmatmul.mubr.msk.bf16.vlgmr.msra.gmra.mrb[48].mxu1 %vm395_vm3, %v8321_v24  ;;  %6191 = vmatmul.mubr.msk.bf16.vlgmr.msra.gmra.mrb[48].mxu0 %vm395_vm3, %v8321_v24 }
0x17cf   :  { %2466 = vmatpush1.bf16.msra.mxu1 %v6164_v33  ;;  %2509 = vmatpush1.bf16.msra.mxu0 %v6166_v35 }
0x17d0   :  { %2467 = vmatprep.subr.bf16.mxu1 %v6181_v36  ;;  %2510 = vmatprep.subr.bf16.mxu0 %v6183_v38  ;;  %v8426_v36 = vsub.s32 5, %v7937_v55  ;;  %v8429_v38 = vsub.s32 7, %v7937_v55 }
0x17d1   :  { %2497 = vmatprep.mubr.bf16.mxu1 %v7534_v0  ;;  %2540 = vmatprep.mubr.bf16.mxu0 %v7534_v0 }
0x17d2   :  { %v2073_v55 = vrot.slane %v2046_v23, %v8426_v36  ;;  %v2081_v57 = vrot.slane %v2046_v23, %v8429_v38 }
0x17d3   :  { %2468 = vmatpush1.bf16.msra.mxu1 %v6180_v45  ;;  %2511 = vmatpush1.bf16.msra.mxu0 %v6182_v46 }
0x17d4   :  { %2551 = vmatprep.subr.bf16.mxu1 %v6169_v47  ;;  %2594 = vmatprep.subr.bf16.mxu0 %v6171_v48 }
0x17d6   :  { %6192 = vmatmul.mubr.msk.bf16.vlgmr.msra.gmra.mrb[52].mxu1 %vm395_vm3, %v8321_v24  ;;  %6193 = vmatmul.mubr.msk.bf16.vlgmr.msra.gmra.mrb[52].mxu0 %vm395_vm3, %v8321_v24 }
0x17d7   :  { %2552 = vmatpush1.bf16.msra.mxu1 %v6168_v52  ;;  %2595 = vmatpush1.bf16.msra.mxu0 %v6170_v53  ;;  %v2069_v52 = vrot.slane %v2046_v23, %v8420_v28  ;;  %v2077_v53 = vrot.slane %v2046_v23, %v8423_v31  ;;  %v2085_v23 = vrot.slane %v8435_v14, %v7940_v60 }
0x17d8   :  { %2553 = vmatprep.subr.bf16.mxu1 %v6185_v54  ;;  %2596 = vmatprep.subr.bf16.mxu0 %v6187_v56 }
0x17d9   :  { %2583 = vmatprep.mubr.bf16.mxu1 %v7534_v0  ;;  %2626 = vmatprep.mubr.bf16.mxu0 %v7534_v0 }
0x17db   :  { %2554 = vmatpush1.bf16.msra.mxu1 %v6184_v59  ;;  %2597 = vmatpush1.bf16.msra.mxu0 %v6186_v61 }
0x17dc   :  { %2884 = vmatprep.subr.bf16.mxu1 %v6198_v2  ;;  %2925 = vmatprep.subr.bf16.mxu0 %v6200_v5  ;;  %v8437_v2 = vld [vmem:[#allocation22 + $0x90] sm:$0xff] }
0x17dd   :  { %v8439_v5 = vld [vmem:[#allocation22 + $0xd0] sm:$0xff] }
0x17de   :  { %6194 = vmatmul.mubr.msk.bf16.vlgmr.msra.gmra.mrb[56].mxu1 %vm395_vm3, %v8321_v24  ;;  %6195 = vmatmul.mubr.msk.bf16.vlgmr.msra.gmra.mrb[56].mxu0 %vm395_vm3, %v8321_v24  ;;  %v8397_v24 = vld [vmem:[#allocation22 + $0x18] sm:$0xff] }
0x17df   :  { %v6203_v26 = vcombine.low %v8397_v24, %v8401_v25  ;;  %v6204_v27 = vcombine.high %v8397_v24, %v8401_v25  ;;  %v8469_v24 = vld [vmem:[#allocation22 + $0x68] sm:$0xff] }
0x17e4   :  { %2885 = vmatpush1.bf16.xpose.msra.mxu1 %v6197_v7  ;;  %2926 = vmatpush1.bf16.xpose.msra.mxu0 %v6199_v8 }
0x17e5   :  { %2886 = vmatprep.subr.bf16.mxu1 %v6214_v16  ;;  %2927 = vmatprep.subr.bf16.mxu0 %v6216_v13  ;;  %v8443_v16 = vld [vmem:[#allocation22 + $0xd8] sm:$0xff] }
0x17ec   :  { %2887 = vmatpush1.bf16.xpose.msra.mxu1 %v6213_v17  ;;  %2928 = vmatpush1.bf16.xpose.msra.mxu0 %v6215_v18 }
0x17ed   :  { %2966 = vmatprep.subr.bf16.mxu1 %v6202_v34  ;;  %3007 = vmatprep.subr.bf16.mxu0 %v6204_v27 }
0x1899   :  { %v2327_v33 = vpop.f32.mrb[44].mxu1  ;;  %v2370_v35 = vpop.f32.mrb[44].mxu0 }
0x189a   :  { %v2328_v41 = vadd.f32 %v2327_v33, %v2053_v30  ;;  %v2371_v42 = vadd.f32 %v2370_v35, %v2061_v1  ;;  %v2329_v43 = vpop.f32.mrb[45].mxu1  ;;  %v2372_v44 = vpop.f32.mrb[45].mxu0  ;;  %v6218_v33 = vcombine.high %v8437_v2, %v8439_v5  ;;  %v6220_v35 = vcombine.high %v8441_v11, %v8443_v16 }
0x189b   :  { %v2330_v45 = vadd.f32 %v2329_v43, %v2057_v3  ;;  %v2373_v46 = vadd.f32 %v2372_v44, %v2065_v4  ;;  %v2331_v47 = vpop.f32.mrb[46].mxu1  ;;  %v2374_v48 = vpop.f32.mrb[46].mxu0 }
0x189c   :  { %v2332_v49 = vadd.f32 %v2331_v47, %v2053_v30  ;;  %v2375_v32 = vadd.f32 %v2374_v48, %v2061_v1  ;;  %v2333_v50 = vpop.f32.mrb[47].mxu1  ;;  %v2376_v51 = vpop.f32.mrb[47].mxu0  ;;  %v2637_v12 = vmax.f32 %v2328_v41, 0.0  ;;  %v2639_v58 = vmax.f32 %v2371_v42, 0.0 }
0x189d   :  { %v2334_v54 = vadd.f32 %v2333_v50, %v2057_v3  ;;  %v2377_v56 = vadd.f32 %v2376_v51, %v2065_v4  ;;  %v2638_v7 = vmax.f32 %v2330_v45, 0.0  ;;  %v2640_v8 = vmax.f32 %v2373_v46, 0.0 }
0x189e   :  { %v2653_v59 = vmax.f32 %v2332_v49, 0.0  ;;  %v2655_v61 = vmax.f32 %v2375_v32, 0.0  ;;  %v2093_v45 = vrot.slane %v8435_v14, %v8410_v29  ;;  %v2089_v32 = vrot.slane %v8435_v14, %v7944_v63 }
0x189f   :  { %v2654_v19 = vmax.f32 %v2334_v54, 0.0  ;;  %v2656_v9 = vmax.f32 %v2377_v56, 0.0 }
0x18a0   :  { %v2669_v20 = vpack.c.bf16 %v2653_v59, %v2637_v12  ;;  %v2671_v17 = vpack.c.bf16 %v2655_v61, %v2639_v58  ;;  %v8463_v58 = vld [vmem:[#allocation22 + $0x20] sm:$0xff]  ;;  %v8467_v59 = vld [vmem:[#allocation22 + $0x28] sm:$0xff] }
0x18a1   :  { %v2670_v18 = vpack.c.bf16 %v2654_v19, %v2638_v7  ;;  %v2672_v13 = vpack.c.bf16 %v2656_v9, %v2640_v8  ;;  %v2413_v34 = vpop.f32.mrb[48].mxu1  ;;  %v2456_v27 = vpop.f32.mrb[48].mxu0  ;;  %v6217_v9 = vcombine.low %v8437_v2, %v8439_v5  ;;  %v2101_v2 = vrot.slane %v8435_v14, %v8420_v28 }
0x18a2   :  { %v2414_v30 = vadd.f32 %v2413_v34, %v2069_v52  ;;  %v2457_v1 = vadd.f32 %v2456_v27, %v2077_v53  ;;  %v2415_v3 = vpop.f32.mrb[49].mxu1  ;;  %v2458_v4 = vpop.f32.mrb[49].mxu0 }
0x18a3   :  { %v2416_v41 = vadd.f32 %v2415_v3, %v2073_v55  ;;  %v2459_v42 = vadd.f32 %v2458_v4, %v2081_v57  ;;  %v2417_v43 = vpop.f32.mrb[50].mxu1  ;;  %v2460_v44 = vpop.f32.mrb[50].mxu0  ;;  %2916 = vmatprep.mubr.bf16.mxu1 %v2670_v18  ;;  %2957 = vmatprep.mubr.bf16.mxu0 %v2672_v13 }
0x18a4   :  { %v2418_v46 = vadd.f32 %v2417_v43, %v2069_v52  ;;  %v2461_v47 = vadd.f32 %v2460_v44, %v2077_v53  ;;  %v2419_v48 = vpop.f32.mrb[51].mxu1  ;;  %v2462_v49 = vpop.f32.mrb[51].mxu0  ;;  %2917 = vmatmul.mubr.bf16.vlgmr.msra.gmra.mrb[60].mxu1 %v2669_v20  ;;  %2958 = vmatmul.mubr.bf16.vlgmr.msra.gmra.mrb[60].mxu0 %v2671_v17  ;;  %v2097_v52 = vrot.slane %v8435_v14, %v8413_v21  ;;  %v2641_v53 = vmax.f32 %v2414_v30, 0.0 }
0x18a5   :  { %v2420_v50 = vadd.f32 %v2419_v48, %v2073_v55  ;;  %v2463_v51 = vadd.f32 %v2462_v49, %v2081_v57  ;;  %2967 = vmatpush1.bf16.xpose.msra.mxu1 %v6201_v40  ;;  %3008 = vmatpush1.bf16.xpose.msra.mxu0 %v6203_v26  ;;  %v2643_v54 = vmax.f32 %v2457_v1, 0.0  ;;  %v8465_v55 = vld [vmem:[#allocation22 + $0x60] sm:$0xff]  ;;  %v2642_v57 = vmax.f32 %v2416_v41, 0.0 }
0x18a6   :  { %v2657_v56 = vmax.f32 %v2418_v46, 0.0  ;;  %v2659_v12 = vmax.f32 %v2461_v47, 0.0  ;;  %2968 = vmatprep.subr.bf16.mxu1 %v6218_v33  ;;  %3009 = vmatprep.subr.bf16.mxu0 %v6220_v35  ;;  %v2644_v15 = vmax.f32 %v2459_v42, 0.0  ;;  %v6219_v20 = vcombine.low %v8441_v11, %v8443_v16 }
0x18a7   :  { %v2658_v22 = vmax.f32 %v2420_v50, 0.0  ;;  %v2660_v40 = vmax.f32 %v2463_v51, 0.0  ;;  %v6206_v27 = vcombine.high %v8463_v58, %v8465_v55  ;;  %v6208_v30 = vcombine.high %v8467_v59, %v8469_v24 }
0x18a8   :  { %v8471_v25 = vpack.c.bf16 %v2657_v56, %v2641_v53  ;;  %v8473_v26 = vpack.c.bf16 %v2659_v12, %v2643_v54  ;;  %v2109_v41 = vrot.slane %v8435_v14, %v8423_v31  ;;  %v2105_v42 = vrot.slane %v8435_v14, %v8426_v36  ;;  %v2705_v54 = vld [vmem:[#allocation22 + $0xa0] sm:$0xff]  ;;  %v2706_v12 = vld [vmem:[#allocation22 + $0xa8] sm:$0xff] }
0x18a9   :  { %v2674_v61 = vpack.c.bf16 %v2658_v22, %v2642_v57  ;;  %v2676_v7 = vpack.c.bf16 %v2660_v40, %v2644_v15  ;;  %v2499_v8 = vpop.f32.mrb[52].mxu1  ;;  %v2542_v19 = vpop.f32.mrb[52].mxu0  ;;  %v2113_v46 = vrot.slane %v8435_v14, %v8429_v38  ;;  %v2714_v57 = vld [vmem:[#allocation22 + $0xe8] sm:$0xff] }
0x18aa   :  { %v2500_v17 = vadd.f32 %v2499_v8, %v2085_v23  ;;  %v2543_v18 = vadd.f32 %v2542_v19, %v2093_v45  ;;  %v2501_v13 = vpop.f32.mrb[53].mxu1  ;;  %v2544_v34 = vpop.f32.mrb[53].mxu0 }
0x18ab   :  { %v2502_v1 = vadd.f32 %v2501_v13, %v2089_v32  ;;  %v2545_v3 = vadd.f32 %v2544_v34, %v2097_v52  ;;  %v2503_v4 = vpop.f32.mrb[54].mxu1  ;;  %v2546_v33 = vpop.f32.mrb[54].mxu0  ;;  %2998 = vmatprep.mubr.bf16.mxu1 %v2674_v61  ;;  %3039 = vmatprep.mubr.bf16.mxu0 %v2676_v7  ;;  %v6205_v61 = vcombine.low %v8463_v58, %v8465_v55 }
0x18ac   :  { %v2504_v5 = vadd.f32 %v2503_v4, %v2085_v23  ;;  %v2547_v11 = vadd.f32 %v2546_v33, %v2093_v45  ;;  %v2505_v16 = vpop.f32.mrb[55].mxu1  ;;  %v2548_v35 = vpop.f32.mrb[55].mxu0  ;;  %v2645_v47 = vmax.f32 %v2500_v17, 0.0  ;;  %v2647_v48 = vmax.f32 %v2543_v18, 0.0 }
0x18ad   :  { %v2506_v43 = vadd.f32 %v2505_v16, %v2089_v32  ;;  %v2549_v44 = vadd.f32 %v2548_v35, %v2097_v52  ;;  %2969 = vmatpush1.bf16.xpose.msra.mxu1 %v6217_v9  ;;  %3010 = vmatpush1.bf16.xpose.msra.mxu0 %v6219_v20  ;;  %v2646_v45 = vmax.f32 %v2502_v1, 0.0  ;;  %v2648_v50 = vmax.f32 %v2545_v3, 0.0  ;;  %v2713_v52 = vld [vmem:[#allocation22 + $0xe0] sm:$0xff] }
0x18ae   :  { %v2661_v49 = vmax.f32 %v2504_v5, 0.0  ;;  %v2663_v23 = vmax.f32 %v2547_v11, 0.0  ;;  %3048 = vmatprep.subr.bf16.mxu1 %v6206_v27  ;;  %3089 = vmatprep.subr.bf16.mxu0 %v6208_v30  ;;  %v6207_v20 = vcombine.low %v8467_v59, %v8469_v24  ;;  %v6222_v27 = vcombine.high %v2705_v54, %v2713_v52 }
0x18af   :  { %v2662_v51 = vmax.f32 %v2506_v43, 0.0  ;;  %v2664_v53 = vmax.f32 %v2549_v44, 0.0  ;;  %v6224_v30 = vcombine.high %v2706_v12, %v2714_v57 }
0x18b0   :  { %v8491_v56 = vpack.c.bf16 %v2661_v49, %v2645_v47  ;;  %v8493_v32 = vpack.c.bf16 %v2663_v23, %v2647_v48  ;;  %v6221_v49 = vcombine.low %v2705_v54, %v2713_v52  ;;  %v6223_v23 = vcombine.low %v2706_v12, %v2714_v57 }
0x18b1   :  { %v2678_v15 = vpack.c.bf16 %v2662_v51, %v2646_v45  ;;  %v2680_v14 = vpack.c.bf16 %v2664_v53, %v2648_v50  ;;  %v2585_v22 = vpop.f32.mrb[56].mxu1  ;;  %v2628_v40 = vpop.f32.mrb[56].mxu0  ;;  %v2707_v51 = vld [vmem:[#allocation22 + $0xb0] sm:$0xff] }
0x18b2   :  { %v2586_v7 = vadd.f32 %v2585_v22, %v2101_v2  ;;  %v2629_v8 = vadd.f32 %v2628_v40, %v2109_v41  ;;  %v2587_v19 = vpop.f32.mrb[57].mxu1  ;;  %v2630_v9 = vpop.f32.mrb[57].mxu0  ;;  %v2715_v53 = vld [vmem:[#allocation22 + $0xf0] sm:$0xff]  ;;  %v2716_v22 = vld [vmem:[#allocation22 + $0xf8] sm:$0xff] }
0x18b3   :  { %v2588_v17 = vadd.f32 %v2587_v19, %v2105_v42  ;;  %v2631_v18 = vadd.f32 %v2630_v9, %v2113_v46  ;;  %v2589_v13 = vpop.f32.mrb[58].mxu1  ;;  %v2632_v34 = vpop.f32.mrb[58].mxu0  ;;  %v6225_v54 = vcombine.low %v2707_v51, %v2715_v53 }
0x18b4   :  { %v2590_v1 = vadd.f32 %v2589_v13, %v2101_v2  ;;  %v2633_v3 = vadd.f32 %v2632_v34, %v2109_v41  ;;  %2999 = vmatmul.mubr.bf16.vlgmr.msra.gmra.mrb[64].mxu1 %v8471_v25  ;;  %3040 = vmatmul.mubr.bf16.vlgmr.msra.gmra.mrb[64].mxu0 %v8473_v26  ;;  %v2591_v58 = vpop.f32.mrb[59].mxu1  ;;  %v2634_v55 = vpop.f32.mrb[59].mxu0  ;;  %v2649_v5 = vmax.f32 %v2586_v7, 0.0  ;;  %v2651_v59 = vmax.f32 %v2629_v8, 0.0  ;;  %v2691_v25 = vld [vmem:[#allocation22 + $0x30] sm:$0xff] }
0x18b5   :  { %v2592_v4 = vadd.f32 %v2591_v58, %v2105_v42  ;;  %v2635_v33 = vadd.f32 %v2634_v55, %v2113_v46  ;;  %3049 = vmatpush1.bf16.xpose.msra.mxu1 %v6205_v61  ;;  %3080 = vmatprep.mubr.bf16.mxu1 %v2678_v15  ;;  %v2650_v16 = vmax.f32 %v2588_v17, 0.0  ;;  %v2652_v35 = vmax.f32 %v2631_v18, 0.0  ;;  %v2699_v26 = vld [vmem:[#allocation22 + $0x70] sm:$0xff]  ;;  %v2692_v42 = vld [vmem:[#allocation22 + $0x38] sm:$0xff] }
0x18b6   :  { %v2665_v24 = vmax.f32 %v2590_v1, 0.0  ;;  %v2667_v11 = vmax.f32 %v2633_v3, 0.0  ;;  %3090 = vmatpush1.bf16.xpose.msra.mxu0 %v6207_v20  ;;  %3121 = vmatprep.mubr.bf16.mxu0 %v2680_v14  ;;  %v2700_v46 = vld [vmem:[#allocation22 + $0x78] sm:$0xff]  ;;  %v6210_v45 = vcombine.high %v2691_v25, %v2699_v26  ;;  %v6209_v15 = vcombine.low %v2691_v25, %v2699_v26 }
0x18b7   :  { %v2666_v2 = vmax.f32 %v2592_v4, 0.0  ;;  %v2668_v41 = vmax.f32 %v2635_v33, 0.0  ;;  %3050 = vmatprep.subr.bf16.mxu1 %v6222_v27  ;;  %3091 = vmatprep.subr.bf16.mxu0 %v6224_v30  ;;  %v6212_v50 = vcombine.high %v2692_v42, %v2700_v46  ;;  %v2708_v14 = vld [vmem:[#allocation22 + $0xb8] sm:$0xff]  ;;  %v6211_v40 = vcombine.low %v2692_v42, %v2700_v46 }
0x18b8   :  { %v2681_v43 = vpack.c.bf16 %v2665_v24, %v2649_v5  ;;  %v2683_v44 = vpack.c.bf16 %v2667_v11, %v2651_v59  ;;  %v6226_v61 = vcombine.high %v2707_v51, %v2715_v53  ;;  %v6228_v7 = vcombine.high %v2708_v14, %v2716_v22 }
0x18b9   :  { %v2682_v47 = vpack.c.bf16 %v2666_v2, %v2650_v16  ;;  %v2684_v48 = vpack.c.bf16 %v2668_v41, %v2652_v35  ;;  %v6227_v52 = vcombine.low %v2708_v14, %v2716_v22 }
0x18bd   :  { %3051 = vmatpush1.bf16.xpose.msra.mxu1 %v6221_v49 }
0x18be   :  { %3092 = vmatpush1.bf16.xpose.msra.mxu0 %v6223_v23  ;;  %3130 = vmatprep.subr.bf16.mxu1 %v6210_v45 }
0x18bf   :  { %3171 = vmatprep.subr.bf16.mxu0 %v6212_v50 }
0x18c4   :  { %3081 = vmatmul.mubr.bf16.vlgmr.msra.gmra.mrb[68].mxu1 %v8491_v56  ;;  %v6196_v56 = vld [vmem:[#allocation23] ss:$0 sm:$0xff] }
0x18c5   :  { %3122 = vmatmul.mubr.bf16.vlgmr.msra.gmra.mrb[68].mxu0 %v8493_v32  ;;  %3131 = vmatpush1.bf16.xpose.msra.mxu1 %v6209_v15 }
0x18c6   :  { %3162 = vmatprep.mubr.bf16.mxu1 %v2682_v47  ;;  %3172 = vmatpush1.bf16.xpose.msra.mxu0 %v6211_v40 }
0x18c7   :  { %3203 = vmatprep.mubr.bf16.mxu0 %v2684_v48  ;;  %3132 = vmatprep.subr.bf16.mxu1 %v6226_v61 }
0x18c8   :  { %3173 = vmatprep.subr.bf16.mxu0 %v6228_v7 }
0x18cd   :  { %3133 = vmatpush1.bf16.xpose.msra.mxu1 %v6225_v54 }
0x18ce   :  { %3174 = vmatpush1.bf16.xpose.msra.mxu0 %v6227_v52  ;;  %6664 = vmatprep.subr.bf16.mxu1 %v7535_v10 }
0x18cf   :  { %6672 = vmatprep.subr.bf16.mxu0 %v7535_v10 }
0x18d4   :  { %3163 = vmatmul.mubr.bf16.vlgmr.msra.gmra.mrb[72].mxu1 %v2681_v43 }
0x18d5   :  { %3204 = vmatmul.mubr.bf16.vlgmr.msra.gmra.mrb[72].mxu0 %v2683_v44  ;;  %6668 = vmatprep.mubr.msk.bf16.mxu1 %vm7536_vm4, %v7535_v10 }
0x18d6   :  { %6674 = vmatprep.mubr.msk.bf16.mxu0 %vm7536_vm4, %v7535_v10 }
0x1977   :  { %v2918_v32 = vpop.f32.mrb[60].mxu1  ;;  %v2959_v12 = vpop.f32.mrb[60].mxu0 }
0x1978   :  { %v2919_v57 = vadd.f32 %v6196_v56, %v2918_v32  ;;  %v2920_v8 = vpop.f32.mrb[61].mxu1  ;;  %v2961_v19 = vpop.f32.mrb[61].mxu0 }
0x1979   :  { %v2921_v9 = vpop.f32.mrb[62].mxu1  ;;  %v2962_v20 = vpop.f32.mrb[62].mxu0 }
0x197a   :  { %v2960_v17 = vadd.f32 %v2959_v12, %v2919_v57  ;;  %v2922_v18 = vadd.f32 %v6196_v56, %v2921_v9  ;;  %v2923_v13 = vpop.f32.mrb[63].mxu1  ;;  %v2964_v34 = vpop.f32.mrb[63].mxu0 }
0x197b   :  { %v6943_v34 = vld [vmem:[#allocation5 + $0x10] sm:$0xff]  }
0x197c   :  { %v2963_v27 = vadd.f32 %v2962_v20, %v2922_v18  ;;  %6665 = vmatpush3.bf16.msra.mxu1 %v6943_v34 }
0x197d   :  { %6666 = vmatprep.subr.bf16.mxu1 %v7535_v10 }
0x1987   :  { %v3000_v30 = vpop.f32.mrb[64].mxu1  ;;  %v3041_v1 = vpop.f32.mrb[64].mxu0 }
0x1988   :  { %v3001_v3 = vadd.f32 %v3000_v30, %v2960_v17  ;;  %v3002_v58 = vpop.f32.mrb[65].mxu1  ;;  %v3043_v55 = vpop.f32.mrb[65].mxu0 }
0x1989   :  { %v3003_v4 = vpop.f32.mrb[66].mxu1  ;;  %v3044_v33 = vpop.f32.mrb[66].mxu0 }
0x198a   :  { %v3042_v5 = vadd.f32 %v3041_v1, %v3001_v3  ;;  %v3004_v59 = vadd.f32 %v3003_v4, %v2963_v27  ;;  %v3005_v24 = vpop.f32.mrb[67].mxu1  ;;  %v3046_v11 = vpop.f32.mrb[67].mxu0  ;;  %v6944_v27 = vld [vmem:[#allocation5 + $0x18] sm:$0xff]  }
0x198b   :  { %6667 = vmatpush3.bf16.msra.mxu1 %v6944_v27 }
0x198c   :  { %v3045_v16 = vadd.f32 %v3044_v33, %v3004_v59  ;;  %6678 = vmatprep.subr.bf16.mxu1 %v7535_v10 }
0x1997   :  { %v3082_v35 = vpop.f32.mrb[68].mxu1 }
0x1998   :  { %v3083_v2 = vadd.f32 %v3082_v35, %v3042_v5  ;;  %v3123_v41 = vpop.f32.mrb[68].mxu0  ;;  %v3084_v25 = vpop.f32.mrb[69].mxu1 }
0x1999   :  { %v3125_v26 = vpop.f32.mrb[69].mxu0  ;;  %v3085_v43 = vpop.f32.mrb[70].mxu1 }
0x199a   :  { %v3124_v44 = vadd.f32 %v3123_v41, %v3083_v2  ;;  %v3086_v42 = vadd.f32 %v3085_v43, %v3045_v16  ;;  %v3126_v46 = vpop.f32.mrb[70].mxu0  ;;  %v3087_v47 = vpop.f32.mrb[71].mxu1  ;;  %v3215_v26 = vld [vmem:[#allocation2 + $0x6] sm:$0x3] }
0x199b   :  { %v3128_v48 = vpop.f32.mrb[71].mxu0  ;;  %v3241_v43 = vrot.slane %v3215_v26, %v7940_v60 }
0x199c   :  { %v3127_v49 = vadd.f32 %v3126_v46, %v3086_v42  ;;  %v3267_v46 = vrot.slane %v3215_v26, %v7944_v63 }
0x19a7   :  { %v3164_v23 = vpop.f32.mrb[72].mxu1 }
0x19a8   :  { %v3165_v45 = vadd.f32 %v3164_v23, %v3124_v44  ;;  %v3205_v50 = vpop.f32.mrb[72].mxu0  ;;  %v3166_v51 = vpop.f32.mrb[73].mxu1 }
0x19a9   :  { %v3207_v53 = vpop.f32.mrb[73].mxu0  ;;  %v3167_v15 = vpop.f32.mrb[74].mxu1 }
0x19aa   :  { %v3206_v14 = vadd.f32 %v3205_v50, %v3165_v45  ;;  %v3168_v22 = vadd.f32 %v3167_v15, %v3127_v49  ;;  %v3208_v40 = vpop.f32.mrb[74].mxu0  ;;  %v3169_v61 = vpop.f32.mrb[75].mxu1  ;;  %v6229_v53 = vld [vmem:[#allocation7 + $0x1] ss:$0 sm:$0xff] }
0x19ab   :  { %v3210_v7 = vpop.f32.mrb[75].mxu0 }
0x19ac   :  { %v8510_v54 = vadd.f32 %v3206_v14, %v8248_v62  ;;  %v3209_v52 = vadd.f32 %v3208_v40, %v3168_v22 }
0x19ae   :  { %v8513_v56 = vadd.f32 %v3209_v52, %v8251_v6  ;;  %v3218_v32 = vsel %vm395_vm3, %v8510_v54, 0.0 }
0x19af   :  { %3219 = vadd.xlane.f32.xlu1 %v3218_v32 }
0x19b0   :  { %v3221_v12 = vsel %vm395_vm3, %v8513_v56, 0.0 }
0x19b1   :  { %3222 = vadd.xlane.f32.xlu0 %v3221_v12 }
0x1a3c   :  { %v3220_v57 = vpop.xlane.xlu1 %3219 }
0x1a3d   :  { %v3224_v8 = vmul.f32 0.03125, %v3220_v57 }
0x1a3e   :  { %v3223_v19 = vpop.xlane.xlu0 %3222 }
0x1a3f   :  { %v3226_v9 = vsub.f32 %v8510_v54, %v3224_v8  ;;  %v3225_v20 = vmul.f32 0.03125, %v3223_v19 }
0x1a41   :  { %v3227_v62 = vsub.f32 %v8513_v56, %v3225_v20  ;;  %v3228_v17 = vmul.f32 %v3226_v9, %v3226_v9  ;;  %v3242_v42 = vmul.f32 %v3241_v43, %v3226_v9 }
0x1a43   :  { %v3230_v6 = vsel %vm395_vm3, %v3228_v17, 0.0  ;;  %v3229_v18 = vmul.f32 %v3227_v62, %v3227_v62  ;;  %v3243_v47 = vmul.f32 %v3241_v43, %v3227_v62 }
0x1a44   :  { %3231 = vadd.xlane.f32.xlu1 %v3230_v6 }
0x1a45   :  { %v3233_v13 = vsel %vm395_vm3, %v3229_v18, 0.0 }
0x1a46   :  { %3234 = vadd.xlane.f32.xlu0 %v3233_v13 }
0x1ad1   :  { %v3232_v30 = vpop.xlane.xlu1 %3231 }
0x1ad2   :  { %v3236_v1 = vmul.f32 0.032258064, %v3232_v30 }
0x1ad3   :  { %v3235_v3 = vpop.xlane.xlu0 %3234 }
0x1ad4   :  { %7041 = vrsqrt.f32 %v3236_v1  ;;  %v3237_v58 = vmul.f32 0.032258064, %v3235_v3  ;;  %vm3246_vm8 = vcmp.eq.f32.partialorder %v3236_v1, inf  ;;  %v3249_v33 = vand.u32 2147483648, %v3236_v1 }
0x1ad5   :  { %vm3248_vm12 = vcmp.eq.f32.partialorder %v3236_v1, 0.0 }
0x1ad6   :  { %7043 = vrsqrt.f32 %v3237_v58  ;;  %vm3253_vm13 = vcmp.eq.f32.partialorder %v3237_v58, inf  ;;  %v3256_v35 = vand.u32 2147483648, %v3237_v58  ;;  %vm3255_vm14 = vcmp.eq.f32.partialorder %v3237_v58, 0.0 }
0x1ade   :  { %v7042_v55 = vpop.eup %7041 }
0x1adf   :  { %v3245_v4 = vmul.f32 %v7042_v55, %v3236_v1 }
0x1ae0   :  { %v7044_v5 = vpop.eup %7043 }
0x1ae1   :  { %v3247_v59 = vsel %vm3246_vm8, %v3236_v1, %v3245_v4  ;;  %v3252_v11 = vmul.f32 %v7044_v5, %v3237_v58  ;;  %v7137_v1 = vld [vmem:[%s9117_s26] sm:$0xff] }
0x1ae2   :  { %v3250_v24 = vsel %vm3248_vm12, %v3249_v33, %v3247_v59  ;;  %v7138_v33 = vld [vmem:[%s9117_s26 + $0x8] sm:$0xff] }
0x1ae3   :  { %v3258_v16 = vadd.f32 1e-06, %v3250_v24  ;;  %v3254_v2 = vsel %vm3253_vm13, %v3237_v58, %v3252_v11 }
0x1ae4   :  { %v3257_v41 = vsel %vm3255_vm14, %v3256_v35, %v3254_v2 }
0x1ae5   :  { %7045 = vrcp.f32 %v3258_v16  ;;  %v3259_v25 = vadd.f32 1e-06, %v3257_v41 }
0x1ae7   :  { %7047 = vrcp.f32 %v3259_v25 }
0x1aef   :  { %v7046_v44 = vpop.eup %7045 }
0x1af0   :  { %v3261_v48 = vmul.f32 %v7046_v44, %v3242_v42 }
0x1af1   :  { %v7048_v49 = vpop.eup %7047 }
0x1af2   :  { %v3263_v23 = vmul.f32 %v7048_v49, %v3243_v47  ;;  %v3268_v45 = vadd.f32 %v3267_v46, %v3261_v48 }
0x1af4   :  { %v3269_v50 = vadd.f32 %v3267_v46, %v3263_v23 }
0x1af6   :  { %v3270_v51 = vpack.c.bf16 %v3269_v50, %v3268_v45 }
0x1af8   :  { %6669 = vmatmul.mubr.msk.bf16.vlgmr.msra.gmra.mrb[76].mxu1 %vm395_vm3, %v3270_v51 }
0x1af9   :  { %6680 = vmatprep.mubr.msk.bf16.mxu1 %vm7536_vm4, %v7535_v10 }
0x1bcb   :  { %v3333_v15 = vpop.f32.mrb[76].mxu1 }
0x1bcc   :  { %v6670_v14 = vpop.f32.mrb[77].mxu1  ;;  %v3334_v40 = vadd.f32 %v6229_v53, %v3333_v15 }
0x1bcd   :  { %v3336_v22 = vpop.f32.mrb[78].mxu1 }
0x1bce   :  { %v3337_v61 = vadd.f32 %v6229_v53, %v3336_v22  ;;  %v6671_v7 = vpop.f32.mrb[79].mxu1 }
0x1bd0   :  { %v8530_v52 = vpack.c.bf16 %v3337_v61, %v3334_v40 }
0x1bd2   :  { %3467 = vrot.lane.b32.xlu0 %v8530_v52, %s7539_s5  ;;  %3342 = vrot.lane.b32.xlu1 %v8530_v52, %s7538_s19 }
0x1bd6   :  { %3590 = vrot.lane.b32.xlu0 %v8530_v52, %s7537_s10  ;;  %3465 = vrot.lane.b32.xlu1 %v8530_v52, %s7540_s21 }
0x1bda   :  { %3715 = vrot.lane.b32.xlu0 %v8530_v52, %s7543_s3  ;;  %3592 = vrot.lane.b32.xlu1 %v8530_v52, %s7541_s18 }
0x1bde   :  { %3717 = vrot.lane.b32.xlu1 %v8530_v52, %s7542_s14 }
0x1c44   :  { %v3343_v32 = vpop.permute.xlu1 %3342  ;;  %v3468_v57 = vpop.permute.xlu0 %3467 }
0x1c45   :  { %v3348_v12 = vsel %vm521_vm9, %v3343_v32, 0  ;;  %v3473_v19 = vsel %vm521_vm9, %v3468_v57, 0 }
0x1c46   :  { %6673 = vmatpush3.bf16.xpose.msra.mxu0 %v3348_v12 }
0x1c47   :  { %6684 = vmatprep.subr.bf16.mxu0 %v7535_v10 }
0x1c48   :  { %v3466_v8 = vpop.permute.xlu1 %3465  ;;  %v3591_v17 = vpop.permute.xlu0 %3590 }
0x1c4c   :  { %v3593_v9 = vpop.permute.xlu1 %3592  ;;  %v3716_v18 = vpop.permute.xlu0 %3715 }
0x1c4d   :  { %6675 = vmatmul.mubr.msk.bf16.vlgmr.msra.gmra.mrb[76].mxu0 %vm521_vm9, %v8530_v52  ;;  %v3598_v20 = vsel %vm521_vm9, %v3593_v9, 0 }
0x1c4e   :  { %6685 = vmatpush3.bf16.xpose.msra.mxu0 %v3473_v19  ;;  %6686 = vmatprep.mubr.msk.bf16.mxu0 %vm7536_vm4, %v7535_v10 }
0x1c4f   :  { %6696 = vmatprep.subr.bf16.mxu0 %v7535_v10 }
0x1c50   :  { %v3718_v62 = vpop.permute.xlu1 %3717 }
0x1c51   :  { %v3723_v6 = vsel %vm521_vm9, %v3718_v62, 0 }
0x1c55   :  { %6687 = vmatmul.mubr.msk.bf16.vlgmr.msra.gmra.mrb[80].mxu0 %vm521_vm9, %v3466_v8 }
0x1c56   :  { %6697 = vmatpush3.bf16.xpose.msra.mxu0 %v3598_v20  ;;  %6698 = vmatprep.mubr.msk.bf16.mxu0 %vm7536_vm4, %v7535_v10 }
0x1c57   :  { %6708 = vmatprep.subr.bf16.mxu0 %v7535_v10 }
0x1c5d   :  { %6699 = vmatmul.mubr.msk.bf16.vlgmr.msra.gmra.mrb[84].mxu0 %vm521_vm9, %v3591_v17 }
0x1c5e   :  { %6709 = vmatpush3.bf16.xpose.msra.mxu0 %v3723_v6  ;;  %6710 = vmatprep.mubr.msk.bf16.mxu0 %vm7536_vm4, %v7535_v10 }
0x1c5f   :  { %6720 = vmatprep.subr.bf16.mxu0 %v7535_v10 }
0x1c65   :  { %6711 = vmatmul.mubr.msk.bf16.vlgmr.msra.gmra.mrb[88].mxu0 %vm521_vm9, %v3716_v18 }
0x1c66   :  { %6724 = vmatprep.mubr.msk.bf16.mxu0 %vm7536_vm4, %v7535_v10 }
0x1d20   :  { %v3384_v13 = vpop.f32.mrb[76].mxu0 }
0x1d21   :  { %v3391_v34 = vmul.f32 0.35355338, %v3384_v13  ;;  %v6676_v27 = vpop.f32.mrb[77].mxu0 }
0x1d22   :  { %v3387_v30 = vpop.f32.mrb[78].mxu0 }
0x1d23   :  { %v3393_v3 = vadd.f32 %v7137_v1, %v3391_v34  ;;  %v3392_v58 = vmul.f32 0.35355338, %v3387_v30  ;;  %v6677_v55 = vpop.f32.mrb[79].mxu0 }
0x1d25   :  { %v3395_v4 = vsel %vm573_vm10, %v3393_v3, -inf  ;;  %v3394_v5 = vadd.f32 %v7138_v33, %v3392_v58 }
0x1d26   :  { %3396 = vmax.xlane.f32.xlu1 %v3395_v4 }
0x1d27   :  { %v3398_v59 = vsel %vm573_vm10, %v3394_v5, -inf }
0x1d28   :  { %3399 = vmax.xlane.f32.xlu0 %v3398_v59  ;;  %v3509_v24 = vpop.f32.mrb[80].mxu0 }
0x1d29   :  { %v3516_v11 = vmul.f32 0.35355338, %v3509_v24  ;;  %v6688_v16 = vpop.f32.mrb[81].mxu0 }
0x1d2a   :  { %v3512_v35 = vpop.f32.mrb[82].mxu0 }
0x1d2b   :  { %v3517_v2 = vmul.f32 0.35355338, %v3512_v35  ;;  %v6689_v41 = vpop.f32.mrb[83].mxu0  ;;  %v3518_v25 = vadd.f32 %v7137_v1, %v3516_v11 }
0x1d2d   :  { %v3519_v26 = vadd.f32 %v7138_v33, %v3517_v2  ;;  %v3520_v43 = vsel %vm573_vm10, %v3518_v25, -inf }
0x1d2e   :  { %3521 = vmax.xlane.f32.xlu0 %v3520_v43 }
0x1d2f   :  { %v3523_v44 = vsel %vm573_vm10, %v3519_v26, -inf }
0x1d30   :  { %3524 = vmax.xlane.f32.xlu1 %v3523_v44  ;;  %v3634_v42 = vpop.f32.mrb[84].mxu0 }
0x1d31   :  { %v3641_v46 = vmul.f32 0.35355338, %v3634_v42  ;;  %v6700_v47 = vpop.f32.mrb[85].mxu0 }
0x1d32   :  { %v3637_v48 = vpop.f32.mrb[86].mxu0 }
0x1d33   :  { %v3642_v49 = vmul.f32 0.35355338, %v3637_v48  ;;  %v6701_v23 = vpop.f32.mrb[87].mxu0  ;;  %v3643_v45 = vadd.f32 %v7137_v1, %v3641_v46 }
0x1d35   :  { %v3644_v50 = vadd.f32 %v7138_v33, %v3642_v49  ;;  %v3645_v51 = vsel %vm573_vm10, %v3643_v45, -inf }
0x1d36   :  { %3646 = vmax.xlane.f32.xlu0 %v3645_v51 }
0x1d37   :  { %v3648_v53 = vsel %vm573_vm10, %v3644_v50, -inf }
0x1d38   :  { %3649 = vmax.xlane.f32.xlu1 %v3648_v53  ;;  %v3759_v15 = vpop.f32.mrb[88].mxu0 }
0x1d39   :  { %v3766_v14 = vmul.f32 0.35355338, %v3759_v15  ;;  %v6712_v22 = vpop.f32.mrb[89].mxu0 }
0x1d3a   :  { %v3762_v40 = vpop.f32.mrb[90].mxu0 }
0x1d3b   :  { %v3767_v61 = vmul.f32 0.35355338, %v3762_v40  ;;  %v6713_v7 = vpop.f32.mrb[91].mxu0  ;;  %v3768_v32 = vadd.f32 %v7137_v1, %v3766_v14 }
0x1d3d   :  { %v3769_v12 = vadd.f32 %v7138_v33, %v3767_v61  ;;  %v3770_v57 = vsel %vm573_vm10, %v3768_v32, -inf }
0x1d3e   :  { %3771 = vmax.xlane.f32.xlu0 %v3770_v57 }
0x1d3f   :  { %v3773_v8 = vsel %vm573_vm10, %v3769_v12, -inf }
0x1d40   :  { %3774 = vmax.xlane.f32.xlu1 %v3773_v8 }
0x1db3   :  { %v3397_v19 = vpop.xlane.xlu1 %3396 }
0x1db4   :  { %v3401_v9 = vsub.f32 %v3393_v3, %v3397_v19 }
0x1db5   :  { %v3400_v20 = vpop.xlane.xlu0 %3399 }
0x1db6   :  { %v3403_v62 = vmul.f32 1.442695, %v3401_v9  ;;  %v3402_v17 = vsub.f32 %v3394_v5, %v3400_v20 }
0x1db8   :  { %7049 = vpow2.f32 %v3403_v62  ;;  %v3405_v6 = vmul.f32 1.442695, %v3402_v17 }
0x1dba   :  { %7051 = vpow2.f32 %v3405_v6 }
0x1dbb   :  { %v3522_v18 = vpop.xlane.xlu0 %3521 }
0x1dbc   :  { %v3526_v13 = vsub.f32 %v3518_v25, %v3522_v18 }
0x1dbd   :  { %v3525_v4 = vpop.xlane.xlu1 %3524 }
0x1dbe   :  { %v3528_v34 = vmul.f32 1.442695, %v3526_v13  ;;  %v3527_v33 = vsub.f32 %v3519_v26, %v3525_v4 }
0x1dc0   :  { %7053 = vpow2.f32 %v3528_v34  ;;  %v3530_v24 = vmul.f32 1.442695, %v3527_v33 }
0x1dc2   :  { %v7050_v27 = vpop.eup %7049  ;;  %7055 = vpow2.f32 %v3530_v24 }
0x1dc3   :  { %v3407_v30 = vsel %vm573_vm10, %v7050_v27, 0.0  ;;  %v3647_v59 = vpop.xlane.xlu0 %3646 }
0x1dc4   :  { %v7052_v1 = vpop.eup %7051  ;;  %3408 = vadd.xlane.f32.xlu0 %v3407_v30  ;;  %v3651_v35 = vsub.f32 %v3643_v45, %v3647_v59 }
0x1dc5   :  { %v3410_v58 = vsel %vm573_vm10, %v7052_v1, 0.0  ;;  %v3650_v5 = vpop.xlane.xlu1 %3649 }
0x1dc6   :  { %3411 = vadd.xlane.f32.xlu1 %v3410_v58  ;;  %v3652_v11 = vsub.f32 %v3644_v50, %v3650_v5  ;;  %v3653_v43 = vmul.f32 1.442695, %v3651_v35 }
0x1dc8   :  { %v3655_v41 = vmul.f32 1.442695, %v3652_v11 }
0x1dca   :  { %v8583_v55 = vpop.eup %7053  ;;  %7057 = vpow2.f32 %v3655_v41 }
0x1dcb   :  { %v3532_v3 = vsel %vm573_vm10, %v8583_v55, 0.0  ;;  %v3772_v2 = vpop.xlane.xlu0 %3771  ;;  %7059 = vpow2.f32 %v3653_v43 }
0x1dcc   :  { %3533 = vadd.xlane.f32.xlu0 %v3532_v3  ;;  %v3776_v44 = vsub.f32 %v3768_v32, %v3772_v2  ;;  %v7056_v47 = vpop.eup %7055 }
0x1dcd   :  { %v3775_v16 = vpop.xlane.xlu1 %3774  ;;  %v3535_v26 = vsel %vm573_vm10, %v7056_v47, 0.0 }
0x1dce   :  { %v3777_v25 = vsub.f32 %v3769_v12, %v3775_v16  ;;  %v3778_v46 = vmul.f32 1.442695, %v3776_v44 }
0x1dd0   :  { %v3780_v42 = vmul.f32 1.442695, %v3777_v25 }
0x1dd2   :  { %7061 = vpow2.f32 %v3780_v42 }
0x1dd3   :  { %7063 = vpow2.f32 %v3778_v46  ;;  %v6945_v46 = vld [vmem:[#allocation8 + $0x10] sm:$0xff]  }
0x1dd4   :  { %v7058_v48 = vpop.eup %7057  ;;  %6721 = vmatpush3.bf16.msra.mxu0 %v6945_v46  ;;  %v6949_v46 = vld [vmem:[#allocation11 + $0x10] sm:$0xff]  }
0x1dd5   :  { %v7060_v49 = vpop.eup %7059  ;;  %v3660_v23 = vsel %vm573_vm10, %v7058_v48, 0.0  ;;  %6722 = vmatprep.subr.bf16.mxu0 %v7535_v10 }
0x1dd6   :  { %v3657_v50 = vsel %vm573_vm10, %v7060_v49, 0.0 }
0x1dd7   :  { %3543 = vrot.lane.b32.xlu1 %v8530_v52, %s7544_s0 }
0x1ddc   :  { %v8593_v45 = vpop.eup %7061 }
0x1ddd   :  { %v7064_v51 = vpop.eup %7063  ;;  %v3785_v53 = vsel %vm573_vm10, %v8593_v45, 0.0 }
0x1dde   :  { %v3782_v15 = vsel %vm573_vm10, %v7064_v51, 0.0 }
0x1de2   :  { %3418 = vrot.lane.b32.xlu0 %v8530_v52, %s7512_s6 }
0x1dfb   :  { %3536 = vadd.xlane.f32.xlu1 %v3535_v26 }
0x1dff   :  { %3661 = vadd.xlane.f32.xlu1 %v3660_v23  ;;  %v6946_v23 = vld [vmem:[#allocation8 + $0x18] sm:$0xff]  }
0x1e00   :  { %6723 = vmatpush3.bf16.msra.mxu0 %v6946_v23 }
0x1e01   :  { %3658 = vadd.xlane.f32.xlu0 %v3657_v50 }
0x1e03   :  { %3786 = vadd.xlane.f32.xlu1 %v3785_v53 }
0x1e05   :  { %3783 = vadd.xlane.f32.xlu0 %v3782_v15 }
0x1e14   :  { %3668 = vrot.lane.b32.xlu1 %v8530_v52, %s7545_s30 }
0x1e1b   :  { %3793 = vrot.lane.b32.xlu0 %v8530_v52, %s7546_s8 }
0x1e51   :  { %v3409_v14 = vpop.xlane.xlu0 %3408 }
0x1e52   :  { %7065 = vrcp.f32 %v3409_v14 }
0x1e53   :  { %v3412_v22 = vpop.xlane.xlu1 %3411 }
0x1e54   :  { %7067 = vrcp.f32 %v3412_v22 }
0x1e57   :  { %v3544_v19 = vpop.permute.xlu1 %3543 }
0x1e59   :  { %v3534_v40 = vpop.xlane.xlu0 %3533 }
0x1e5a   :  { %7069 = vrcp.f32 %v3534_v40 }
0x1e5c   :  { %v7066_v61 = vpop.eup %7065 }
0x1e5d   :  { %v3419_v7 = vpop.permute.xlu0 %3418  ;;  %v3414_v12 = vmul.f32 %v7066_v61, %v7050_v27 }
0x1e5e   :  { %v7068_v32 = vpop.eup %7067  ;;  %6679 = vmatpush3.bf16.msra.mxu1 %v3419_v7 }
0x1e5f   :  { %v3416_v57 = vmul.f32 %v7068_v32, %v7052_v1  ;;  %6690 = vmatprep.subr.bf16.mxu1 %v7535_v10 }
0x1e61   :  { %v3417_v8 = vpack.c.bf16 %v3416_v57, %v3414_v12 }
0x1e63   :  { %6681 = vmatmul.mubr.msk.bf16.vlgmr.msra.gmra.mrb[80].mxu1 %vm573_vm10, %v3417_v8 }
0x1e64   :  { %6691 = vmatpush3.bf16.msra.mxu1 %v3544_v19  ;;  %6692 = vmatprep.mubr.msk.bf16.mxu1 %vm7536_vm4, %v7535_v10  ;;  %v7070_v62 = vpop.eup %7069 }
0x1e65   :  { %6702 = vmatprep.subr.bf16.mxu1 %v7535_v10  ;;  %v3539_v13 = vmul.f32 %v7070_v62, %v8583_v55 }
0x1e88   :  { %v3537_v52 = vpop.xlane.xlu1 %3536 }
0x1e89   :  { %7071 = vrcp.f32 %v3537_v52 }
0x1e8c   :  { %v3662_v9 = vpop.xlane.xlu1 %3661 }
0x1e8d   :  { %7073 = vrcp.f32 %v3662_v9 }
0x1e8e   :  { %v3659_v20 = vpop.xlane.xlu0 %3658 }
0x1e8f   :  { %7075 = vrcp.f32 %v3659_v20 }
0x1e90   :  { %v3787_v17 = vpop.xlane.xlu1 %3786 }
0x1e92   :  { %v3784_v6 = vpop.xlane.xlu0 %3783 }
0x1e93   :  { %v7072_v18 = vpop.eup %7071  ;;  %7077 = vrcp.f32 %v3784_v6 }
0x1e94   :  { %v3541_v34 = vmul.f32 %v7072_v18, %v7056_v47  ;;  %7079 = vrcp.f32 %v3787_v17  ;;  %v3669_v1 = vpop.permute.xlu1 %3668 }
0x1e96   :  { %v3542_v27 = vpack.c.bf16 %v3541_v34, %v3539_v13  ;;  %v3794_v55 = vpop.permute.xlu0 %3793 }
0x1e97   :  { %v7074_v30 = vpop.eup %7073 }
0x1e98   :  { %6693 = vmatmul.mubr.msk.bf16.vlgmr.msra.gmra.mrb[84].mxu1 %vm573_vm10, %v3542_v27  ;;  %v3666_v4 = vmul.f32 %v7074_v30, %v7058_v48  ;;  %v6241_v27 = vld [vmem:[#allocation10 + $0x1] ss:$0 sm:$0xff] }
0x1e99   :  { %v7076_v58 = vpop.eup %7075  ;;  %6703 = vmatpush3.bf16.msra.mxu1 %v3669_v1  ;;  %6704 = vmatprep.mubr.msk.bf16.mxu1 %vm7536_vm4, %v7535_v10 }
0x1e9a   :  { %v3664_v3 = vmul.f32 %v7076_v58, %v7060_v49  ;;  %6714 = vmatprep.subr.bf16.mxu1 %v7535_v10 }
0x1e9c   :  { %v3667_v33 = vpack.c.bf16 %v3666_v4, %v3664_v3 }
0x1e9d   :  { %v7078_v5 = vpop.eup %7077 }
0x1e9e   :  { %v7080_v59 = vpop.eup %7079  ;;  %v3789_v24 = vmul.f32 %v7078_v5, %v7064_v51 }
0x1e9f   :  { %v3791_v11 = vmul.f32 %v7080_v59, %v8593_v45 }
0x1ea0   :  { %6705 = vmatmul.mubr.msk.bf16.vlgmr.msra.gmra.mrb[88].mxu1 %vm573_vm10, %v3667_v33 }
0x1ea1   :  { %6715 = vmatpush3.bf16.msra.mxu1 %v3794_v55  ;;  %6716 = vmatprep.mubr.msk.bf16.mxu1 %vm7536_vm4, %v7535_v10  ;;  %v3792_v16 = vpack.c.bf16 %v3791_v11, %v3789_v24 }
0x1ea2   :  { %6728 = vmatprep.subr.bf16.mxu1 %v7535_v10 }
0x1ea8   :  { %6717 = vmatmul.mubr.msk.bf16.vlgmr.msra.gmra.mrb[92].mxu1 %vm573_vm10, %v3792_v16 }
0x1ea9   :  { %6732 = vmatprep.mubr.msk.bf16.mxu1 %vm7536_vm4, %v7535_v10  ;;  %6729 = vmatpush3.bf16.msra.mxu1 %v6949_v46 }
0x1eaa   :  { %6730 = vmatprep.subr.bf16.mxu1 %v7535_v10 }
0x1f36   :  { %v3458_v35 = vpop.f32.mrb[80].mxu1 }
0x1f37   :  { %v6682_v2 = vpop.f32.mrb[81].mxu1 }
0x1f38   :  { %v3461_v41 = vpop.f32.mrb[82].mxu1 }
0x1f39   :  { %v6683_v25 = vpop.f32.mrb[83].mxu1 }
0x1f6b   :  { %v3583_v43 = vpop.f32.mrb[84].mxu1 }
0x1f6c   :  { %v6694_v44 = vpop.f32.mrb[85].mxu1 }
0x1f6d   :  { %v3586_v42 = vpop.f32.mrb[86].mxu1  ;;  %v6947_v44 = vld [vmem:[#allocation14 + $0x10] sm:$0xff]  }
0x1f6e   :  { %v6903_v47 = vpack.i.bf16 %v3586_v42, %v3583_v43  ;;  %v6695_v26 = vpop.f32.mrb[87].mxu1  ;;  %6736 = vmatprep.subr.bf16.mxu0 %v6947_v44  ;;  %v6948_v42 = vld [vmem:[#allocation14 + $0x18] sm:$0xff]  }
0x1f70   :  { %6904 = vrot.lane.b32.xlu1 %v6903_v47, %s7547_s11  ;;  %v6950_v47 = vld [vmem:[#allocation11 + $0x18] sm:$0xff]  }
0x1f71   :  { %6731 = vmatpush3.bf16.msra.mxu1 %v6950_v47 }
0x1f72   :  { %6744 = vmatprep.subr.bf16.mxu1 %v7535_v10 }
0x1f73   :  { %v3708_v48 = vpop.f32.mrb[88].mxu1 }
0x1f74   :  { %v6706_v49 = vpop.f32.mrb[89].mxu1 }
0x1f75   :  { %v3711_v45 = vpop.f32.mrb[90].mxu1 }
0x1f76   :  { %v6908_v50 = vpack.i.bf16 %v3711_v45, %v3708_v48  ;;  %v6707_v51 = vpop.f32.mrb[91].mxu1 }
0x1f78   :  { %6909 = vrot.lane.b32.xlu0 %v6908_v50, %s7520_s25 }
0x1f7b   :  { %v3833_v53 = vpop.f32.mrb[92].mxu1 }
0x1f7c   :  { %v6718_v15 = vpop.f32.mrb[93].mxu1 }
0x1f7d   :  { %v3836_v14 = vpop.f32.mrb[94].mxu1 }
0x1f7e   :  { %v6913_v22 = vpack.i.bf16 %v3836_v14, %v3833_v53  ;;  %v6719_v40 = vpop.f32.mrb[95].mxu1 }
0x1f80   :  { %6914 = vrot.lane.b32.xlu1 %v6913_v22, %s7548_s16 }
0x1fe2   :  { %v6905_v61 = vpop.permute.xlu1 %6904 }
0x1fe3   :  { %v6907_v32 = vunpack.i.h.bf16 %v6905_v61  ;;  %v6906_v12 = vunpack.i.l.bf16 %v6905_v61 }
0x1fe5   :  { %v3865_v52 = vsel %vm521_vm9, %v3461_v41, %v6907_v32  ;;  %v3864_v9 = vsel %vm521_vm9, %v3458_v35, %v6906_v12  ;;  %v3216_v12 = vld [vmem:[#allocation2 + $0x8] sm:$0x3] }
0x1fea   :  { %v6910_v7 = vpop.permute.xlu0 %6909 }
0x1feb   :  { %v6912_v57 = vunpack.i.h.bf16 %v6910_v7  ;;  %v6911_v8 = vunpack.i.l.bf16 %v6910_v7 }
0x1fed   :  { %v3867_v17 = vsel %vm573_vm10, %v3865_v52, %v6912_v57  ;;  %v3866_v6 = vsel %vm573_vm10, %v3864_v9, %v6911_v8  ;;  %v3965_v57 = vrot.slane %v3216_v12, %v7940_v60  ;;  %v3991_v52 = vrot.slane %v3216_v12, %v7944_v63 }
0x1ff2   :  { %v6915_v19 = vpop.permute.xlu1 %6914 }
0x1ff3   :  { %v6917_v20 = vunpack.i.h.bf16 %v6915_v19  ;;  %v6916_v62 = vunpack.i.l.bf16 %v6915_v19 }
0x1ff5   :  { %v3869_v18 = vsel %vm1047_vm11, %v3867_v17, %v6917_v20  ;;  %v3868_v13 = vsel %vm1047_vm11, %v3866_v6, %v6916_v62 }
0x1ff6   :  { %v3870_v34 = vpack.c.bf16 %v3869_v18, %v3868_v13 }
0x1ff8   :  { %6725 = vmatmul.mubr.msk.bf16.vlgmr.msra.gmra.mrb[92].mxu0 %vm395_vm3, %v3870_v34  ;;  %v6249_v34 = vld [vmem:[#allocation16 + $0x1] ss:$0 sm:$0xff] }
0x1ff9   :  { %6740 = vmatprep.mubr.msk.bf16.mxu0 %vm395_vm3, %v8072_v37  ;;  %6737 = vmatpush3.bf16.msra.mxu0 %v6947_v44 }
0x1ffa   :  { %6738 = vmatprep.subr.bf16.mxu0 %v6948_v42 }
0x1ffd   :  { %6739 = vmatpush3.bf16.msra.mxu0 %v6948_v42 }
0x1ffe   :  { %6752 = vmatprep.subr.bf16.mxu0 %v7535_v10 }
0x2000   :  { %6741 = vmatmul.mubr.msk.bf16.vlgmr.msra.gmra.mrb[96].mxu0 %vm395_vm3, %v8077_v39 }
0x2001   :  { %6756 = vmatprep.mubr.msk.bf16.mxu0 %vm7536_vm4, %v7535_v10 }
0x20cb   :  { %v3933_v30 = vpop.f32.mrb[92].mxu0 }
0x20cc   :  { %v3934_v1 = vadd.f32 %v6241_v27, %v3933_v30  ;;  %v6726_v58 = vpop.f32.mrb[93].mxu0 }
0x20cd   :  { %v3936_v3 = vpop.f32.mrb[94].mxu0 }
0x20ce   :  { %v8635_v4 = vadd.f32 %v3934_v1, %v8510_v54  ;;  %v3937_v33 = vadd.f32 %v6241_v27, %v3936_v3  ;;  %v6727_v5 = vpop.f32.mrb[95].mxu0 }
0x20d0   :  { %v8638_v55 = vadd.f32 %v3937_v33, %v8513_v56  ;;  %v3942_v59 = vsel %vm395_vm3, %v8635_v4, 0.0 }
0x20d1   :  { %3943 = vadd.xlane.f32.xlu0 %v3942_v59 }
0x20d2   :  { %v3945_v37 = vsel %vm395_vm3, %v8638_v55, 0.0 }
0x20d3   :  { %3946 = vadd.xlane.f32.xlu1 %v3945_v37  ;;  %v6742_v27 = vpop.f32.mrb[96].mxu0 }
0x20d4   :  { %v4123_v30 = vpop.f32.mrb[97].mxu0  ;;  %v4132_v5 = vadd.f32 %v6742_v27, %v6249_v34 }
0x20d5   :  { %v4124_v1 = vadd.f32 %v6249_v34, %v4123_v30  ;;  %v6743_v58 = vpop.f32.mrb[98].mxu0 }
0x20d6   :  { %v4126_v3 = vpop.f32.mrb[99].mxu0 }
0x20d7   :  { %v4127_v33 = vadd.f32 %v6249_v34, %v4126_v3 }
0x20d9   :  { %v8660_v59 = vpack.c.bf16 %v4127_v33, %v4124_v1 }
0x20db   :  { %v4144_v37 = vsel %vm521_vm9, %v8660_v59, 0 }
0x215e   :  { %v3944_v24 = vpop.xlane.xlu0 %3943 }
0x215f   :  { %v3948_v11 = vmul.f32 0.03125, %v3944_v24  ;;  %v8664_v24 = vpack.c.bf16 %v4132_v5, %v4132_v5 }
0x2160   :  { %v3947_v16 = vpop.xlane.xlu1 %3946 }
0x2161   :  { %v3950_v35 = vsub.f32 %v8635_v4, %v3948_v11  ;;  %v3949_v54 = vmul.f32 0.03125, %v3947_v16  ;;  %v4147_v11 = vsel %vm521_vm9, %v8664_v24, 0  ;;  %v6245_v16 = vld [vmem:[#allocation13 + $0x1] ss:$0 sm:$0xff] }
0x2163   :  { %v3951_v2 = vsub.f32 %v8638_v55, %v3949_v54  ;;  %v3952_v41 = vmul.f32 %v3950_v35, %v3950_v35  ;;  %v3966_v19 = vmul.f32 %v3965_v57, %v3950_v35 }
0x2165   :  { %v3954_v56 = vsel %vm395_vm3, %v3952_v41, 0.0  ;;  %v3953_v25 = vmul.f32 %v3951_v2, %v3951_v2  ;;  %v3967_v9 = vmul.f32 %v3965_v57, %v3951_v2 }
0x2166   :  { %3955 = vadd.xlane.f32.xlu0 %v3954_v56 }
0x2167   :  { %v3957_v43 = vsel %vm395_vm3, %v3953_v25, 0.0 }
0x216a   :  { %3958 = vadd.xlane.f32.xlu0 %v3957_v43 }
0x21f3   :  { %v3956_v26 = vpop.xlane.xlu0 %3955 }
0x21f4   :  { %v3960_v48 = vmul.f32 0.032258064, %v3956_v26  ;;  %v8679_v26 = vld [vmem:[%s9119_s2] sm:$0xff] }
0x21f6   :  { %7081 = vrsqrt.f32 %v3960_v48  ;;  %vm3970_vm15 = vcmp.eq.f32.partialorder %v3960_v48, inf  ;;  %v3973_v39 = vand.u32 2147483648, %v3960_v48  ;;  %vm3972_vm2 = vcmp.eq.f32.partialorder %v3960_v48, 0.0 }
0x21f7   :  { %v3959_v49 = vpop.xlane.xlu0 %3958 }
0x21f8   :  { %v3961_v23 = vmul.f32 0.032258064, %v3959_v49 }
0x21fa   :  { %7083 = vrsqrt.f32 %v3961_v23  ;;  %vm3977_vm5 = vcmp.eq.f32.partialorder %v3961_v23, inf  ;;  %v3980_v40 = vand.u32 2147483648, %v3961_v23  ;;  %vm3979_vm6 = vcmp.eq.f32.partialorder %v3961_v23, 0.0 }
0x2200   :  { %v7082_v45 = vpop.eup %7081 }
0x2201   :  { %v3969_v50 = vmul.f32 %v7082_v45, %v3960_v48  ;;  %v8685_v45 = vld [vmem:[%s9119_s2 + $0x8] sm:$0xff] }
0x2203   :  { %v3971_v51 = vsel %vm3970_vm15, %v3960_v48, %v3969_v50 }
0x2204   :  { %v7084_v53 = vpop.eup %7083  ;;  %v3974_v15 = vsel %vm3972_vm2, %v3973_v39, %v3971_v51 }
0x2205   :  { %v3982_v14 = vadd.f32 1e-06, %v3974_v15  ;;  %v3976_v22 = vmul.f32 %v7084_v53, %v3961_v23 }
0x2207   :  { %7085 = vrcp.f32 %v3982_v14  ;;  %v3978_v61 = vsel %vm3977_vm5, %v3961_v23, %v3976_v22 }
0x2208   :  { %v3981_v7 = vsel %vm3979_vm6, %v3980_v40, %v3978_v61 }
0x2209   :  { %v3983_v32 = vadd.f32 1e-06, %v3981_v7 }
0x220b   :  { %7087 = vrcp.f32 %v3983_v32 }
0x2211   :  { %v7086_v8 = vpop.eup %7085 }
0x2212   :  { %v3985_v20 = vmul.f32 %v7086_v8, %v3966_v19 }
0x2214   :  { %v3992_v6 = vadd.f32 %v3991_v52, %v3985_v20 }
0x2215   :  { %v7088_v62 = vpop.eup %7087 }
0x2216   :  { %v3987_v17 = vmul.f32 %v7088_v62, %v3967_v9 }
0x2218   :  { %v3993_v18 = vadd.f32 %v3991_v52, %v3987_v17 }
0x221a   :  { %v3994_v13 = vpack.c.bf16 %v3993_v18, %v3992_v6 }
0x221c   :  { %6733 = vmatmul.mubr.msk.bf16.vlgmr.msra.gmra.mrb[96].mxu1 %vm395_vm3, %v3994_v13 }
0x221d   :  { %6748 = vmatprep.mubr.msk.bf16.mxu1 %vm7536_vm4, %v7535_v10  ;;  %6745 = vmatpush3.bf16.xpose.msra.mxu1 %v4144_v37 }
0x221e   :  { %6746 = vmatprep.subr.bf16.mxu1 %v7535_v10 }
0x2225   :  { %6747 = vmatpush3.bf16.xpose.msra.mxu1 %v4147_v11 }
0x2226   :  { %6768 = vmatprep.subr.bf16.mxu1 %v7535_v10 }
0x22ef   :  { %v4057_v35 = vpop.f32.mrb[96].mxu1 }
0x22f0   :  { %v6734_v54 = vpop.f32.mrb[97].mxu1  ;;  %v4058_v41 = vadd.f32 %v6245_v16, %v4057_v35 }
0x22f1   :  { %v4060_v2 = vpop.f32.mrb[98].mxu1 }
0x22f2   :  { %v4061_v56 = vadd.f32 %v6245_v16, %v4060_v2  ;;  %v6735_v25 = vpop.f32.mrb[99].mxu1 }
0x22f4   :  { %v8670_v43 = vpack.c.bf16 %v4061_v56, %v4058_v41 }
0x22f6   :  { %6749 = vmatmul.mubr.msk.bf16.vlgmr.msra.gmra.mrb[100].mxu1 %vm521_vm9, %v8670_v43 }
0x22f7   :  { %6772 = vmatprep.mubr.msk.bf16.mxu1 %vm7536_vm4, %v7535_v10 }
0x23c9   :  { %v4183_v44 = vpop.f32.mrb[100].mxu1 }
0x23ca   :  { %v4190_v42 = vmul.f32 0.35355338, %v4183_v44  ;;  %v6750_v46 = vpop.f32.mrb[101].mxu1 }
0x23cb   :  { %v4186_v47 = vpop.f32.mrb[102].mxu1 }
0x23cc   :  { %v4192_v48 = vadd.f32 %v8679_v26, %v4190_v42  ;;  %v4191_v49 = vmul.f32 0.35355338, %v4186_v47  ;;  %v6751_v23 = vpop.f32.mrb[103].mxu1 }
0x23ce   :  { %v4193_v50 = vadd.f32 %v8685_v45, %v4191_v49  ;;  %v4194_v39 = vsel %vm1376_vm0, %v4192_v48, -inf }
0x23cf   :  { %4195 = vmax.xlane.f32.xlu1 %v4194_v39 }
0x23d0   :  { %v4197_v51 = vsel %vm1376_vm0, %v4193_v50, -inf }
0x23d1   :  { %4198 = vmax.xlane.f32.xlu0 %v4197_v51 }
0x23e0   :  { %4219 = vrot.lane.b32.xlu1 %v8660_v59, %s7538_s19 }
0x245c   :  { %v4196_v53 = vpop.xlane.xlu1 %4195 }
0x245d   :  { %v4200_v15 = vsub.f32 %v4192_v48, %v4196_v53 }
0x245e   :  { %v4199_v14 = vpop.xlane.xlu0 %4198 }
0x245f   :  { %v4202_v22 = vmul.f32 1.442695, %v4200_v15  ;;  %v4201_v40 = vsub.f32 %v4193_v50, %v4199_v14 }
0x2460   :  { %v4220_v61 = vpop.permute.xlu1 %4219 }
0x2461   :  { %7089 = vpow2.f32 %v4202_v22  ;;  %v4204_v7 = vmul.f32 1.442695, %v4201_v40  ;;  %6753 = vmatpush3.bf16.msra.mxu0 %v4220_v61 }
0x2462   :  { %6754 = vmatprep.subr.bf16.mxu0 %v7535_v10 }
0x2463   :  { %7091 = vpow2.f32 %v4204_v7 }
0x246b   :  { %v7090_v32 = vpop.eup %7089 }
0x246c   :  { %v4206_v12 = vsel %vm1376_vm0, %v7090_v32, 0.0 }
0x246d   :  { %v7092_v57 = vpop.eup %7091  ;;  %4207 = vadd.xlane.f32.xlu1 %v4206_v12 }
0x246e   :  { %v4209_v8 = vsel %vm1376_vm0, %v7092_v57, 0.0 }
0x246f   :  { %4210 = vadd.xlane.f32.xlu0 %v4209_v8 }
0x247e   :  { %4274 = vrot.lane.b32.xlu1 %v8660_v59, %s7540_s21 }
0x2482   :  { %4276 = vrot.lane.b32.xlu1 %v8664_v24, %s7540_s21 }
0x2485   :  { %4221 = vrot.lane.b32.xlu0 %v8664_v24, %s7538_s19 }
0x2489   :  { %4272 = vrot.lane.b32.xlu0 %v8670_v43, %s7540_s21 }
0x24fa   :  { %v4208_v19 = vpop.xlane.xlu1 %4207 }
0x24fb   :  { %7093 = vrcp.f32 %v4208_v19 }
0x24fc   :  { %v4211_v52 = vpop.xlane.xlu0 %4210 }
0x24fd   :  { %7095 = vrcp.f32 %v4211_v52 }
0x24fe   :  { %v4275_v13 = vpop.permute.xlu1 %4274 }
0x24ff   :  { %v4282_v27 = vsel %vm521_vm9, %v4275_v13, 0 }
0x2500   :  { %v4222_v9 = vpop.permute.xlu0 %4221 }
0x2501   :  { %v4228_v20 = vsel %vm1410_vm1, %v4222_v9, 0 }
0x2502   :  { %6755 = vmatpush3.bf16.msra.mxu0 %v4228_v20  ;;  %v4277_v30 = vpop.permute.xlu1 %4276 }
0x2503   :  { %6760 = vmatprep.subr.bf16.mxu0 %v7535_v10  ;;  %v4285_v1 = vsel %vm521_vm9, %v4277_v30, 0 }
0x2504   :  { %v4273_v58 = vpop.permute.xlu0 %4272 }
0x2505   :  { %v7094_v62 = vpop.eup %7093 }
0x2506   :  { %v4213_v6 = vmul.f32 %v7094_v62, %v7090_v32 }
0x2507   :  { %v7096_v17 = vpop.eup %7095 }
0x2508   :  { %v4215_v18 = vmul.f32 %v7096_v17, %v7092_v57 }
0x250a   :  { %v4216_v34 = vpack.c.bf16 %v4215_v18, %v4213_v6 }
0x250c   :  { %6757 = vmatmul.mubr.msk.bf16.vlgmr.msra.gmra.mrb[100].mxu0 %vm1376_vm0, %v4216_v34 }
0x250d   :  { %6761 = vmatpush3.bf16.xpose.msra.mxu0 %v4282_v27  ;;  %6764 = vmatprep.mubr.msk.bf16.mxu0 %vm7536_vm4, %v7535_v10 }
0x250e   :  { %6762 = vmatprep.subr.bf16.mxu0 %v7535_v10 }
0x2515   :  { %6763 = vmatpush3.bf16.xpose.msra.mxu0 %v4285_v1 }
0x2516   :  { %6784 = vmatprep.subr.bf16.mxu0 %v7535_v10 }
0x251c   :  { %6765 = vmatmul.mubr.msk.bf16.vlgmr.msra.gmra.mrb[104].mxu0 %vm521_vm9, %v4273_v58 }
0x251d   :  { %6788 = vmatprep.mubr.msk.bf16.mxu0 %vm7536_vm4, %v7535_v10 }
0x25df   :  { %v8715_v3 = vpop.f32.mrb[100].mxu0 }
0x25e0   :  { %v6758_v33 = vpop.f32.mrb[101].mxu0 }
0x25e1   :  { %v8717_v5 = vpop.f32.mrb[102].mxu0 }
0x25e2   :  { %v6759_v37 = vpop.f32.mrb[103].mxu0 }
0x25ef   :  { %v4321_v11 = vpop.f32.mrb[104].mxu0 }
0x25f0   :  { %v4328_v16 = vmul.f32 0.35355338, %v4321_v11  ;;  %v6766_v35 = vpop.f32.mrb[105].mxu0 }
0x25f1   :  { %v4324_v54 = vpop.f32.mrb[106].mxu0 }
0x25f2   :  { %v4330_v2 = vadd.f32 %v8679_v26, %v4328_v16  ;;  %v4329_v41 = vmul.f32 0.35355338, %v4324_v54  ;;  %v6767_v56 = vpop.f32.mrb[107].mxu0 }
0x25f4   :  { %v4331_v25 = vadd.f32 %v8685_v45, %v4329_v41  ;;  %v4332_v44 = vsel %vm1376_vm0, %v4330_v2, -inf }
0x25f5   :  { %4333 = vmax.xlane.f32.xlu1 %v4332_v44 }
0x25f6   :  { %v4335_v42 = vsel %vm1376_vm0, %v4331_v25, -inf }
0x25f7   :  { %4336 = vmax.xlane.f32.xlu0 %v4335_v42 }
0x2606   :  { %4357 = vrot.lane.b32.xlu1 %v8664_v24, %s7539_s5 }
0x2682   :  { %v4334_v46 = vpop.xlane.xlu1 %4333 }
0x2683   :  { %v4338_v47 = vsub.f32 %v4330_v2, %v4334_v46 }
0x2684   :  { %v4337_v48 = vpop.xlane.xlu0 %4336 }
0x2685   :  { %v4340_v49 = vmul.f32 1.442695, %v4338_v47  ;;  %v4339_v23 = vsub.f32 %v4331_v25, %v4337_v48 }
0x2686   :  { %v4358_v14 = vpop.permute.xlu1 %4357 }
0x2687   :  { %7097 = vpow2.f32 %v4340_v49  ;;  %v4342_v50 = vmul.f32 1.442695, %v4339_v23  ;;  %v4364_v7 = vsel %vm1410_vm1, %v4358_v14, 0 }
0x2689   :  { %7099 = vpow2.f32 %v4342_v50 }
0x2691   :  { %v7098_v39 = vpop.eup %7097 }
0x2692   :  { %v4344_v51 = vsel %vm1376_vm0, %v7098_v39, 0.0 }
0x2693   :  { %v7100_v53 = vpop.eup %7099  ;;  %4345 = vadd.xlane.f32.xlu0 %v4344_v51 }
0x2694   :  { %v4347_v15 = vsel %vm1376_vm0, %v7100_v53, 0.0 }
0x2695   :  { %4348 = vadd.xlane.f32.xlu1 %v4347_v15 }
0x26a6   :  { %4409 = vrot.lane.b32.xlu1 %v8660_v59, %s7537_s10 }
0x26a9   :  { %4355 = vrot.lane.b32.xlu0 %v8660_v59, %s7539_s5 }
0x26aa   :  { %4407 = vrot.lane.b32.xlu1 %v8670_v43, %s7537_s10 }
0x26ad   :  { %4411 = vrot.lane.b32.xlu0 %v8664_v24, %s7537_s10 }
0x2720   :  { %v4346_v22 = vpop.xlane.xlu0 %4345 }
0x2721   :  { %7101 = vrcp.f32 %v4346_v22 }
0x2722   :  { %v4349_v40 = vpop.xlane.xlu1 %4348 }
0x2723   :  { %7103 = vrcp.f32 %v4349_v40 }
0x2724   :  { %v4356_v61 = vpop.permute.xlu0 %4355 }
0x2725   :  { %6769 = vmatpush3.bf16.msra.mxu1 %v4356_v61 }
0x2726   :  { %6770 = vmatprep.subr.bf16.mxu1 %v7535_v10  ;;  %v4410_v19 = vpop.permute.xlu1 %4409 }
0x2727   :  { %v4417_v9 = vsel %vm521_vm9, %v4410_v19, 0 }
0x2728   :  { %v4412_v20 = vpop.permute.xlu0 %4411 }
0x2729   :  { %6771 = vmatpush3.bf16.msra.mxu1 %v4364_v7  ;;  %v4420_v62 = vsel %vm521_vm9, %v4412_v20, 0 }
0x272a   :  { %6776 = vmatprep.subr.bf16.mxu1 %v7535_v10  ;;  %v4408_v17 = vpop.permute.xlu1 %4407 }
0x272b   :  { %v7102_v32 = vpop.eup %7101 }
0x272c   :  { %v4351_v57 = vmul.f32 %v7102_v32, %v7098_v39 }
0x272d   :  { %v7104_v12 = vpop.eup %7103 }
0x272e   :  { %v4353_v8 = vmul.f32 %v7104_v12, %v7100_v53 }
0x2730   :  { %v4354_v52 = vpack.c.bf16 %v4353_v8, %v4351_v57 }
0x2732   :  { %6773 = vmatmul.mubr.msk.bf16.vlgmr.msra.gmra.mrb[104].mxu1 %vm1376_vm0, %v4354_v52 }
0x2733   :  { %6777 = vmatpush3.bf16.xpose.msra.mxu1 %v4417_v9  ;;  %6780 = vmatprep.mubr.msk.bf16.mxu1 %vm7536_vm4, %v7535_v10 }
0x2734   :  { %6778 = vmatprep.subr.bf16.mxu1 %v7535_v10 }
0x273b   :  { %6779 = vmatpush3.bf16.xpose.msra.mxu1 %v4420_v62 }
0x273c   :  { %6800 = vmatprep.subr.bf16.mxu1 %v7535_v10 }
0x2742   :  { %6781 = vmatmul.mubr.msk.bf16.vlgmr.msra.gmra.mrb[108].mxu1 %vm521_vm9, %v4408_v17 }
0x2743   :  { %6804 = vmatprep.mubr.msk.bf16.mxu1 %vm7536_vm4, %v7535_v10 }
0x2805   :  { %v8748_v6 = vpop.f32.mrb[104].mxu1 }
0x2806   :  { %v6774_v18 = vpop.f32.mrb[105].mxu1 }
0x2807   :  { %v8750_v13 = vpop.f32.mrb[106].mxu1 }
0x2808   :  { %v6918_v34 = vpack.i.bf16 %v8750_v13, %v8748_v6  ;;  %v6775_v27 = vpop.f32.mrb[107].mxu1 }
0x2815   :  { %v4456_v30 = vpop.f32.mrb[108].mxu1 }
0x2816   :  { %v4463_v1 = vmul.f32 0.35355338, %v4456_v30  ;;  %v6782_v58 = vpop.f32.mrb[109].mxu1 }
0x2817   :  { %v4459_v33 = vpop.f32.mrb[110].mxu1 }
0x2818   :  { %v4465_v37 = vadd.f32 %v8679_v26, %v4463_v1  ;;  %v4464_v11 = vmul.f32 0.35355338, %v4459_v33  ;;  %v6783_v16 = vpop.f32.mrb[111].mxu1 }
0x281a   :  { %v4466_v35 = vadd.f32 %v8685_v45, %v4464_v11  ;;  %v4467_v54 = vsel %vm1376_vm0, %v4465_v37, -inf }
0x281b   :  { %4468 = vmax.xlane.f32.xlu0 %v4467_v54 }
0x281c   :  { %v4470_v2 = vsel %vm1376_vm0, %v4466_v35, -inf }
0x281d   :  { %4471 = vmax.xlane.f32.xlu1 %v4470_v2 }
0x282e   :  { %4490 = vrot.lane.b32.xlu1 %v8660_v59, %s7541_s18 }
0x2832   :  { %4544 = vrot.lane.b32.xlu1 %v8660_v59, %s7543_s3 }
0x2836   :  { %4546 = vrot.lane.b32.xlu1 %v8664_v24, %s7543_s3 }
0x28a8   :  { %v4469_v41 = vpop.xlane.xlu0 %4468 }
0x28a9   :  { %v4473_v56 = vsub.f32 %v4465_v37, %v4469_v41 }
0x28aa   :  { %v4472_v25 = vpop.xlane.xlu1 %4471 }
0x28ab   :  { %v4475_v44 = vmul.f32 1.442695, %v4473_v56  ;;  %v4474_v42 = vsub.f32 %v4466_v35, %v4472_v25 }
0x28ad   :  { %7105 = vpow2.f32 %v4475_v44  ;;  %v4477_v46 = vmul.f32 1.442695, %v4474_v42 }
0x28ae   :  { %v4491_v47 = vpop.permute.xlu1 %4490 }
0x28af   :  { %7107 = vpow2.f32 %v4477_v46  ;;  %6785 = vmatpush3.bf16.msra.mxu0 %v4491_v47 }
0x28b0   :  { %6786 = vmatprep.subr.bf16.mxu0 %v7535_v10 }
0x28b2   :  { %v4545_v7 = vpop.permute.xlu1 %4544 }
0x28b3   :  { %v4552_v12 = vsel %vm521_vm9, %v4545_v7, 0 }
0x28b7   :  { %v7106_v48 = vpop.eup %7105 }
0x28b8   :  { %v4479_v49 = vsel %vm1376_vm0, %v7106_v48, 0.0 }
0x28b9   :  { %v7108_v23 = vpop.eup %7107  ;;  %4480 = vadd.xlane.f32.xlu0 %v4479_v49 }
0x28ba   :  { %v4482_v50 = vsel %vm1376_vm0, %v7108_v23, 0.0 }
0x28bd   :  { %4483 = vadd.xlane.f32.xlu0 %v4482_v50  ;;  %v6951_v50 = vld [vmem:[#allocation17 + $0x10] sm:$0xff]  }
0x28d3   :  { %4492 = vrot.lane.b32.xlu0 %v8664_v24, %s7541_s18 }
0x28d7   :  { %4542 = vrot.lane.b32.xlu0 %v8670_v43, %s7543_s3  ;;  %v4547_v43 = vpop.permute.xlu1 %4546 }
0x28d8   :  { %v4555_v57 = vsel %vm521_vm9, %v4547_v43, 0 }
0x2946   :  { %v4481_v39 = vpop.xlane.xlu0 %4480 }
0x2947   :  { %7109 = vrcp.f32 %v4481_v39  ;;  %v6952_v39 = vld [vmem:[#allocation17 + $0x18] sm:$0xff]  }
0x294a   :  { %v4484_v51 = vpop.xlane.xlu0 %4483 }
0x294b   :  { %7111 = vrcp.f32 %v4484_v51 }
0x294e   :  { %v4493_v53 = vpop.permute.xlu0 %4492 }
0x294f   :  { %v4499_v15 = vsel %vm1410_vm1, %v4493_v53, 0 }
0x2950   :  { %6787 = vmatpush3.bf16.msra.mxu0 %v4499_v15 }
0x2951   :  { %6792 = vmatprep.subr.bf16.mxu0 %v7535_v10  ;;  %v7110_v14 = vpop.eup %7109 }
0x2952   :  { %v4486_v40 = vmul.f32 %v7110_v14, %v7106_v48  ;;  %v4543_v8 = vpop.permute.xlu0 %4542 }
0x2955   :  { %v7112_v22 = vpop.eup %7111 }
0x2956   :  { %v4488_v61 = vmul.f32 %v7112_v22, %v7108_v23 }
0x2958   :  { %v4489_v32 = vpack.c.bf16 %v4488_v61, %v4486_v40 }
0x295a   :  { %6789 = vmatmul.mubr.msk.bf16.vlgmr.msra.gmra.mrb[108].mxu0 %vm1376_vm0, %v4489_v32 }
0x295b   :  { %6793 = vmatpush3.bf16.xpose.msra.mxu0 %v4552_v12  ;;  %6796 = vmatprep.mubr.msk.bf16.mxu0 %vm7536_vm4, %v7535_v10 }
0x295c   :  { %6794 = vmatprep.subr.bf16.mxu0 %v7535_v10 }
0x2963   :  { %6795 = vmatpush3.bf16.xpose.msra.mxu0 %v4555_v57 }
0x296a   :  { %6797 = vmatmul.mubr.msk.bf16.vlgmr.msra.gmra.mrb[112].mxu0 %vm521_vm9, %v4543_v8 }
0x296b   :  { %5145 = vmatprep.mubr.bf16.mxu0 %v7534_v0 }
0x2a2d   :  { %v4535_v19 = vpop.f32.mrb[108].mxu0 }
0x2a2e   :  { %v6790_v52 = vpop.f32.mrb[109].mxu0 }
0x2a2f   :  { %v4538_v9 = vpop.f32.mrb[110].mxu0 }
0x2a30   :  { %v6923_v20 = vpack.i.bf16 %v4538_v9, %v4535_v19  ;;  %v6791_v62 = vpop.f32.mrb[111].mxu0 }
0x2a3d   :  { %v4591_v17 = vpop.f32.mrb[112].mxu0 }
0x2a3e   :  { %v4598_v18 = vmul.f32 0.35355338, %v4591_v17  ;;  %v6798_v27 = vpop.f32.mrb[113].mxu0 }
0x2a3f   :  { %v4594_v30 = vpop.f32.mrb[114].mxu0 }
0x2a40   :  { %v4600_v1 = vadd.f32 %v8679_v26, %v4598_v18  ;;  %v4599_v58 = vmul.f32 0.35355338, %v4594_v30  ;;  %v6799_v33 = vpop.f32.mrb[115].mxu0 }
0x2a42   :  { %v4601_v37 = vadd.f32 %v8685_v45, %v4599_v58  ;;  %v4602_v11 = vsel %vm1376_vm0, %v4600_v1, -inf }
0x2a43   :  { %4603 = vmax.xlane.f32.xlu1 %v4602_v11 }
0x2a44   :  { %v4605_v16 = vsel %vm1376_vm0, %v4601_v37, -inf }
0x2a45   :  { %4606 = vmax.xlane.f32.xlu0 %v4605_v16 }
0x2ad0   :  { %v4604_v35 = vpop.xlane.xlu1 %4603 }
0x2ad1   :  { %v4608_v54 = vsub.f32 %v4600_v1, %v4604_v35 }
0x2ad2   :  { %v4607_v2 = vpop.xlane.xlu0 %4606 }
0x2ad3   :  { %v4610_v41 = vmul.f32 1.442695, %v4608_v54  ;;  %v4609_v56 = vsub.f32 %v4601_v37, %v4607_v2 }
0x2ad5   :  { %7113 = vpow2.f32 %v4610_v41  ;;  %v4612_v25 = vmul.f32 1.442695, %v4609_v56 }
0x2ad7   :  { %7115 = vpow2.f32 %v4612_v25 }
0x2adf   :  { %v7114_v44 = vpop.eup %7113 }
0x2ae0   :  { %v4614_v26 = vsel %vm1376_vm0, %v7114_v44, 0.0 }
0x2ae1   :  { %v7116_v42 = vpop.eup %7115  ;;  %4615 = vadd.xlane.f32.xlu0 %v4614_v26 }
0x2ae2   :  { %v4617_v45 = vsel %vm1376_vm0, %v7116_v42, 0.0 }
0x2ae3   :  { %4618 = vadd.xlane.f32.xlu1 %v4617_v45  ;;  %v6266_v45 = vld [vmem:[%s9092_s17 + $0x100] sm:$0xff] }
0x2af4   :  { %4627 = vrot.lane.b32.xlu1 %v8664_v24, %s7542_s14 }
0x2af7   :  { %4625 = vrot.lane.b32.xlu0 %v8660_v59, %s7542_s14 }
0x2af8   :  { %6919 = vrot.lane.b32.xlu1 %v6918_v34, %s7547_s11 }
0x2afb   :  { %6924 = vrot.lane.b32.xlu0 %v6923_v20, %s7520_s25 }
0x2b6e   :  { %v4616_v46 = vpop.xlane.xlu0 %4615 }
0x2b6f   :  { %7117 = vrcp.f32 %v4616_v46  ;;  %v6274_v46 = vld [vmem:[%s9092_s17 + $0x140] sm:$0xff] }
0x2b70   :  { %v4619_v47 = vpop.xlane.xlu1 %4618 }
0x2b71   :  { %7119 = vrcp.f32 %v4619_v47  ;;  %v6267_v47 = vld [vmem:[%s9092_s17 + $0x108] sm:$0xff] }
0x2b72   :  { %v4626_v48 = vpop.permute.xlu0 %4625 }
0x2b73   :  { %6801 = vmatpush3.bf16.msra.mxu1 %v4626_v48  ;;  %v6299_v48 = vcombine.high %v6266_v45, %v6274_v46 }
0x2b74   :  { %v4628_v49 = vpop.permute.xlu1 %4627  ;;  %6802 = vmatprep.subr.bf16.mxu1 %v7535_v10 }
0x2b75   :  { %v4634_v24 = vsel %vm1410_vm1, %v4628_v49, 0  ;;  %v6275_v49 = vld [vmem:[%s9092_s17 + $0x148] sm:$0xff]  ;;  %5113 = vmatprep.subr.bf16.mxu0 %v6299_v48 }
0x2b76   :  { %v6925_v32 = vpop.permute.xlu0 %6924 }
0x2b77   :  { %6803 = vmatpush3.bf16.msra.mxu1 %v4634_v24  ;;  %v6926_v57 = vunpack.i.l.bf16 %v6925_v32  ;;  %v6298_v24 = vcombine.low %v6266_v45, %v6274_v46  ;;  %v6285_v45 = vld [vmem:[%s9092_s17 + $0x198] sm:$0xff] }
0x2b78   :  { %6808 = vmatprep.subr.bf16.mxu1 %v7535_v10  ;;  %v6920_v40 = vpop.permute.xlu1 %6919 }
0x2b79   :  { %v7118_v59 = vpop.eup %7117  ;;  %v6922_v61 = vunpack.i.h.bf16 %v6920_v40  ;;  %v6921_v7 = vunpack.i.l.bf16 %v6920_v40  ;;  %5114 = vmatpush1.bf16.msra.mxu0 %v6298_v24  ;;  %v6269_v40 = vld [vmem:[%s9092_s17 + $0x118] sm:$0xff]  ;;  %v6270_v24 = vld [vmem:[%s9092_s17 + $0x120] sm:$0xff] }
0x2b7a   :  { %v4621_v6 = vmul.f32 %v7118_v59, %v7114_v44  ;;  %v6300_v59 = vcombine.low %v6267_v47, %v6275_v49 }
0x2b7b   :  { %v7120_v23 = vpop.eup %7119  ;;  %v4702_v12 = vsel %vm521_vm9, %v8717_v5, %v6922_v61  ;;  %v4701_v43 = vsel %vm521_vm9, %v8715_v3, %v6921_v7  ;;  %v6262_v5 = vld [vmem:[#allocation19 + $0x1] ss:$0 sm:$0xff]  ;;  %v6277_v7 = vld [vmem:[%s9092_s17 + $0x158] sm:$0xff] }
0x2b7c   :  { %v4623_v13 = vmul.f32 %v7120_v23, %v7116_v42  ;;  %v4703_v9 = vsel %vm573_vm10, %v4701_v43, %v6926_v57  ;;  %v6301_v23 = vcombine.high %v6267_v47, %v6275_v49  ;;  %v6305_v43 = vcombine.high %v6269_v40, %v6277_v7 }
0x2b7e   :  { %v4624_v34 = vpack.c.bf16 %v4623_v13, %v4621_v6  ;;  %v6282_v6 = vld [vmem:[%s9092_s17 + $0x180] sm:$0xff] }
0x2b7f   :  { %v6290_v13 = vld [vmem:[%s9092_s17 + $0x1c0] sm:$0xff] }
0x2b80   :  { %6805 = vmatmul.mubr.msk.bf16.vlgmr.msra.gmra.mrb[112].mxu1 %vm1376_vm0, %v4624_v34  ;;  %v6283_v34 = vld [vmem:[%s9092_s17 + $0x188] sm:$0xff] }
0x2b81   :  { %6812 = vmatprep.mubr.msk.bf16.mxu1 %vm7536_vm4, %v7535_v10  ;;  %6809 = vmatpush3.bf16.msra.mxu1 %v6951_v50  ;;  %v6314_v50 = vcombine.low %v6282_v6, %v6290_v13 }
0x2b82   :  { %6810 = vmatprep.subr.bf16.mxu1 %v7535_v10  ;;  %v6927_v10 = vunpack.i.h.bf16 %v6925_v32 }
0x2b84   :  { %v4704_v20 = vsel %vm573_vm10, %v4702_v12, %v6927_v10  ;;  %v6304_v12 = vcombine.low %v6269_v40, %v6277_v7 }
0x2b85   :  { %6811 = vmatpush3.bf16.msra.mxu1 %v6952_v39  ;;  %v6315_v39 = vcombine.high %v6282_v6, %v6290_v13  ;;  %v6279_v6 = vld [vmem:[%s9092_s17 + $0x168] sm:$0xff] }
0x2b86   :  { %5156 = vmatprep.subr.bf16.mxu1 %v6301_v23  ;;  %v6271_v23 = vld [vmem:[%s9092_s17 + $0x128] sm:$0xff] }
0x2b87   :  { %5115 = vmatprep.subr.bf16.mxu0 %v6315_v39  ;;  %v6309_v39 = vcombine.high %v6271_v23, %v6279_v6  ;;  %v6308_v40 = vcombine.low %v6271_v23, %v6279_v6 }
0x2b88   :  { %5116 = vmatpush1.bf16.msra.mxu0 %v6314_v50 }
0x2c53   :  { %v4670_v51 = vpop.f32.mrb[112].mxu1 }
0x2c54   :  { %v6806_v53 = vpop.f32.mrb[113].mxu1 }
0x2c55   :  { %v4673_v15 = vpop.f32.mrb[114].mxu1 }
0x2c56   :  { %v6928_v14 = vpack.i.bf16 %v4673_v15, %v4670_v51  ;;  %v6807_v22 = vpop.f32.mrb[115].mxu1  ;;  %v6291_v51 = vld [vmem:[%s9092_s17 + $0x1c8] sm:$0xff] }
0x2c57   :  { %v6316_v53 = vcombine.low %v6283_v34, %v6291_v51  ;;  %v6317_v15 = vcombine.high %v6283_v34, %v6291_v51  ;;  %v6276_v22 = vld [vmem:[%s9092_s17 + $0x150] sm:$0xff]  ;;  %v6286_v51 = vld [vmem:[%s9092_s17 + $0x1a0] sm:$0xff] }
0x2c58   :  { %6929 = vrot.lane.b32.xlu1 %v6928_v14, %s7548_s16  ;;  %v6268_v14 = vld [vmem:[%s9092_s17 + $0x110] sm:$0xff] }
0x2c59   :  { %v6303_v61 = vcombine.high %v6268_v14, %v6276_v22  ;;  %v6302_v32 = vcombine.low %v6268_v14, %v6276_v22  ;;  %v6295_v14 = vld [vmem:[%s9092_s17 + $0x1e8] sm:$0xff] }
0x2c5b   :  { %5199 = vmatprep.subr.bf16.mxu0 %v6303_v61 }
0x2cca   :  { %v6930_v8 = vpop.permute.xlu1 %6929 }
0x2ccb   :  { %v6932_v19 = vunpack.i.h.bf16 %v6930_v8  ;;  %v6931_v52 = vunpack.i.l.bf16 %v6930_v8 }
0x2ccd   :  { %v4706_v62 = vsel %vm1047_vm11, %v4704_v20, %v6932_v19  ;;  %v4705_v17 = vsel %vm1047_vm11, %v4703_v9, %v6931_v52 }
0x2cce   :  { %v4707_v18 = vpack.c.bf16 %v4706_v62, %v4705_v17 }
0x2cd0   :  { %6813 = vmatmul.mubr.msk.bf16.vlgmr.msra.gmra.mrb[116].mxu1 %vm395_vm3, %v4707_v18 }
0x2cd1   :  { %5188 = vmatprep.mubr.bf16.mxu1 %v7534_v0  ;;  %5157 = vmatpush1.bf16.msra.mxu1 %v6300_v59  ;;  %v6278_v59 = vld [vmem:[%s9092_s17 + $0x160] sm:$0xff] }
0x2cd2   :  { %5158 = vmatprep.subr.bf16.mxu1 %v6317_v15  ;;  %v6307_v50 = vcombine.high %v6270_v24, %v6278_v59  ;;  %v6287_v15 = vld [vmem:[%s9092_s17 + $0x1a8] sm:$0xff]  ;;  %v6306_v22 = vcombine.low %v6270_v24, %v6278_v59 }
0x2cd3   :  { %v6325_v7 = vcombine.high %v6287_v15, %v6295_v14  ;;  %v8968_v24 = vld [vmem:[#allocation22 + $0x158] sm:$0xff] }
0x2cd5   :  { %5159 = vmatpush1.bf16.msra.mxu1 %v6316_v53  ;;  %v6294_v53 = vld [vmem:[%s9092_s17 + $0x1e0] sm:$0xff] }
0x2cd6   :  { %5242 = vmatprep.subr.bf16.mxu1 %v6305_v43  ;;  %v6323_v61 = vcombine.high %v6286_v51, %v6294_v53  ;;  %v6273_v43 = vld [vmem:[%s9092_s17 + $0x138] sm:$0xff] }
0x2da3   :  { %v4770_v3 = vpop.f32.mrb[116].mxu1 }
0x2da4   :  { %v4771_v27 = vadd.f32 %v6262_v5, %v4770_v3  ;;  %v6814_v30 = vpop.f32.mrb[117].mxu1 }
0x2da5   :  { %v4773_v1 = vpop.f32.mrb[118].mxu1 }
0x2da6   :  { %v8815_v58 = vadd.f32 %v4771_v27, %v8635_v4  ;;  %v4774_v33 = vadd.f32 %v6262_v5, %v4773_v1  ;;  %v6815_v37 = vpop.f32.mrb[119].mxu1 }
0x2da7   :  { %v3217_v37 = vld [vmem:[#allocation2 + $0xa] sm:$0x3] }
0x2da8   :  { %v8818_v11 = vadd.f32 %v4774_v33, %v8638_v55  ;;  %v4779_v16 = vsel %vm395_vm3, %v8815_v58, 0.0 }
0x2da9   :  { %4780 = vadd.xlane.f32.xlu0 %v4779_v16  ;;  %v4802_v16 = vrot.slane %v3217_v37, %v7940_v60 }
0x2daa   :  { %v4782_v35 = vsel %vm395_vm3, %v8818_v11, 0.0 }
0x2dab   :  { %4783 = vadd.xlane.f32.xlu1 %v4782_v35 }
0x2e36   :  { %v4781_v54 = vpop.xlane.xlu0 %4780 }
0x2e37   :  { %v4785_v2 = vmul.f32 0.03125, %v4781_v54 }
0x2e38   :  { %v4784_v41 = vpop.xlane.xlu1 %4783 }
0x2e39   :  { %v8825_v56 = vsub.f32 %v8815_v58, %v4785_v2  ;;  %v4786_v4 = vmul.f32 0.03125, %v4784_v41  ;;  %v4828_v2 = vrot.slane %v3217_v37, %v7944_v63  ;;  %v5515_v37 = vld [vmem:[#allocation22 + $0x148] sm:$0xff] }
0x2e3b   :  { %v8828_v25 = vsub.f32 %v8818_v11, %v4786_v4  ;;  %v4789_v55 = vmul.f32 %v8825_v56, %v8825_v56  ;;  %v4803_v54 = vmul.f32 %v4802_v16, %v8825_v56  ;;  %v6293_v56 = vld [vmem:[%s9092_s17 + $0x1d8] sm:$0xff] }
0x2e3c   :  { %v6321_v49 = vcombine.high %v6285_v45, %v6293_v56  ;;  %v6320_v34 = vcombine.low %v6285_v45, %v6293_v56  ;;  %v5531_v45 = vld [vmem:[#allocation22 + $0x1c8] sm:$0xff] }
0x2e3d   :  { %v4791_v44 = vsel %vm395_vm3, %v4789_v55, 0.0  ;;  %v4790_v26 = vmul.f32 %v8828_v25, %v8828_v25  ;;  %v4804_v41 = vmul.f32 %v4802_v16, %v8828_v25 }
0x2e3e   :  { %4792 = vadd.xlane.f32.xlu0 %v4791_v44 }
0x2e3f   :  { %v4794_v42 = vsel %vm395_vm3, %v4790_v26, 0.0  ;;  %v6284_v26 = vld [vmem:[%s9092_s17 + $0x190] sm:$0xff] }
0x2e42   :  { %4795 = vadd.xlane.f32.xlu0 %v4794_v42  ;;  %v6292_v42 = vld [vmem:[%s9092_s17 + $0x1d0] sm:$0xff] }
0x2e43   :  { %v6319_v48 = vcombine.high %v6284_v26, %v6292_v42  ;;  %v6318_v13 = vcombine.low %v6284_v26, %v6292_v42  ;;  %v5523_v26 = vld [vmem:[#allocation22 + $0x188] sm:$0xff] }
0x2e44   :  { %v6357_v56 = vcombine.low %v5523_v26, %v5531_v45 }
0x2ecb   :  { %v4793_v10 = vpop.xlane.xlu0 %4792 }
0x2ecc   :  { %v4797_v57 = vmul.f32 0.032258064, %v4793_v10  ;;  %v6281_v10 = vld [vmem:[%s9092_s17 + $0x178] sm:$0xff] }
0x2ece   :  { %7121 = vrsqrt.f32 %v4797_v57  ;;  %vm4807_vm4 = vcmp.eq.f32.partialorder %v4797_v57, inf  ;;  %v4810_v20 = vand.u32 2147483648, %v4797_v57  ;;  %vm4809_vm9 = vcmp.eq.f32.partialorder %v4797_v57, 0.0 }
0x2ecf   :  { %v4796_v8 = vpop.xlane.xlu0 %4795 }
0x2ed0   :  { %v4798_v19 = vmul.f32 0.032258064, %v4796_v8  ;;  %v6324_v8 = vcombine.low %v6287_v15, %v6295_v14 }
0x2ed2   :  { %7123 = vrsqrt.f32 %v4798_v19  ;;  %vm4814_vm10 = vcmp.eq.f32.partialorder %v4798_v19, inf  ;;  %v4817_v27 = vand.u32 2147483648, %v4798_v19  ;;  %vm4816_vm11 = vcmp.eq.f32.partialorder %v4798_v19, 0.0 }
0x2ed8   :  { %v7122_v52 = vpop.eup %7121 }
0x2ed9   :  { %v4806_v9 = vmul.f32 %v7122_v52, %v4797_v57  ;;  %v6313_v52 = vcombine.high %v6273_v43, %v6281_v10 }
0x2edb   :  { %v4808_v62 = vsel %vm4807_vm4, %v4797_v57, %v4806_v9  ;;  %v6322_v57 = vcombine.low %v6286_v51, %v6294_v53  ;;  %v6288_v9 = vld [vmem:[%s9092_s17 + $0x1b0] sm:$0xff] }
0x2edc   :  { %v7124_v17 = vpop.eup %7123  ;;  %v4811_v18 = vsel %vm4809_vm9, %v4810_v20, %v4808_v62  ;;  %v6296_v20 = vld [vmem:[%s9092_s17 + $0x1f0] sm:$0xff]  ;;  %v6289_v62 = vld [vmem:[%s9092_s17 + $0x1b8] sm:$0xff] }
0x2edd   :  { %v4819_v5 = vadd.f32 1e-06, %v4811_v18  ;;  %v4813_v3 = vmul.f32 %v7124_v17, %v4798_v19  ;;  %v6297_v17 = vld [vmem:[%s9092_s17 + $0x1f8] sm:$0xff]  ;;  %v6326_v16 = vcombine.low %v6288_v9, %v6296_v20 }
0x2edf   :  { %7125 = vrcp.f32 %v4819_v5  ;;  %v4815_v30 = vsel %vm4814_vm10, %v4798_v19, %v4813_v3  ;;  %v6312_v5 = vcombine.low %v6273_v43, %v6281_v10  ;;  %v6327_v3 = vcombine.high %v6288_v9, %v6296_v20 }
0x2ee0   :  { %v4818_v1 = vsel %vm4816_vm11, %v4817_v27, %v4815_v30  ;;  %v6329_v27 = vcombine.high %v6289_v62, %v6297_v17  ;;  %v5506_v30 = vld [vmem:[#allocation22 + $0x100] sm:$0xff] }
0x2ee1   :  { %v4820_v33 = vadd.f32 1e-06, %v4818_v1  ;;  %v5514_v1 = vld [vmem:[#allocation22 + $0x140] sm:$0xff] }
0x2ee3   :  { %7127 = vrcp.f32 %v4820_v33  ;;  %v5507_v33 = vld [vmem:[#allocation22 + $0x108] sm:$0xff] }
0x2ee9   :  { %v7126_v35 = vpop.eup %7125 }
0x2eea   :  { %v4822_v4 = vmul.f32 %v7126_v35, %v4803_v54  ;;  %v6328_v35 = vcombine.low %v6289_v62, %v6297_v17  ;;  %v6340_v54 = vcombine.high %v5506_v30, %v5514_v1 }
0x2eec   :  { %v4829_v25 = vadd.f32 %v4828_v2, %v4822_v4  ;;  %v6341_v4 = vcombine.low %v5507_v33, %v5515_v37 }
0x2eed   :  { %v7128_v55 = vpop.eup %7127 }
0x2eee   :  { %v4824_v44 = vmul.f32 %v7128_v55, %v4804_v41  ;;  %v6339_v41 = vcombine.low %v5506_v30, %v5514_v1  ;;  %v5522_v55 = vld [vmem:[#allocation22 + $0x180] sm:$0xff] }
0x2ef0   :  { %v4830_v46 = vadd.f32 %v4828_v2, %v4824_v44  ;;  %v6342_v2 = vcombine.high %v5507_v33, %v5515_v37  ;;  %v5530_v44 = vld [vmem:[#allocation22 + $0x1c0] sm:$0xff]  ;;  %v8986_v33 = vld [vmem:[#allocation22 + $0x190] sm:$0xff] }
0x2ef1   :  { %v6356_v42 = vcombine.high %v5522_v55, %v5530_v44  ;;  %v8988_v37 = vld [vmem:[#allocation22 + $0x1d0] sm:$0xff] }
0x2ef2   :  { %v8888_v47 = vpack.c.bf16 %v4830_v46, %v4829_v25  ;;  %v6358_v25 = vcombine.high %v5523_v26, %v5531_v45  ;;  %v8960_v46 = vld [vmem:[#allocation22 + $0x110] sm:$0xff] }
0x2ef4   :  { %6330 = vmatmul.mubr.msk.bf16.vlgmr.msra.gmra.mrb[116].mxu0 %vm395_vm3, %v8888_v47  ;;  %6331 = vmatmul.mubr.msk.bf16.vlgmr.msra.gmra.mrb[120].mxu1 %vm395_vm3, %v8888_v47 }
0x2ef5   :  { %5200 = vmatpush1.bf16.msra.mxu0 %v6302_v32  ;;  %5243 = vmatpush1.bf16.msra.mxu1 %v6304_v12  ;;  %v6272_v32 = vld [vmem:[%s9092_s17 + $0x130] sm:$0xff] }
0x2ef6   :  { %5201 = vmatprep.subr.bf16.mxu0 %v6319_v48  ;;  %5244 = vmatprep.subr.bf16.mxu1 %v6321_v49  ;;  %v6280_v12 = vld [vmem:[%s9092_s17 + $0x170] sm:$0xff]  ;;  %v8962_v48 = vld [vmem:[#allocation22 + $0x150] sm:$0xff]  ;;  %s7549_s17 = smov [#allocation26]  }
0x2ef7   :  { %5231 = vmatprep.mubr.bf16.mxu0 %v7534_v0  ;;  %5274 = vmatprep.mubr.bf16.mxu1 %v7534_v0  ;;  %v6311_v19 = vcombine.high %v6272_v32, %v6280_v12  ;;  %v6310_v18 = vcombine.low %v6272_v32, %v6280_v12  ;;  %v6344_v49 = vcombine.high %v8960_v46, %v8962_v48  ;;  %s6096_s14 = sshll.u32 %s7549_s17, 4  ;;  %s6097_s14 = int_to_ptr.vmem [resolvable:$true] %s6096_s14 }
0x2ef8   :  { %v6343_v59 = vcombine.low %v8960_v46, %v8962_v48  ;;  %s7471_s3 = scalar_lea.vmem %s6097_s14, 256  ;;  %p7476_p9 = scmp.lt.s32.totalorder %s6097_s14, %s6097_s14 }
0x2ef9   :  { %5202 = vmatpush1.bf16.msra.mxu0 %v6318_v13  ;;  %5245 = vmatpush1.bf16.msra.mxu1 %v6320_v34  ;;  %v4866_v13 = vld [vmem:[#allocation20 + $0x10] sm:$0xff]  ;;  %p7472_p8 = scmp.ne.s32.totalorder %s6097_s14, %s7471_s3  ;;  %p7477_p10 = scmp.lt.s32.totalorder %s7471_s3, %s7471_s3 }
0x2efa   :  { %5285 = vmatprep.subr.bf16.mxu0 %v6307_v50  ;;  %5328 = vmatprep.subr.bf16.mxu1 %v6309_v39  ;;  %v4873_v34 = vrot.slane %v4866_v13, %v7940_v60  ;;  %v4881_v50 = vrot.slane %v4866_v13, %v8410_v29  ;;  %v4877_v39 = vrot.slane %v4866_v13, %v7944_v63 }
0x2efb   :  { %v4885_v51 = vrot.slane %v4866_v13, %v8413_v21  ;;  %v4897_v9 = vrot.slane %v4866_v13, %v8423_v31  ;;  %v4893_v17 = vrot.slane %v4866_v13, %v8426_v36  ;;  %p7478_p11 = por %p7477_p10, %p7476_p9 }
0x2efc   :  { %6332 = vmatmul.mubr.msk.bf16.vlgmr.msra.gmra.mrb[120].mxu0 %vm395_vm3, %v8888_v47  ;;  %6333 = vmatmul.mubr.msk.bf16.vlgmr.msra.gmra.mrb[124].mxu1 %vm395_vm3, %v8888_v47 }
0x2efd   :  { %5286 = vmatpush1.bf16.msra.mxu0 %v6306_v22  ;;  %5329 = vmatpush1.bf16.msra.mxu1 %v6308_v40  ;;  %p7479_p12 = pnand %p7478_p11, %p7472_p8 }
0x2efe   :  { %5287 = vmatprep.subr.bf16.mxu0 %v6323_v61  ;;  %5330 = vmatprep.subr.bf16.mxu1 %v6325_v7 }
0x2eff   :  { %5317 = vmatprep.mubr.bf16.mxu0 %v7534_v0  ;;  %5360 = vmatprep.mubr.bf16.mxu1 %v7534_v0 }
0x2f01   :  { %5288 = vmatpush1.bf16.msra.mxu0 %v6322_v57  ;;  %5331 = vmatpush1.bf16.msra.mxu1 %v6324_v8 }
0x2f02   :  { %5371 = vmatprep.subr.bf16.mxu0 %v6311_v19  ;;  %5414 = vmatprep.subr.bf16.mxu1 %v6313_v52  ;;  %v4889_v52 = vrot.slane %v4866_v13, %v8420_v28 }
0x2f04   :  { %6334 = vmatmul.mubr.msk.bf16.vlgmr.msra.gmra.mrb[124].mxu0 %vm395_vm3, %v8888_v47  ;;  %6335 = vmatmul.mubr.msk.bf16.vlgmr.msra.gmra.mrb[128].mxu1 %vm395_vm3, %v8888_v47 }
0x2f05   :  { %5372 = vmatpush1.bf16.msra.mxu0 %v6310_v18  ;;  %5415 = vmatpush1.bf16.msra.mxu1 %v6312_v5  ;;  %v4901_v18 = vrot.slane %v4866_v13, %v8429_v38  ;;  %v8984_v5 = vld [vmem:[#allocation20 + $0x18] sm:$0xff] }
0x2f06   :  { %5373 = vmatprep.subr.bf16.mxu0 %v6327_v3  ;;  %5416 = vmatprep.subr.bf16.mxu1 %v6329_v27 }
0x2f07   :  { %5403 = vmatprep.mubr.bf16.mxu0 %v7534_v0  ;;  %5446 = vmatprep.mubr.bf16.mxu1 %v7534_v0  ;;  %v6355_v0 = vcombine.low %v5522_v55, %v5530_v44 }
0x2f09   :  { %5374 = vmatpush1.bf16.msra.mxu0 %v6326_v16  ;;  %5417 = vmatpush1.bf16.msra.mxu1 %v6328_v35 }
0x2f0a   :  { %5706 = vmatprep.subr.bf16.mxu0 %v6340_v54  ;;  %5747 = vmatprep.subr.bf16.mxu1 %v6342_v2 }
0x2f0c   :  { %6336 = vmatmul.mubr.msk.bf16.vlgmr.msra.gmra.mrb[128].mxu0 %vm395_vm3, %v8888_v47  ;;  %6337 = vmatmul.mubr.msk.bf16.vlgmr.msra.gmra.mrb[132].mxu1 %vm395_vm3, %v8888_v47  ;;  %v8964_v47 = vld [vmem:[#allocation22 + $0x118] sm:$0xff] }
0x2f0d   :  { %v6345_v23 = vcombine.low %v8964_v47, %v8968_v24  ;;  %v6346_v6 = vcombine.high %v8964_v47, %v8968_v24  ;;  %v9018_v47 = vld [vmem:[#allocation22 + $0x168] sm:$0xff] }
0x2f12   :  { %5707 = vmatpush1.bf16.xpose.msra.mxu0 %v6339_v41  ;;  %5748 = vmatpush1.bf16.xpose.msra.mxu1 %v6341_v4  ;;  %v8990_v41 = vld [vmem:[#allocation22 + $0x198] sm:$0xff] }
0x2f13   :  { %5708 = vmatprep.subr.bf16.mxu0 %v6356_v42  ;;  %5749 = vmatprep.subr.bf16.mxu1 %v6358_v25  ;;  %v8992_v4 = vld [vmem:[#allocation22 + $0x1d8] sm:$0xff] }
0x2f1a   :  { %5709 = vmatpush1.bf16.xpose.msra.mxu0 %v6355_v0  ;;  %5750 = vmatpush1.bf16.xpose.msra.mxu1 %v6357_v56  ;;  %v4905_v56 = vrot.slane %v8984_v5, %v7940_v60 }
0x2f1b   :  { %5788 = vmatprep.subr.bf16.mxu0 %v6344_v49  ;;  %5829 = vmatprep.subr.bf16.mxu1 %v6346_v6 }
0x2fc7   :  { %v5147_v53 = vpop.f32.mrb[116].mxu0  ;;  %v5190_v15 = vpop.f32.mrb[120].mxu1 }
0x2fc8   :  { %v5148_v14 = vadd.f32 %v5147_v53, %v4873_v34  ;;  %v5191_v22 = vadd.f32 %v5190_v15, %v4881_v50  ;;  %v5149_v40 = vpop.f32.mrb[117].mxu0  ;;  %v5192_v61 = vpop.f32.mrb[121].mxu1 }
0x2fc9   :  { %v5150_v7 = vadd.f32 %v5149_v40, %v4877_v39  ;;  %v5193_v32 = vadd.f32 %v5192_v61, %v4885_v51  ;;  %v5151_v12 = vpop.f32.mrb[118].mxu0  ;;  %v5194_v43 = vpop.f32.mrb[122].mxu1 }
0x2fca   :  { %v5152_v10 = vadd.f32 %v5151_v12, %v4873_v34  ;;  %v5195_v57 = vadd.f32 %v5194_v43, %v4881_v50  ;;  %v5153_v8 = vpop.f32.mrb[119].mxu0  ;;  %v5196_v19 = vpop.f32.mrb[123].mxu1  ;;  %v5457_v3 = vmax.f32 %v5148_v14, 0.0  ;;  %v5459_v27 = vmax.f32 %v5191_v22, 0.0 }
0x2fcb   :  { %v5154_v20 = vadd.f32 %v5153_v8, %v4877_v39  ;;  %v5197_v62 = vadd.f32 %v5196_v19, %v4885_v51  ;;  %v5458_v16 = vmax.f32 %v5150_v7, 0.0  ;;  %v5460_v35 = vmax.f32 %v5193_v32, 0.0 }
0x2fcc   :  { %v5473_v30 = vmax.f32 %v5152_v10, 0.0  ;;  %v5475_v1 = vmax.f32 %v5195_v57, 0.0  ;;  %v6360_v34 = vcombine.high %v8986_v33, %v8988_v37  ;;  %v6362_v50 = vcombine.high %v8990_v41, %v8992_v4 }
0x2fcd   :  { %v5474_v54 = vmax.f32 %v5154_v20, 0.0  ;;  %v5476_v2 = vmax.f32 %v5197_v62, 0.0  ;;  %v4913_v14 = vrot.slane %v8984_v5, %v8410_v29  ;;  %v4909_v32 = vrot.slane %v8984_v5, %v7944_v63  ;;  %v9016_v62 = vld [vmem:[#allocation22 + $0x128] sm:$0xff] }
0x2fce   :  { %v5489_v55 = vpack.c.bf16 %v5473_v30, %v5457_v3  ;;  %v5491_v44 = vpack.c.bf16 %v5475_v1, %v5459_v27  ;;  %v4917_v29 = vrot.slane %v8984_v5, %v8413_v21  ;;  %v6359_v27 = vcombine.low %v8986_v33, %v8988_v37 }
0x2fcf   :  { %v5490_v26 = vpack.c.bf16 %v5474_v54, %v5458_v16  ;;  %v5492_v42 = vpack.c.bf16 %v5476_v2, %v5460_v35  ;;  %v5233_v45 = vpop.f32.mrb[120].mxu0  ;;  %v5276_v0 = vpop.f32.mrb[124].mxu1  ;;  %v6361_v30 = vcombine.low %v8990_v41, %v8992_v4  ;;  %v4921_v33 = vrot.slane %v8984_v5, %v8420_v28 }
0x2fd0   :  { %v5234_v25 = vadd.f32 %v5233_v45, %v4889_v52  ;;  %v5277_v49 = vadd.f32 %v5276_v0, %v4897_v9  ;;  %v5235_v6 = vpop.f32.mrb[121].mxu0  ;;  %v5278_v13 = vpop.f32.mrb[125].mxu1 }
0x2fd1   :  { %v5236_v39 = vadd.f32 %v5235_v6, %v4893_v17  ;;  %v5279_v51 = vadd.f32 %v5278_v13, %v4901_v18  ;;  %v5237_v53 = vpop.f32.mrb[122].mxu0  ;;  %v5280_v15 = vpop.f32.mrb[126].mxu1  ;;  %5738 = vmatprep.mubr.bf16.mxu0 %v5490_v26  ;;  %5779 = vmatprep.mubr.bf16.mxu1 %v5492_v42 }
0x2fd2   :  { %v5238_v22 = vadd.f32 %v5237_v53, %v4889_v52  ;;  %v5281_v40 = vadd.f32 %v5280_v15, %v4897_v9  ;;  %v5239_v61 = vpop.f32.mrb[123].mxu0  ;;  %v5282_v7 = vpop.f32.mrb[127].mxu1  ;;  %5739 = vmatmul.mubr.bf16.vlgmr.msra.gmra.mrb[132].mxu0 %v5489_v55  ;;  %5780 = vmatmul.mubr.bf16.vlgmr.msra.gmra.mrb[136].mxu1 %v5491_v44  ;;  %v5461_v10 = vmax.f32 %v5234_v25, 0.0  ;;  %v5463_v57 = vmax.f32 %v5277_v49, 0.0  ;;  %v9012_v52 = vld [vmem:[#allocation22 + $0x120] sm:$0xff] }
0x2fd3   :  { %v5240_v12 = vadd.f32 %v5239_v61, %v4893_v17  ;;  %v5283_v43 = vadd.f32 %v5282_v7, %v4901_v18  ;;  %5789 = vmatpush1.bf16.xpose.msra.mxu0 %v6343_v59  ;;  %5830 = vmatpush1.bf16.xpose.msra.mxu1 %v6345_v23  ;;  %v9014_v9 = vld [vmem:[#allocation22 + $0x160] sm:$0xff]  ;;  %v5462_v20 = vmax.f32 %v5236_v39, 0.0  ;;  %v5464_v46 = vmax.f32 %v5279_v51, 0.0  ;;  %v5527_v61 = vld [vmem:[#allocation22 + $0x1a8] sm:$0xff] }
0x2fd4   :  { %v5477_v8 = vmax.f32 %v5238_v22, 0.0  ;;  %v5479_v19 = vmax.f32 %v5281_v40, 0.0  ;;  %5790 = vmatprep.subr.bf16.mxu0 %v6360_v34  ;;  %5831 = vmatprep.subr.bf16.mxu1 %v6362_v50  ;;  %v6348_v2 = vcombine.high %v9012_v52, %v9014_v9  ;;  %v6350_v55 = vcombine.high %v9016_v62, %v9018_v47  ;;  %v5534_v40 = vld [vmem:[#allocation22 + $0x1e0] sm:$0xff]  ;;  %v5535_v7 = vld [vmem:[#allocation22 + $0x1e8] sm:$0xff] }
0x2fd5   :  { %v5478_v48 = vmax.f32 %v5240_v12, 0.0  ;;  %v5480_v59 = vmax.f32 %v5283_v43, 0.0  ;;  %v4929_v25 = vrot.slane %v8984_v5, %v8423_v31  ;;  %v4925_v49 = vrot.slane %v8984_v5, %v8426_v36 }
0x2fd6   :  { %v9020_v24 = vpack.c.bf16 %v5477_v8, %v5461_v10  ;;  %v9022_v21 = vpack.c.bf16 %v5479_v19, %v5463_v57  ;;  %v4933_v34 = vrot.slane %v8984_v5, %v8429_v38  ;;  %v6347_v43 = vcombine.low %v9012_v52, %v9014_v9 }
0x2fd7   :  { %v5494_v23 = vpack.c.bf16 %v5478_v48, %v5462_v20  ;;  %v5496_v17 = vpack.c.bf16 %v5480_v59, %v5464_v46  ;;  %v5319_v18 = vpop.f32.mrb[124].mxu0  ;;  %v5362_v3 = vpop.f32.mrb[128].mxu1  ;;  %v6349_v19 = vcombine.low %v9016_v62, %v9018_v47 }
0x2fd8   :  { %v5320_v1 = vadd.f32 %v5319_v18, %v4905_v56  ;;  %v5363_v16 = vadd.f32 %v5362_v3, %v4913_v14  ;;  %v5321_v35 = vpop.f32.mrb[125].mxu0  ;;  %v5364_v54 = vpop.f32.mrb[129].mxu1 }
0x2fd9   :  { %v5322_v44 = vadd.f32 %v5321_v35, %v4909_v32  ;;  %v5365_v26 = vadd.f32 %v5364_v54, %v4917_v29  ;;  %v5323_v42 = vpop.f32.mrb[126].mxu0  ;;  %v5366_v45 = vpop.f32.mrb[130].mxu1  ;;  %5820 = vmatprep.mubr.bf16.mxu0 %v5494_v23  ;;  %5861 = vmatprep.mubr.bf16.mxu1 %v5496_v17  ;;  %v6366_v17 = vcombine.high %v5527_v61, %v5535_v7 }
0x2fda   :  { %v5324_v37 = vadd.f32 %v5323_v42, %v4905_v56  ;;  %v5367_v41 = vadd.f32 %v5366_v45, %v4913_v14  ;;  %v5325_v4 = vpop.f32.mrb[127].mxu0  ;;  %v5368_v0 = vpop.f32.mrb[131].mxu1  ;;  %v5465_v50 = vmax.f32 %v5320_v1, 0.0  ;;  %v5467_v39 = vmax.f32 %v5363_v16, 0.0  ;;  %v5526_v14 = vld [vmem:[#allocation22 + $0x1a0] sm:$0xff]  ;;  %v5513_v42 = vld [vmem:[#allocation22 + $0x138] sm:$0xff] }
0x2fdb   :  { %v5326_v6 = vadd.f32 %v5325_v4, %v4909_v32  ;;  %v5369_v13 = vadd.f32 %v5368_v0, %v4917_v29  ;;  %5791 = vmatpush1.bf16.xpose.msra.mxu0 %v6359_v27  ;;  %5832 = vmatpush1.bf16.xpose.msra.mxu1 %v6361_v30  ;;  %v5466_v51 = vmax.f32 %v5322_v44, 0.0  ;;  %v5468_v53 = vmax.f32 %v5365_v26, 0.0  ;;  %v5521_v45 = vld [vmem:[#allocation22 + $0x178] sm:$0xff] }
0x2fdc   :  { %v5481_v28 = vmax.f32 %v5324_v37, 0.0  ;;  %v5483_v56 = vmax.f32 %v5367_v41, 0.0  ;;  %5870 = vmatprep.subr.bf16.mxu0 %v6348_v2  ;;  %5911 = vmatprep.subr.bf16.mxu1 %v6350_v55  ;;  %v6364_v23 = vcombine.high %v5526_v14, %v5534_v40  ;;  %v6363_v41 = vcombine.low %v5526_v14, %v5534_v40 }
0x2fdd   :  { %v5482_v15 = vmax.f32 %v5326_v6, 0.0  ;;  %v5484_v31 = vmax.f32 %v5369_v13, 0.0  ;;  %v6365_v4 = vcombine.low %v5527_v61, %v5535_v7  ;;  %v5536_v6 = vld [vmem:[#allocation22 + $0x1f0] sm:$0xff] }
0x2fde   :  { %v9040_v22 = vpack.c.bf16 %v5481_v28, %v5465_v50  ;;  %v9042_v36 = vpack.c.bf16 %v5483_v56, %v5467_v39  ;;  %v5537_v50 = vld [vmem:[#allocation22 + $0x1f8] sm:$0xff]  ;;  %v6353_v39 = vcombine.low %v5513_v42, %v5521_v45 }
0x2fdf   :  { %v5498_v32 = vpack.c.bf16 %v5482_v15, %v5466_v51  ;;  %v5500_v38 = vpack.c.bf16 %v5484_v31, %v5468_v53  ;;  %v5405_v5 = vpop.f32.mrb[128].mxu0  ;;  %v5448_v12 = vpop.f32.mrb[132].mxu1  ;;  %v6338_v15 = vld [vmem:[#allocation23 + $0x1] ss:$0 sm:$0xff] }
0x2fe0   :  { %v5406_v29 = vadd.f32 %v5405_v5, %v4921_v33  ;;  %v5449_v10 = vadd.f32 %v5448_v12, %v4929_v25  ;;  %v5407_v57 = vpop.f32.mrb[129].mxu0  ;;  %v5450_v8 = vpop.f32.mrb[133].mxu1 }
0x2fe1   :  { %v5408_v20 = vadd.f32 %v5407_v57, %v4925_v49  ;;  %v5451_v46 = vadd.f32 %v5450_v8, %v4933_v34  ;;  %v5409_v48 = vpop.f32.mrb[130].mxu0  ;;  %v5452_v59 = vpop.f32.mrb[134].mxu1 }
0x2fe2   :  { %v5410_v18 = vadd.f32 %v5409_v48, %v4921_v33  ;;  %v5453_v3 = vadd.f32 %v5452_v59, %v4929_v25  ;;  %5821 = vmatmul.mubr.bf16.vlgmr.msra.gmra.mrb[136].mxu0 %v9020_v24  ;;  %5862 = vmatmul.mubr.bf16.vlgmr.msra.gmra.mrb[140].mxu1 %v9022_v21  ;;  %v5411_v52 = vpop.f32.mrb[131].mxu0  ;;  %v5454_v9 = vpop.f32.mrb[135].mxu1  ;;  %v5469_v1 = vmax.f32 %v5406_v29, 0.0  ;;  %v5471_v62 = vmax.f32 %v5449_v10, 0.0  ;;  %v5512_v24 = vld [vmem:[#allocation22 + $0x130] sm:$0xff] }
0x2fe3   :  { %v5412_v27 = vadd.f32 %v5411_v52, %v4925_v49  ;;  %v5455_v30 = vadd.f32 %v5454_v9, %v4933_v34  ;;  %5871 = vmatpush1.bf16.xpose.msra.mxu0 %v6347_v43  ;;  %5902 = vmatprep.mubr.bf16.mxu0 %v5498_v32  ;;  %v5470_v35 = vmax.f32 %v5408_v20, 0.0  ;;  %v5472_v54 = vmax.f32 %v5451_v46, 0.0  ;;  %v5520_v21 = vld [vmem:[#allocation22 + $0x170] sm:$0xff]  ;;  %v5529_v34 = vld [vmem:[#allocation22 + $0x1b8] sm:$0xff] }
0x2fe4   :  { %v5485_v47 = vmax.f32 %v5410_v18, 0.0  ;;  %v5487_v16 = vmax.f32 %v5453_v3, 0.0  ;;  %5912 = vmatpush1.bf16.xpose.msra.mxu1 %v6349_v19  ;;  %5943 = vmatprep.mubr.bf16.mxu1 %v5500_v38  ;;  %v6352_v0 = vcombine.high %v5512_v24, %v5520_v21  ;;  %v6354_v25 = vcombine.high %v5513_v42, %v5521_v45  ;;  %v5528_v49 = vld [vmem:[#allocation22 + $0x1b0] sm:$0xff] }
0x2fe5   :  { %v5486_v2 = vmax.f32 %v5412_v27, 0.0  ;;  %v5488_v55 = vmax.f32 %v5455_v30, 0.0  ;;  %5872 = vmatprep.subr.bf16.mxu0 %v6364_v23  ;;  %5913 = vmatprep.subr.bf16.mxu1 %v6366_v17  ;;  %v6351_v13 = vcombine.low %v5512_v24, %v5520_v21  ;;  %v6368_v28 = vcombine.high %v5528_v49, %v5536_v6 }
0x2fe6   :  { %v5501_v44 = vpack.c.bf16 %v5485_v47, %v5469_v1  ;;  %v5503_v26 = vpack.c.bf16 %v5487_v16, %v5471_v62  ;;  %v6370_v56 = vcombine.high %v5529_v34, %v5537_v50  ;;  %v6367_v51 = vcombine.low %v5528_v49, %v5536_v6 }
0x2fe7   :  { %v5502_v33 = vpack.c.bf16 %v5486_v2, %v5470_v35  ;;  %v5504_v37 = vpack.c.bf16 %v5488_v55, %v5472_v54  ;;  %v6369_v53 = vcombine.low %v5529_v34, %v5537_v50 }
0x2feb   :  { %5873 = vmatpush1.bf16.xpose.msra.mxu0 %v6363_v41 }
0x2fec   :  { %5914 = vmatpush1.bf16.xpose.msra.mxu1 %v6365_v4  ;;  %5952 = vmatprep.subr.bf16.mxu0 %v6352_v0 }
0x2fed   :  { %5993 = vmatprep.subr.bf16.mxu1 %v6354_v25 }
0x2ff2   :  { %5903 = vmatmul.mubr.bf16.vlgmr.msra.gmra.mrb[140].mxu0 %v9040_v22 }
0x2ff3   :  { %5944 = vmatmul.mubr.bf16.vlgmr.msra.gmra.mrb[144].mxu1 %v9042_v36  ;;  %5953 = vmatpush1.bf16.xpose.msra.mxu0 %v6351_v13 }
0x2ff4   :  { %5984 = vmatprep.mubr.bf16.mxu0 %v5502_v33  ;;  %5994 = vmatpush1.bf16.xpose.msra.mxu1 %v6353_v39 }
0x2ff5   :  { %6025 = vmatprep.mubr.bf16.mxu1 %v5504_v37  ;;  %5954 = vmatprep.subr.bf16.mxu0 %v6368_v28 }
0x2ff6   :  { %5995 = vmatprep.subr.bf16.mxu1 %v6370_v56 }
0x2ffb   :  { %5955 = vmatpush1.bf16.xpose.msra.mxu0 %v6367_v51 }
0x2ffc   :  { %5996 = vmatpush1.bf16.xpose.msra.mxu1 %v6369_v53 }
0x3002   :  { %5985 = vmatmul.mubr.bf16.vlgmr.msra.gmra.mrb[144].mxu0 %v5501_v44 }
0x3003   :  { %6026 = vmatmul.mubr.bf16.vlgmr.msra.gmra.mrb[148].mxu1 %v5503_v26 }
0x30a5   :  { %v5740_v31 = vpop.f32.mrb[132].mxu0  ;;  %v5781_v14 = vpop.f32.mrb[136].mxu1 }
0x30a6   :  { %v5741_v40 = vadd.f32 %v6338_v15, %v5740_v31  ;;  %v5742_v22 = vpop.f32.mrb[133].mxu0  ;;  %v5783_v61 = vpop.f32.mrb[137].mxu1 }
0x30a7   :  { %v5743_v7 = vpop.f32.mrb[134].mxu0  ;;  %v5784_v36 = vpop.f32.mrb[138].mxu1 }
0x30a8   :  { %v5782_v32 = vadd.f32 %v5781_v14, %v5741_v40  ;;  %v5744_v38 = vadd.f32 %v6338_v15, %v5743_v7  ;;  %v5745_v5 = vpop.f32.mrb[135].mxu0  ;;  %v5786_v12 = vpop.f32.mrb[139].mxu1 }
0x30aa   :  { %v5785_v43 = vadd.f32 %v5784_v36, %v5744_v38 }
0x30b5   :  { %v5822_v29 = vpop.f32.mrb[136].mxu0  ;;  %v5863_v10 = vpop.f32.mrb[140].mxu1 }
0x30b6   :  { %v5823_v57 = vadd.f32 %v5822_v29, %v5782_v32  ;;  %v5824_v8 = vpop.f32.mrb[137].mxu0  ;;  %v5865_v19 = vpop.f32.mrb[141].mxu1 }
0x30b7   :  { %v5825_v20 = vpop.f32.mrb[138].mxu0  ;;  %v5866_v46 = vpop.f32.mrb[142].mxu1  ;;  %v6036_v19 = vld [vmem:[#allocation25] sm:$0x3] }
0x30b8   :  { %v5864_v48 = vadd.f32 %v5863_v10, %v5823_v57  ;;  %v5826_v59 = vadd.f32 %v5825_v20, %v5785_v43  ;;  %v5827_v23 = vpop.f32.mrb[139].mxu0  ;;  %v5868_v17 = vpop.f32.mrb[143].mxu1  ;;  %v6060_v20 = vrot.slane %v6036_v19, %v7940_v60 }
0x30ba   :  { %v5867_v18 = vadd.f32 %v5866_v46, %v5826_v59  ;;  %v6086_v46 = vrot.slane %v6036_v19, %v7944_v63 }
0x30c5   :  { %v5904_v3 = vpop.f32.mrb[140].mxu0 }
0x30c6   :  { %v5905_v52 = vadd.f32 %v5904_v3, %v5864_v48  ;;  %v5945_v9 = vpop.f32.mrb[144].mxu1  ;;  %v5906_v27 = vpop.f32.mrb[141].mxu0 }
0x30c7   :  { %v5947_v30 = vpop.f32.mrb[145].mxu1  ;;  %v5907_v1 = vpop.f32.mrb[142].mxu0 }
0x30c8   :  { %v5946_v62 = vadd.f32 %v5945_v9, %v5905_v52  ;;  %v5908_v47 = vadd.f32 %v5907_v1, %v5867_v18  ;;  %v5948_v16 = vpop.f32.mrb[146].mxu1  ;;  %v5909_v35 = vpop.f32.mrb[143].mxu0 }
0x30c9   :  { %v5950_v54 = vpop.f32.mrb[147].mxu1 }
0x30ca   :  { %v5949_v2 = vadd.f32 %v5948_v16, %v5908_v47 }
0x30d5   :  { %v5986_v55 = vpop.f32.mrb[144].mxu0 }
0x30d6   :  { %v5987_v24 = vadd.f32 %v5986_v55, %v5946_v62  ;;  %v6027_v21 = vpop.f32.mrb[148].mxu1  ;;  %v5988_v44 = vpop.f32.mrb[145].mxu0 }
0x30d7   :  { %v6029_v26 = vpop.f32.mrb[149].mxu1  ;;  %v5989_v42 = vpop.f32.mrb[146].mxu0 }
0x30d8   :  { %v6028_v45 = vadd.f32 %v6027_v21, %v5987_v24  ;;  %v5990_v33 = vadd.f32 %v5989_v42, %v5949_v2  ;;  %v6030_v37 = vpop.f32.mrb[150].mxu1  ;;  %v5991_v41 = vpop.f32.mrb[147].mxu0 }
0x30d9   :  { %v6032_v4 = vpop.f32.mrb[151].mxu1 }
0x30da   :  { %v6034_v0 = vadd.f32 %v6028_v45, %v8815_v58  ;;  %v6031_v25 = vadd.f32 %v6030_v37, %v5990_v33 }
0x30dc   :  { %v6035_v49 = vadd.f32 %v6031_v25, %v8818_v11  ;;  %v6037_v6 = vsel %vm395_vm3, %v6034_v0, 0.0 }
0x30dd   :  { %6038 = vadd.xlane.f32.xlu1 %v6037_v6 }
0x30de   :  { %v6040_v13 = vsel %vm395_vm3, %v6035_v49, 0.0 }
0x30df   :  { %6041 = vadd.xlane.f32.xlu0 %v6040_v13 }
0x316a   :  { %v6039_v34 = vpop.xlane.xlu1 %6038 }
0x316b   :  { %v6043_v50 = vmul.f32 0.03125, %v6039_v34 }
0x316c   :  { %v6042_v39 = vpop.xlane.xlu0 %6041 }
0x316d   :  { %v6045_v28 = vsub.f32 %v6034_v0, %v6043_v50  ;;  %v6044_v56 = vmul.f32 0.03125, %v6042_v39 }
0x316f   :  { %v6046_v51 = vsub.f32 %v6035_v49, %v6044_v56  ;;  %v6047_v53 = vmul.f32 %v6045_v28, %v6045_v28  ;;  %v6061_v48 = vmul.f32 %v6060_v20, %v6045_v28 }
0x3171   :  { %v6049_v15 = vsel %vm395_vm3, %v6047_v53, 0.0  ;;  %v6048_v31 = vmul.f32 %v6046_v51, %v6046_v51  ;;  %v6062_v17 = vmul.f32 %v6060_v20, %v6046_v51 }
0x3172   :  { %6050 = vadd.xlane.f32.xlu1 %v6049_v15 }
0x3173   :  { %v6052_v58 = vsel %vm395_vm3, %v6048_v31, 0.0 }
0x3174   :  { %6053 = vadd.xlane.f32.xlu0 %v6052_v58 }
0x31ff   :  { %v6051_v11 = vpop.xlane.xlu1 %6050 }
0x3200   :  { %v6055_v14 = vmul.f32 0.032258064, %v6051_v11 }
0x3201   :  { %v6054_v40 = vpop.xlane.xlu0 %6053 }
0x3202   :  { %7129 = vrsqrt.f32 %v6055_v14  ;;  %v6056_v22 = vmul.f32 0.032258064, %v6054_v40  ;;  %vm6065_vm0 = vcmp.eq.f32.partialorder %v6055_v14, inf  ;;  %v6068_v36 = vand.u32 2147483648, %v6055_v14 }
0x3203   :  { %vm6067_vm1 = vcmp.eq.f32.partialorder %v6055_v14, 0.0 }
0x3204   :  { %7131 = vrsqrt.f32 %v6056_v22  ;;  %vm6072_vm7 = vcmp.eq.f32.partialorder %v6056_v22, inf  ;;  %v6075_v29 = vand.u32 2147483648, %v6056_v22  ;;  %vm6074_vm8 = vcmp.eq.f32.partialorder %v6056_v22, 0.0 }
0x320c   :  { %v7130_v61 = vpop.eup %7129 }
0x320d   :  { %v6064_v7 = vmul.f32 %v7130_v61, %v6055_v14 }
0x320e   :  { %v7132_v32 = vpop.eup %7131 }
0x320f   :  { %v6066_v38 = vsel %vm6065_vm0, %v6055_v14, %v6064_v7  ;;  %v6071_v12 = vmul.f32 %v7132_v32, %v6056_v22 }
0x3210   :  { %v6069_v5 = vsel %vm6067_vm1, %v6068_v36, %v6066_v38 }
0x3211   :  { %v6077_v43 = vadd.f32 1e-06, %v6069_v5  ;;  %v6073_v10 = vsel %vm6072_vm7, %v6056_v22, %v6071_v12 }
0x3212   :  { %v6076_v57 = vsel %vm6074_vm8, %v6075_v29, %v6073_v10 }
0x3213   :  { %7133 = vrcp.f32 %v6077_v43  ;;  %v6078_v8 = vadd.f32 1e-06, %v6076_v57 }
0x3215   :  { %7135 = vrcp.f32 %v6078_v8 }
0x321d   :  { %v7134_v59 = vpop.eup %7133 }
0x321e   :  { %v6080_v23 = vmul.f32 %v7134_v59, %v6061_v48 }
0x321f   :  { %v7136_v18 = vpop.eup %7135 }
0x3220   :  { %v6087_v3 = vadd.f32 %v6086_v46, %v6080_v23  ;;  %v6082_v52 = vmul.f32 %v7136_v18, %v6062_v17 }
0x3222   :  { %6089 = vst.msk [vmem:[#allocation26] sm:$0xff] %vm395_vm3, %v6087_v3  ;;  %v6088_v9 = vadd.f32 %v6086_v46, %v6082_v52 }
0x3224   :  { %6090 = vst.msk [vmem:[#allocation26 + $0x8] sm:$0xff] %vm395_vm3, %v6088_v9 }
0x3225   :  { %7482 = shalt.err (!%p7479_p12)
}
0x3226   :  { %s9120_s2 = sld [smem:[#allocation43_spill]] }
0x322c   :  { %s7483_s13 = scalar_lea.hbm %s9120_s2, 256 }
0x322d   :  { %p7484_p13 = scmp.ne.s32.totalorder %s9120_s2, %s7483_s13  ;;  %p7487_p0 = scmp.lt.u32.totalorder %s7483_s13, %s9120_s2 }
0x322f   :  { %p7489_p1 = pnand %p7487_p0, %p7484_p13 }
0x3231   :  { %7492 = shalt.err (!%p7489_p1)
}
0x3232   :  { %s7550_s29 = smov 128  }
0x3233   :  { %6102 = dma.vmem_to_hbm [thread:$0]  %s6097_s14, 256, %s9120_s2, [#allocation4], %s7550_s29, %s7550_s29, %s7547_s11  }
0x3234   :  { %7509 = dma.done.wait [#allocation4], 256  }
0x3235   :  { %7510 = vsyncadd [#allocation4], 4294967040 }
0x3236   :  { %6106 = vsyncpa [#allocation3], 1 }
0x3237   :  { %6107 = vsyncpa [#allocation6], 1 }
0x3238   :  { %6108 = vsyncpa [#allocation9], 1 }
0x3239   :  { %6109 = vsyncpa [#allocation12], 1 }
0x323a   :  { %6110 = vsyncpa [#allocation15], 1 }
0x323b   :  { %6111 = vsyncpa [#allocation18], 1 }
0x323c   :  { %6112 = vsyncpa [#allocation21], 1 }
0x323d   :  { %6113 = vsyncpa [#allocation24], 1 }
0x323e   :  { %6114 = vsyncpa [#allocation4], 1 }

</bundles_post_ra>
